<compile_context>
chip_gen: v5e
topology: v5e:2x2
jax: 0.10.0
libtpu: 0.0.40
codegen_flags: <defaults>
</compile_context>

<pallas_src>
import functools

import jax
import jax.numpy as jnp
import numpy as np
from jax import lax
from jax.experimental import pallas as pl
from jax.experimental.pallas import tpu as pltpu


def _res_block_down_kernel(x_ref, prm_ref, w1_ref, w2_ref, ws_ref,
                           o_ref, pat_ref, pool_ref, *, C, H, W, N):
    """Single-invocation kernel (whole batch at once).

    x_ref   : (C, L)       input slab, L = N*H*W (batch+spatial folded into lanes)
    prm_ref : (C, 4)       packed per-channel scalars [s1, t1, b1', b2+bs]
    w1_ref  : (C, 10*C)    conv1 weights (BN2 folded in), bf16, col = tap*C + ci
    w2_ref  : (C, 10*C)    conv2 (ConvMeanPool) weights, bf16
    ws_ref  : (C, 10*C)    shortcut (ConvMeanPool) weights, bf16
    o_ref   : (C, Lo)      pooled output, Lo = N*Hh*Wh
    pat_ref : (10*C, L)    bf16 im2col patch scratch (tap 10 is a zero pad tap)
    pool_ref: (L, Lo)      f32 2x2 mean-pool matrix, built in-kernel
    """
    f32, bf16 = jnp.float32, jnp.bfloat16
    HW = H * W
    Hh, Wh = H // 2, W // 2
    HWh = Hh * Wh
    L, Lo = N * HW, N * HWh
    lg = lambda v: int(v).bit_length() - 1
    LGW, LGHW, LGWh, LGHWh = lg(W), lg(HW), lg(Wh), lg(HWh)

    taps = tuple((dy, dx) for dy in (-1, 0, 1) for dx in (-1, 0, 1))

    # ---- in-kernel constants (no HBM traffic) ------------------------------
    # per-lane (h, w) coordinates of the (C, L) activation slab
    li = lax.broadcasted_iota(jnp.int32, (C, L), 1)
    hh = (li >> LGW) & (H - 1)
    ww = li & (W - 1)
    masks = []                     # per-tap validity masks, (C, L) f32, built once
    for dy, dx in taps:
        if dy == 0 and dx == 0:
            masks.append(None)     # center tap is always in-image
            continue
        ok = ((hh + dy >= 0) & (hh + dy < H) & (ww + dx >= 0) & (ww + dx < W))
        masks.append(jnp.where(ok, jnp.float32(1.0), jnp.float32(0.0)))

    def write_patches(z):
        """z: (C, L) f32 -> pat_ref (10*C, L) bf16 shifted/masked im2col matrix."""
        ps = []
        for t, (dy, dx) in enumerate(taps):
            s = dy * W + dx
            p = z if s == 0 else pltpu.roll(z, (-s) % L, axis=1)
            if masks[t] is not None:
                p = p * masks[t]
            ps.append(p)
        ps.append(jnp.zeros((C, L), f32))           # zero pad tap (zero weights)
        for pair in range(5):                       # 2 taps = 16 rows per store
            pat_ref[2 * C * pair:2 * C * (pair + 1), :] = jnp.concatenate(
                [ps[2 * pair], ps[2 * pair + 1]], axis=0).astype(bf16)

    prm = prm_ref[...]
    s1, t1, b1, bo = prm[:, 0:1], prm[:, 1:2], prm[:, 2:3], prm[:, 3:4]

    x = x_ref[...]                                  # (C, L) f32

    # main path: BN1 -> ReLU -> conv1 (BN2 folded) -> ReLU -> conv2   (MXU matmuls)
    h1 = jnp.maximum(s1 * x + t1, 0.0)
    write_patches(h1)
    h2 = jnp.maximum(jnp.dot(w1_ref[...], pat_ref[...],
                             preferred_element_type=f32) + b1, 0.0)
    write_patches(h2)
    main = jnp.dot(w2_ref[...], pat_ref[...], preferred_element_type=f32)

    # shortcut path: 3x3 conv on raw x
    write_patches(x)
    short = jnp.dot(ws_ref[...], pat_ref[...], preferred_element_type=f32)

    # fused 2x2 mean pool of (main + shortcut): the 0/0.25 pool matrix is built
    # here from iota bit-decoding (no HBM input); biases commute with the mean.
    rl = lax.broadcasted_iota(jnp.int32, (L, Lo), 0)
    co = lax.broadcasted_iota(jnp.int32, (L, Lo), 1)
    hl = (rl >> LGW) & (H - 1)
    wl = rl & (W - 1)
    pooled = (((rl >> LGHW) << LGHWh) | ((hl >> 1) << LGWh) | (wl >> 1))
    pool_ref[...] = jnp.where(pooled == co, jnp.float32(0.25), jnp.float32(0.0))

    o_ref[...] = jnp.dot(main + short, pool_ref[...],
                         preferred_element_type=f32) + bo     # lane-dense store


def residual_block_down(x, params, eps=1e-5):
    """ResidualBlock(n_input=C, n_output=C, k_size=3, resample='down', bn=True),
    eval-mode BatchNorm.  x: (N, C, H, W) f32 -> (N, C, H//2, W//2) f32."""
    (w1, b1, w2, b2, ws, bs, g1, be1, m1, v1, g2, be2, m2, v2) = params
    N, C, H, W = x.shape
    assert w1.shape == (C, C, 3, 3) and w2.shape == (C, C, 3, 3)
    assert ws.shape == (C, C, 3, 3)              # 'down' needs n_input == n_output
    assert H >= 4 and W >= 4 and (H & (H - 1)) == 0 and (W & (W - 1)) == 0
    Hh, Wh = H // 2, W // 2
    L, Lo = N * H * W, N * Hh * Wh
    f32, bf16 = jnp.float32, jnp.bfloat16

    # ---- layout plumbing: lane-dense slab ----------------------------------
    x_flat = x.astype(f32).transpose(1, 0, 2, 3).reshape(C, L)     # (C, N*H*W)

    # ---- fold eval-mode BN into per-channel affines; fold BN2 into conv1 ---
    s1 = g1 / jnp.sqrt(v1 + eps)
    t1 = be1 - m1 * s1
    s2 = g2 / jnp.sqrt(v2 + eps)
    t2 = be2 - m2 * s2

    def conv_mat(w, row_scale=None):
        # (Cout, Cin, 3, 3) -> (Cout, 10*Cin) bf16, col = (ky*3+kx)*Cin + ci,
        # last Cin columns are the zero pad tap.
        cm = w.transpose(0, 2, 3, 1).reshape(w.shape[0], 9 * w.shape[1]).astype(f32)
        if row_scale is not None:
            cm = cm * row_scale[:, None]
        cm = jnp.pad(cm, ((0, 0), (0, w.shape[1])))
        return cm.astype(bf16)

    # packed per-channel scalars: [s1, t1, s2*b1+t2, b2+bs]
    prm = jnp.stack([s1, t1, s2 * b1 + t2, b2 + bs], axis=1).astype(f32)   # (C, 4)

    kernel = functools.partial(_res_block_down_kernel, C=C, H=H, W=W, N=N)
    vmem = pl.BlockSpec(memory_space=pltpu.MemorySpace.VMEM)

    y = pl.pallas_call(
        kernel,
        out_shape=jax.ShapeDtypeStruct((C, Lo), f32),
        in_specs=[vmem] * 5,
        out_specs=vmem,
        scratch_shapes=[
            pltpu.VMEM((10 * C, L), bf16),     # bf16 im2col patch matrix
            pltpu.VMEM((L, Lo), f32),          # in-kernel 2x2 mean-pool matrix
        ],
    )(x_flat, prm, conv_mat(w1, s2), conv_mat(w2), conv_mat(ws))

    return y.reshape(C, N, Hh, Wh).transpose(1, 0, 2, 3)


def ref_residual_block_down(x, params, eps=1e-5):
    """Plain-JAX reference matching the PyTorch forward (eval-mode BN)."""
    (w1, b1, w2, b2, ws, bs, g1, be1, m1, v1, g2, be2, m2, v2) = params
    dn = ('NCHW', 'OIHW', 'NCHW')

    def bn(z, g, b, m, v):
        s = g / jnp.sqrt(v + eps)
        return z * s[None, :, None, None] + (b - m * s)[None, :, None, None]

    def conv(z, w, b):
        return lax.conv_general_dilated(
            z, w, (1, 1), ((1, 1), (1, 1)), dimension_numbers=dn,
            precision=lax.Precision.HIGHEST) + b[None, :, None, None]

    def meanpool(z):
        return (z[:, :, ::2, ::2] + z[:, :, 1::2, ::2]
                + z[:, :, ::2, 1::2] + z[:, :, 1::2, 1::2]) / 4.0

    h = jnp.maximum(bn(x, g1, be1, m1, v1), 0.0)
    h = conv(h, w1, b1)
    h = jnp.maximum(bn(h, g2, be2, m2, v2), 0.0)
    main = meanpool(conv(h, w2, b2))
    short = meanpool(conv(x, ws, bs))
    return short + main


if __name__ == "__main__":
    # ResidualBlock(n_input=8, n_output=8, k_size=3, resample='down', bn=True)
    N, C, H, W = 2, 8, 16, 16
    key = jax.random.PRNGKey(0)
    ks = jax.random.split(key, 15)

    def uconv(k, cout, cin):
        bnd = 1.0 / float(np.sqrt(cin * 9))
        return jax.random.uniform(k, (cout, cin, 3, 3), jnp.float32, -bnd, bnd)

    def ubias(k, cout, cin):
        bnd = 1.0 / float(np.sqrt(cin * 9))
        return jax.random.uniform(k, (cout,), jnp.float32, -bnd, bnd)

    x = jax.random.normal(ks[0], (N, C, H, W), jnp.float32)
    w1, b1 = uconv(ks[1], C, C), ubias(ks[2], C, C)
    w2, b2 = uconv(ks[3], C, C), ubias(ks[4], C, C)
    ws, bs = uconv(ks[5], C, C), ubias(ks[6], C, C)
    # eval-mode BatchNorm affine params + running statistics
    g1 = 1.0 + 0.1 * jax.random.normal(ks[7], (C,), jnp.float32)
    be1 = 0.1 * jax.random.normal(ks[8], (C,), jnp.float32)
    m1 = 0.1 * jax.random.normal(ks[9], (C,), jnp.float32)
    v1 = jax.random.uniform(ks[10], (C,), jnp.float32, 0.5, 1.5)
    g2 = 1.0 + 0.1 * jax.random.normal(ks[11], (C,), jnp.float32)
    be2 = 0.1 * jax.random.normal(ks[12], (C,), jnp.float32)
    m2 = 0.1 * jax.random.normal(ks[13], (C,), jnp.float32)
    v2 = jax.random.uniform(ks[14], (C,), jnp.float32, 0.5, 1.5)
    params = (w1, b1, w2, b2, ws, bs, g1, be1, m1, v1, g2, be2, m2, v2)

    fn = jax.jit(residual_block_down)
    out = jax.block_until_ready(fn(x, params))
    assert out.shape == (N, C, H // 2, W // 2)

    ref = ref_residual_block_down(x, params)
    # Conv matmuls feed bf16 operands to the MXU (same multiplier passes as
    # default f32 precision); the pool matmul keeps f32 operands.  Compare
    # against the exact-f32 reference with a matching tolerance.
    np.testing.assert_allclose(np.asarray(out), np.asarray(ref),
                               rtol=2e-2, atol=2e-2)
    print("KERNEL_OK")
</pallas_src>

<mosaic_0001>
module attributes {stable_mosaic.version = 11 : i64} {
  func.func @_res_block_down_kernel(%arg0: memref<8x512xf32, #tpu.memory_space<vmem>>, %arg1: memref<8x4xf32, #tpu.memory_space<vmem>>, %arg2: memref<8x80xbf16, #tpu.memory_space<vmem>>, %arg3: memref<8x80xbf16, #tpu.memory_space<vmem>>, %arg4: memref<8x80xbf16, #tpu.memory_space<vmem>>, %arg5: memref<8x128xf32, #tpu.memory_space<vmem>>, %arg6: memref<80x512xbf16, #tpu.memory_space<vmem>>, %arg7: memref<512x128xf32, #tpu.memory_space<vmem>>) attributes {dimension_semantics = [], scalar_prefetch = 0 : i64, scratch_operands = 2 : i64, tpu.core_type = #tpu.core_type<tc>} {
    %0 = tpu.iota {dimensions = array<i32: 1>} : vector<8x512xi32>
    %c4_i32 = arith.constant 4 : i32
    %1 = vector.broadcast %c4_i32 : i32 to vector<8x512xi32>
    %2 = arith.shrsi %0, %1 : vector<8x512xi32>
    %c15_i32 = arith.constant 15 : i32
    %3 = vector.broadcast %c15_i32 : i32 to vector<8x512xi32>
    %4 = arith.andi %2, %3 : vector<8x512xi32>
    %c15_i32_0 = arith.constant 15 : i32
    %5 = vector.broadcast %c15_i32_0 : i32 to vector<8x512xi32>
    %6 = arith.andi %0, %5 : vector<8x512xi32>
    %c-1_i32 = arith.constant -1 : i32
    %7 = vector.broadcast %c-1_i32 : i32 to vector<8x512xi32>
    %8 = arith.addi %4, %7 : vector<8x512xi32>
    %c0_i32 = arith.constant 0 : i32
    %9 = vector.broadcast %c0_i32 : i32 to vector<8x512xi32>
    %10 = arith.cmpi sge, %8, %9 : vector<8x512xi32>
    %c-1_i32_1 = arith.constant -1 : i32
    %11 = vector.broadcast %c-1_i32_1 : i32 to vector<8x512xi32>
    %12 = arith.addi %4, %11 : vector<8x512xi32>
    %c16_i32 = arith.constant 16 : i32
    %13 = vector.broadcast %c16_i32 : i32 to vector<8x512xi32>
    %14 = arith.cmpi slt, %12, %13 : vector<8x512xi32>
    %15 = arith.andi %10, %14 : vector<8x512xi1>
    %c-1_i32_2 = arith.constant -1 : i32
    %16 = vector.broadcast %c-1_i32_2 : i32 to vector<8x512xi32>
    %17 = arith.addi %6, %16 : vector<8x512xi32>
    %c0_i32_3 = arith.constant 0 : i32
    %18 = vector.broadcast %c0_i32_3 : i32 to vector<8x512xi32>
    %19 = arith.cmpi sge, %17, %18 : vector<8x512xi32>
    %20 = arith.andi %15, %19 : vector<8x512xi1>
    %c-1_i32_4 = arith.constant -1 : i32
    %21 = vector.broadcast %c-1_i32_4 : i32 to vector<8x512xi32>
    %22 = arith.addi %6, %21 : vector<8x512xi32>
    %c16_i32_5 = arith.constant 16 : i32
    %23 = vector.broadcast %c16_i32_5 : i32 to vector<8x512xi32>
    %24 = arith.cmpi slt, %22, %23 : vector<8x512xi32>
    %25 = arith.andi %20, %24 : vector<8x512xi1>
    %cst = arith.constant 1.000000e+00 : f32
    %cst_6 = arith.constant 0.000000e+00 : f32
    %26 = vector.broadcast %cst : f32 to vector<8x512xf32>
    %27 = vector.broadcast %cst_6 : f32 to vector<8x512xf32>
    %28 = arith.select %25, %26, %27 : vector<8x512xi1>, vector<8x512xf32>
    %c-1_i32_7 = arith.constant -1 : i32
    %29 = vector.broadcast %c-1_i32_7 : i32 to vector<8x512xi32>
    %30 = arith.addi %4, %29 : vector<8x512xi32>
    %c0_i32_8 = arith.constant 0 : i32
    %31 = vector.broadcast %c0_i32_8 : i32 to vector<8x512xi32>
    %32 = arith.cmpi sge, %30, %31 : vector<8x512xi32>
    %c-1_i32_9 = arith.constant -1 : i32
    %33 = vector.broadcast %c-1_i32_9 : i32 to vector<8x512xi32>
    %34 = arith.addi %4, %33 : vector<8x512xi32>
    %c16_i32_10 = arith.constant 16 : i32
    %35 = vector.broadcast %c16_i32_10 : i32 to vector<8x512xi32>
    %36 = arith.cmpi slt, %34, %35 : vector<8x512xi32>
    %37 = arith.andi %32, %36 : vector<8x512xi1>
    %c0_i32_11 = arith.constant 0 : i32
    %38 = vector.broadcast %c0_i32_11 : i32 to vector<8x512xi32>
    %39 = arith.addi %6, %38 : vector<8x512xi32>
    %c0_i32_12 = arith.constant 0 : i32
    %40 = vector.broadcast %c0_i32_12 : i32 to vector<8x512xi32>
    %41 = arith.cmpi sge, %39, %40 : vector<8x512xi32>
    %42 = arith.andi %37, %41 : vector<8x512xi1>
    %c0_i32_13 = arith.constant 0 : i32
    %43 = vector.broadcast %c0_i32_13 : i32 to vector<8x512xi32>
    %44 = arith.addi %6, %43 : vector<8x512xi32>
    %c16_i32_14 = arith.constant 16 : i32
    %45 = vector.broadcast %c16_i32_14 : i32 to vector<8x512xi32>
    %46 = arith.cmpi slt, %44, %45 : vector<8x512xi32>
    %47 = arith.andi %42, %46 : vector<8x512xi1>
    %cst_15 = arith.constant 1.000000e+00 : f32
    %cst_16 = arith.constant 0.000000e+00 : f32
    %48 = vector.broadcast %cst_15 : f32 to vector<8x512xf32>
    %49 = vector.broadcast %cst_16 : f32 to vector<8x512xf32>
    %50 = arith.select %47, %48, %49 : vector<8x512xi1>, vector<8x512xf32>
    %c-1_i32_17 = arith.constant -1 : i32
    %51 = vector.broadcast %c-1_i32_17 : i32 to vector<8x512xi32>
    %52 = arith.addi %4, %51 : vector<8x512xi32>
    %c0_i32_18 = arith.constant 0 : i32
    %53 = vector.broadcast %c0_i32_18 : i32 to vector<8x512xi32>
    %54 = arith.cmpi sge, %52, %53 : vector<8x512xi32>
    %c-1_i32_19 = arith.constant -1 : i32
    %55 = vector.broadcast %c-1_i32_19 : i32 to vector<8x512xi32>
    %56 = arith.addi %4, %55 : vector<8x512xi32>
    %c16_i32_20 = arith.constant 16 : i32
    %57 = vector.broadcast %c16_i32_20 : i32 to vector<8x512xi32>
    %58 = arith.cmpi slt, %56, %57 : vector<8x512xi32>
    %59 = arith.andi %54, %58 : vector<8x512xi1>
    %c1_i32 = arith.constant 1 : i32
    %60 = vector.broadcast %c1_i32 : i32 to vector<8x512xi32>
    %61 = arith.addi %6, %60 : vector<8x512xi32>
    %c0_i32_21 = arith.constant 0 : i32
    %62 = vector.broadcast %c0_i32_21 : i32 to vector<8x512xi32>
    %63 = arith.cmpi sge, %61, %62 : vector<8x512xi32>
    %64 = arith.andi %59, %63 : vector<8x512xi1>
    %c1_i32_22 = arith.constant 1 : i32
    %65 = vector.broadcast %c1_i32_22 : i32 to vector<8x512xi32>
    %66 = arith.addi %6, %65 : vector<8x512xi32>
    %c16_i32_23 = arith.constant 16 : i32
    %67 = vector.broadcast %c16_i32_23 : i32 to vector<8x512xi32>
    %68 = arith.cmpi slt, %66, %67 : vector<8x512xi32>
    %69 = arith.andi %64, %68 : vector<8x512xi1>
    %cst_24 = arith.constant 1.000000e+00 : f32
    %cst_25 = arith.constant 0.000000e+00 : f32
    %70 = vector.broadcast %cst_24 : f32 to vector<8x512xf32>
    %71 = vector.broadcast %cst_25 : f32 to vector<8x512xf32>
    %72 = arith.select %69, %70, %71 : vector<8x512xi1>, vector<8x512xf32>
    %c0_i32_26 = arith.constant 0 : i32
    %73 = vector.broadcast %c0_i32_26 : i32 to vector<8x512xi32>
    %74 = arith.addi %4, %73 : vector<8x512xi32>
    %c0_i32_27 = arith.constant 0 : i32
    %75 = vector.broadcast %c0_i32_27 : i32 to vector<8x512xi32>
    %76 = arith.cmpi sge, %74, %75 : vector<8x512xi32>
    %c0_i32_28 = arith.constant 0 : i32
    %77 = vector.broadcast %c0_i32_28 : i32 to vector<8x512xi32>
    %78 = arith.addi %4, %77 : vector<8x512xi32>
    %c16_i32_29 = arith.constant 16 : i32
    %79 = vector.broadcast %c16_i32_29 : i32 to vector<8x512xi32>
    %80 = arith.cmpi slt, %78, %79 : vector<8x512xi32>
    %81 = arith.andi %76, %80 : vector<8x512xi1>
    %c-1_i32_30 = arith.constant -1 : i32
    %82 = vector.broadcast %c-1_i32_30 : i32 to vector<8x512xi32>
    %83 = arith.addi %6, %82 : vector<8x512xi32>
    %c0_i32_31 = arith.constant 0 : i32
    %84 = vector.broadcast %c0_i32_31 : i32 to vector<8x512xi32>
    %85 = arith.cmpi sge, %83, %84 : vector<8x512xi32>
    %86 = arith.andi %81, %85 : vector<8x512xi1>
    %c-1_i32_32 = arith.constant -1 : i32
    %87 = vector.broadcast %c-1_i32_32 : i32 to vector<8x512xi32>
    %88 = arith.addi %6, %87 : vector<8x512xi32>
    %c16_i32_33 = arith.constant 16 : i32
    %89 = vector.broadcast %c16_i32_33 : i32 to vector<8x512xi32>
    %90 = arith.cmpi slt, %88, %89 : vector<8x512xi32>
    %91 = arith.andi %86, %90 : vector<8x512xi1>
    %cst_34 = arith.constant 1.000000e+00 : f32
    %cst_35 = arith.constant 0.000000e+00 : f32
    %92 = vector.broadcast %cst_34 : f32 to vector<8x512xf32>
    %93 = vector.broadcast %cst_35 : f32 to vector<8x512xf32>
    %94 = arith.select %91, %92, %93 : vector<8x512xi1>, vector<8x512xf32>
    %c0_i32_36 = arith.constant 0 : i32
    %95 = vector.broadcast %c0_i32_36 : i32 to vector<8x512xi32>
    %96 = arith.addi %4, %95 : vector<8x512xi32>
    %c0_i32_37 = arith.constant 0 : i32
    %97 = vector.broadcast %c0_i32_37 : i32 to vector<8x512xi32>
    %98 = arith.cmpi sge, %96, %97 : vector<8x512xi32>
    %c0_i32_38 = arith.constant 0 : i32
    %99 = vector.broadcast %c0_i32_38 : i32 to vector<8x512xi32>
    %100 = arith.addi %4, %99 : vector<8x512xi32>
    %c16_i32_39 = arith.constant 16 : i32
    %101 = vector.broadcast %c16_i32_39 : i32 to vector<8x512xi32>
    %102 = arith.cmpi slt, %100, %101 : vector<8x512xi32>
    %103 = arith.andi %98, %102 : vector<8x512xi1>
    %c1_i32_40 = arith.constant 1 : i32
    %104 = vector.broadcast %c1_i32_40 : i32 to vector<8x512xi32>
    %105 = arith.addi %6, %104 : vector<8x512xi32>
    %c0_i32_41 = arith.constant 0 : i32
    %106 = vector.broadcast %c0_i32_41 : i32 to vector<8x512xi32>
    %107 = arith.cmpi sge, %105, %106 : vector<8x512xi32>
    %108 = arith.andi %103, %107 : vector<8x512xi1>
    %c1_i32_42 = arith.constant 1 : i32
    %109 = vector.broadcast %c1_i32_42 : i32 to vector<8x512xi32>
    %110 = arith.addi %6, %109 : vector<8x512xi32>
    %c16_i32_43 = arith.constant 16 : i32
    %111 = vector.broadcast %c16_i32_43 : i32 to vector<8x512xi32>
    %112 = arith.cmpi slt, %110, %111 : vector<8x512xi32>
    %113 = arith.andi %108, %112 : vector<8x512xi1>
    %cst_44 = arith.constant 1.000000e+00 : f32
    %cst_45 = arith.constant 0.000000e+00 : f32
    %114 = vector.broadcast %cst_44 : f32 to vector<8x512xf32>
    %115 = vector.broadcast %cst_45 : f32 to vector<8x512xf32>
    %116 = arith.select %113, %114, %115 : vector<8x512xi1>, vector<8x512xf32>
    %c1_i32_46 = arith.constant 1 : i32
    %117 = vector.broadcast %c1_i32_46 : i32 to vector<8x512xi32>
    %118 = arith.addi %4, %117 : vector<8x512xi32>
    %c0_i32_47 = arith.constant 0 : i32
    %119 = vector.broadcast %c0_i32_47 : i32 to vector<8x512xi32>
    %120 = arith.cmpi sge, %118, %119 : vector<8x512xi32>
    %c1_i32_48 = arith.constant 1 : i32
    %121 = vector.broadcast %c1_i32_48 : i32 to vector<8x512xi32>
    %122 = arith.addi %4, %121 : vector<8x512xi32>
    %c16_i32_49 = arith.constant 16 : i32
    %123 = vector.broadcast %c16_i32_49 : i32 to vector<8x512xi32>
    %124 = arith.cmpi slt, %122, %123 : vector<8x512xi32>
    %125 = arith.andi %120, %124 : vector<8x512xi1>
    %c-1_i32_50 = arith.constant -1 : i32
    %126 = vector.broadcast %c-1_i32_50 : i32 to vector<8x512xi32>
    %127 = arith.addi %6, %126 : vector<8x512xi32>
    %c0_i32_51 = arith.constant 0 : i32
    %128 = vector.broadcast %c0_i32_51 : i32 to vector<8x512xi32>
    %129 = arith.cmpi sge, %127, %128 : vector<8x512xi32>
    %130 = arith.andi %125, %129 : vector<8x512xi1>
    %c-1_i32_52 = arith.constant -1 : i32
    %131 = vector.broadcast %c-1_i32_52 : i32 to vector<8x512xi32>
    %132 = arith.addi %6, %131 : vector<8x512xi32>
    %c16_i32_53 = arith.constant 16 : i32
    %133 = vector.broadcast %c16_i32_53 : i32 to vector<8x512xi32>
    %134 = arith.cmpi slt, %132, %133 : vector<8x512xi32>
    %135 = arith.andi %130, %134 : vector<8x512xi1>
    %cst_54 = arith.constant 1.000000e+00 : f32
    %cst_55 = arith.constant 0.000000e+00 : f32
    %136 = vector.broadcast %cst_54 : f32 to vector<8x512xf32>
    %137 = vector.broadcast %cst_55 : f32 to vector<8x512xf32>
    %138 = arith.select %135, %136, %137 : vector<8x512xi1>, vector<8x512xf32>
    %c1_i32_56 = arith.constant 1 : i32
    %139 = vector.broadcast %c1_i32_56 : i32 to vector<8x512xi32>
    %140 = arith.addi %4, %139 : vector<8x512xi32>
    %c0_i32_57 = arith.constant 0 : i32
    %141 = vector.broadcast %c0_i32_57 : i32 to vector<8x512xi32>
    %142 = arith.cmpi sge, %140, %141 : vector<8x512xi32>
    %c1_i32_58 = arith.constant 1 : i32
    %143 = vector.broadcast %c1_i32_58 : i32 to vector<8x512xi32>
    %144 = arith.addi %4, %143 : vector<8x512xi32>
    %c16_i32_59 = arith.constant 16 : i32
    %145 = vector.broadcast %c16_i32_59 : i32 to vector<8x512xi32>
    %146 = arith.cmpi slt, %144, %145 : vector<8x512xi32>
    %147 = arith.andi %142, %146 : vector<8x512xi1>
    %c0_i32_60 = arith.constant 0 : i32
    %148 = vector.broadcast %c0_i32_60 : i32 to vector<8x512xi32>
    %149 = arith.addi %6, %148 : vector<8x512xi32>
    %c0_i32_61 = arith.constant 0 : i32
    %150 = vector.broadcast %c0_i32_61 : i32 to vector<8x512xi32>
    %151 = arith.cmpi sge, %149, %150 : vector<8x512xi32>
    %152 = arith.andi %147, %151 : vector<8x512xi1>
    %c0_i32_62 = arith.constant 0 : i32
    %153 = vector.broadcast %c0_i32_62 : i32 to vector<8x512xi32>
    %154 = arith.addi %6, %153 : vector<8x512xi32>
    %c16_i32_63 = arith.constant 16 : i32
    %155 = vector.broadcast %c16_i32_63 : i32 to vector<8x512xi32>
    %156 = arith.cmpi slt, %154, %155 : vector<8x512xi32>
    %157 = arith.andi %152, %156 : vector<8x512xi1>
    %cst_64 = arith.constant 1.000000e+00 : f32
    %cst_65 = arith.constant 0.000000e+00 : f32
    %158 = vector.broadcast %cst_64 : f32 to vector<8x512xf32>
    %159 = vector.broadcast %cst_65 : f32 to vector<8x512xf32>
    %160 = arith.select %157, %158, %159 : vector<8x512xi1>, vector<8x512xf32>
    %c1_i32_66 = arith.constant 1 : i32
    %161 = vector.broadcast %c1_i32_66 : i32 to vector<8x512xi32>
    %162 = arith.addi %4, %161 : vector<8x512xi32>
    %c0_i32_67 = arith.constant 0 : i32
    %163 = vector.broadcast %c0_i32_67 : i32 to vector<8x512xi32>
    %164 = arith.cmpi sge, %162, %163 : vector<8x512xi32>
    %c1_i32_68 = arith.constant 1 : i32
    %165 = vector.broadcast %c1_i32_68 : i32 to vector<8x512xi32>
    %166 = arith.addi %4, %165 : vector<8x512xi32>
    %c16_i32_69 = arith.constant 16 : i32
    %167 = vector.broadcast %c16_i32_69 : i32 to vector<8x512xi32>
    %168 = arith.cmpi slt, %166, %167 : vector<8x512xi32>
    %169 = arith.andi %164, %168 : vector<8x512xi1>
    %c1_i32_70 = arith.constant 1 : i32
    %170 = vector.broadcast %c1_i32_70 : i32 to vector<8x512xi32>
    %171 = arith.addi %6, %170 : vector<8x512xi32>
    %c0_i32_71 = arith.constant 0 : i32
    %172 = vector.broadcast %c0_i32_71 : i32 to vector<8x512xi32>
    %173 = arith.cmpi sge, %171, %172 : vector<8x512xi32>
    %174 = arith.andi %169, %173 : vector<8x512xi1>
    %c1_i32_72 = arith.constant 1 : i32
    %175 = vector.broadcast %c1_i32_72 : i32 to vector<8x512xi32>
    %176 = arith.addi %6, %175 : vector<8x512xi32>
    %c16_i32_73 = arith.constant 16 : i32
    %177 = vector.broadcast %c16_i32_73 : i32 to vector<8x512xi32>
    %178 = arith.cmpi slt, %176, %177 : vector<8x512xi32>
    %179 = arith.andi %174, %178 : vector<8x512xi1>
    %cst_74 = arith.constant 1.000000e+00 : f32
    %cst_75 = arith.constant 0.000000e+00 : f32
    %180 = vector.broadcast %cst_74 : f32 to vector<8x512xf32>
    %181 = vector.broadcast %cst_75 : f32 to vector<8x512xf32>
    %182 = arith.select %179, %180, %181 : vector<8x512xi1>, vector<8x512xf32>
    %c0 = arith.constant 0 : index
    %c0_76 = arith.constant 0 : index
    %183 = vector.load %arg1[%c0, %c0_76] : memref<8x4xf32, #tpu.memory_space<vmem>>, vector<8x4xf32>
    %184 = vector.extract_strided_slice %183 {offsets = [0, 0], sizes = [8, 1], strides = [1, 1]} : vector<8x4xf32> to vector<8x1xf32>
    %185 = vector.extract_strided_slice %183 {offsets = [0, 1], sizes = [8, 1], strides = [1, 1]} : vector<8x4xf32> to vector<8x1xf32>
    %186 = vector.extract_strided_slice %183 {offsets = [0, 2], sizes = [8, 1], strides = [1, 1]} : vector<8x4xf32> to vector<8x1xf32>
    %187 = vector.extract_strided_slice %183 {offsets = [0, 3], sizes = [8, 1], strides = [1, 1]} : vector<8x4xf32> to vector<8x1xf32>
    %c0_77 = arith.constant 0 : index
    %c0_78 = arith.constant 0 : index
    %188 = vector.load %arg0[%c0_77, %c0_78] : memref<8x512xf32, #tpu.memory_space<vmem>>, vector<8x512xf32>
    %189 = vector.broadcast %184 : vector<8x1xf32> to vector<8x512xf32>
    %190 = arith.mulf %189, %188 : vector<8x512xf32>
    %191 = vector.broadcast %185 : vector<8x1xf32> to vector<8x512xf32>
    %192 = arith.addf %190, %191 : vector<8x512xf32>
    %cst_79 = arith.constant 0.000000e+00 : f32
    %193 = vector.broadcast %cst_79 : f32 to vector<8x512xf32>
    %194 = arith.maximumf %192, %193 : vector<8x512xf32>
    %c17_i32 = arith.constant 17 : i32
    %195 = tpu.dynamic_rotate %194 by %c17_i32 dim 1 : vector<8x512xf32>, i32 -> vector<8x512xf32>
    %196 = arith.mulf %195, %28 : vector<8x512xf32>
    %c16_i32_80 = arith.constant 16 : i32
    %197 = tpu.dynamic_rotate %194 by %c16_i32_80 dim 1 : vector<8x512xf32>, i32 -> vector<8x512xf32>
    %198 = arith.mulf %197, %50 : vector<8x512xf32>
    %c15_i32_81 = arith.constant 15 : i32
    %199 = tpu.dynamic_rotate %194 by %c15_i32_81 dim 1 : vector<8x512xf32>, i32 -> vector<8x512xf32>
    %200 = arith.mulf %199, %72 : vector<8x512xf32>
    %c1_i32_82 = arith.constant 1 : i32
    %201 = tpu.dynamic_rotate %194 by %c1_i32_82 dim 1 : vector<8x512xf32>, i32 -> vector<8x512xf32>
    %202 = arith.mulf %201, %94 : vector<8x512xf32>
    %c511_i32 = arith.constant 511 : i32
    %203 = tpu.dynamic_rotate %194 by %c511_i32 dim 1 : vector<8x512xf32>, i32 -> vector<8x512xf32>
    %204 = arith.mulf %203, %116 : vector<8x512xf32>
    %c497_i32 = arith.constant 497 : i32
    %205 = tpu.dynamic_rotate %194 by %c497_i32 dim 1 : vector<8x512xf32>, i32 -> vector<8x512xf32>
    %206 = arith.mulf %205, %138 : vector<8x512xf32>
    %c496_i32 = arith.constant 496 : i32
    %207 = tpu.dynamic_rotate %194 by %c496_i32 dim 1 : vector<8x512xf32>, i32 -> vector<8x512xf32>
    %208 = arith.mulf %207, %160 : vector<8x512xf32>
    %c495_i32 = arith.constant 495 : i32
    %209 = tpu.dynamic_rotate %194 by %c495_i32 dim 1 : vector<8x512xf32>, i32 -> vector<8x512xf32>
    %210 = arith.mulf %209, %182 : vector<8x512xf32>
    %cst_83 = arith.constant 0.000000e+00 : f32
    %211 = vector.broadcast %cst_83 : f32 to vector<8x512xf32>
    %212 = tpu.concatenate %196, %198 in 0 : vector<8x512xf32>, vector<8x512xf32> -> vector<16x512xf32>
    %213 = arith.truncf %212 : vector<16x512xf32> to vector<16x512xbf16>
    %c0_84 = arith.constant 0 : index
    %c0_85 = arith.constant 0 : index
    %214 = vector.load %arg6[%c0_84, %c0_85] : memref<80x512xbf16, #tpu.memory_space<vmem>>, vector<16x512xbf16>
    tpu.vector_store %arg6[%c0_84, %c0_85], %213 {strides = array<i32>} : memref<80x512xbf16, #tpu.memory_space<vmem>>, vector<16x512xbf16>,
    %215 = tpu.concatenate %200, %202 in 0 : vector<8x512xf32>, vector<8x512xf32> -> vector<16x512xf32>
    %216 = arith.truncf %215 : vector<16x512xf32> to vector<16x512xbf16>
    %c16 = arith.constant 16 : index
    %c0_86 = arith.constant 0 : index
    %217 = vector.load %arg6[%c16, %c0_86] : memref<80x512xbf16, #tpu.memory_space<vmem>>, vector<16x512xbf16>
    tpu.vector_store %arg6[%c16, %c0_86], %216 {strides = array<i32>} : memref<80x512xbf16, #tpu.memory_space<vmem>>, vector<16x512xbf16>,
    %218 = tpu.concatenate %194, %204 in 0 : vector<8x512xf32>, vector<8x512xf32> -> vector<16x512xf32>
    %219 = arith.truncf %218 : vector<16x512xf32> to vector<16x512xbf16>
    %c32 = arith.constant 32 : index
    %c0_87 = arith.constant 0 : index
    %220 = vector.load %arg6[%c32, %c0_87] : memref<80x512xbf16, #tpu.memory_space<vmem>>, vector<16x512xbf16>
    tpu.vector_store %arg6[%c32, %c0_87], %219 {strides = array<i32>} : memref<80x512xbf16, #tpu.memory_space<vmem>>, vector<16x512xbf16>,
    %221 = tpu.concatenate %206, %208 in 0 : vector<8x512xf32>, vector<8x512xf32> -> vector<16x512xf32>
    %222 = arith.truncf %221 : vector<16x512xf32> to vector<16x512xbf16>
    %c48 = arith.constant 48 : index
    %c0_88 = arith.constant 0 : index
    %223 = vector.load %arg6[%c48, %c0_88] : memref<80x512xbf16, #tpu.memory_space<vmem>>, vector<16x512xbf16>
    tpu.vector_store %arg6[%c48, %c0_88], %222 {strides = array<i32>} : memref<80x512xbf16, #tpu.memory_space<vmem>>, vector<16x512xbf16>,
    %224 = tpu.concatenate %210, %211 in 0 : vector<8x512xf32>, vector<8x512xf32> -> vector<16x512xf32>
    %225 = arith.truncf %224 : vector<16x512xf32> to vector<16x512xbf16>
    %c64 = arith.constant 64 : index
    %c0_89 = arith.constant 0 : index
    %226 = vector.load %arg6[%c64, %c0_89] : memref<80x512xbf16, #tpu.memory_space<vmem>>, vector<16x512xbf16>
    tpu.vector_store %arg6[%c64, %c0_89], %225 {strides = array<i32>} : memref<80x512xbf16, #tpu.memory_space<vmem>>, vector<16x512xbf16>,
    %c0_90 = arith.constant 0 : index
    %c0_91 = arith.constant 0 : index
    %227 = vector.load %arg2[%c0_90, %c0_91] : memref<8x80xbf16, #tpu.memory_space<vmem>>, vector<8x80xbf16>
    %c0_92 = arith.constant 0 : index
    %c0_93 = arith.constant 0 : index
    %228 = vector.load %arg6[%c0_92, %c0_93] : memref<80x512xbf16, #tpu.memory_space<vmem>>, vector<80x512xbf16>
    %cst_94 = arith.constant dense<0.000000e+00> : vector<8x512xf32>
    %229 = tpu.matmul %227, %228, %cst_94 {dimension_numbers = #tpu.dot_dimension_numbers<[1], [0], [0], [1], [0, 0, 1, 1], [], []>} : vector<8x80xbf16>, vector<80x512xbf16>, vector<8x512xf32> -> vector<8x512xf32>
    %230 = vector.broadcast %186 : vector<8x1xf32> to vector<8x512xf32>
    %231 = arith.addf %229, %230 : vector<8x512xf32>
    %cst_95 = arith.constant 0.000000e+00 : f32
    %232 = vector.broadcast %cst_95 : f32 to vector<8x512xf32>
    %233 = arith.maximumf %231, %232 : vector<8x512xf32>
    %c17_i32_96 = arith.constant 17 : i32
    %234 = tpu.dynamic_rotate %233 by %c17_i32_96 dim 1 : vector<8x512xf32>, i32 -> vector<8x512xf32>
    %235 = arith.mulf %234, %28 : vector<8x512xf32>
    %c16_i32_97 = arith.constant 16 : i32
    %236 = tpu.dynamic_rotate %233 by %c16_i32_97 dim 1 : vector<8x512xf32>, i32 -> vector<8x512xf32>
    %237 = arith.mulf %236, %50 : vector<8x512xf32>
    %c15_i32_98 = arith.constant 15 : i32
    %238 = tpu.dynamic_rotate %233 by %c15_i32_98 dim 1 : vector<8x512xf32>, i32 -> vector<8x512xf32>
    %239 = arith.mulf %238, %72 : vector<8x512xf32>
    %c1_i32_99 = arith.constant 1 : i32
    %240 = tpu.dynamic_rotate %233 by %c1_i32_99 dim 1 : vector<8x512xf32>, i32 -> vector<8x512xf32>
    %241 = arith.mulf %240, %94 : vector<8x512xf32>
    %c511_i32_100 = arith.constant 511 : i32
    %242 = tpu.dynamic_rotate %233 by %c511_i32_100 dim 1 : vector<8x512xf32>, i32 -> vector<8x512xf32>
    %243 = arith.mulf %242, %116 : vector<8x512xf32>
    %c497_i32_101 = arith.constant 497 : i32
    %244 = tpu.dynamic_rotate %233 by %c497_i32_101 dim 1 : vector<8x512xf32>, i32 -> vector<8x512xf32>
    %245 = arith.mulf %244, %138 : vector<8x512xf32>
    %c496_i32_102 = arith.constant 496 : i32
    %246 = tpu.dynamic_rotate %233 by %c496_i32_102 dim 1 : vector<8x512xf32>, i32 -> vector<8x512xf32>
    %247 = arith.mulf %246, %160 : vector<8x512xf32>
    %c495_i32_103 = arith.constant 495 : i32
    %248 = tpu.dynamic_rotate %233 by %c495_i32_103 dim 1 : vector<8x512xf32>, i32 -> vector<8x512xf32>
    %249 = arith.mulf %248, %182 : vector<8x512xf32>
    %cst_104 = arith.constant 0.000000e+00 : f32
    %250 = vector.broadcast %cst_104 : f32 to vector<8x512xf32>
    %251 = tpu.concatenate %235, %237 in 0 : vector<8x512xf32>, vector<8x512xf32> -> vector<16x512xf32>
    %252 = arith.truncf %251 : vector<16x512xf32> to vector<16x512xbf16>
    %c0_105 = arith.constant 0 : index
    %c0_106 = arith.constant 0 : index
    %253 = vector.load %arg6[%c0_105, %c0_106] : memref<80x512xbf16, #tpu.memory_space<vmem>>, vector<16x512xbf16>
    tpu.vector_store %arg6[%c0_105, %c0_106], %252 {strides = array<i32>} : memref<80x512xbf16, #tpu.memory_space<vmem>>, vector<16x512xbf16>,
    %254 = tpu.concatenate %239, %241 in 0 : vector<8x512xf32>, vector<8x512xf32> -> vector<16x512xf32>
    %255 = arith.truncf %254 : vector<16x512xf32> to vector<16x512xbf16>
    %c16_107 = arith.constant 16 : index
    %c0_108 = arith.constant 0 : index
    %256 = vector.load %arg6[%c16_107, %c0_108] : memref<80x512xbf16, #tpu.memory_space<vmem>>, vector<16x512xbf16>
    tpu.vector_store %arg6[%c16_107, %c0_108], %255 {strides = array<i32>} : memref<80x512xbf16, #tpu.memory_space<vmem>>, vector<16x512xbf16>,
    %257 = tpu.concatenate %233, %243 in 0 : vector<8x512xf32>, vector<8x512xf32> -> vector<16x512xf32>
    %258 = arith.truncf %257 : vector<16x512xf32> to vector<16x512xbf16>
    %c32_109 = arith.constant 32 : index
    %c0_110 = arith.constant 0 : index
    %259 = vector.load %arg6[%c32_109, %c0_110] : memref<80x512xbf16, #tpu.memory_space<vmem>>, vector<16x512xbf16>
    tpu.vector_store %arg6[%c32_109, %c0_110], %258 {strides = array<i32>} : memref<80x512xbf16, #tpu.memory_space<vmem>>, vector<16x512xbf16>,
    %260 = tpu.concatenate %245, %247 in 0 : vector<8x512xf32>, vector<8x512xf32> -> vector<16x512xf32>
    %261 = arith.truncf %260 : vector<16x512xf32> to vector<16x512xbf16>
    %c48_111 = arith.constant 48 : index
    %c0_112 = arith.constant 0 : index
    %262 = vector.load %arg6[%c48_111, %c0_112] : memref<80x512xbf16, #tpu.memory_space<vmem>>, vector<16x512xbf16>
    tpu.vector_store %arg6[%c48_111, %c0_112], %261 {strides = array<i32>} : memref<80x512xbf16, #tpu.memory_space<vmem>>, vector<16x512xbf16>,
    %263 = tpu.concatenate %249, %250 in 0 : vector<8x512xf32>, vector<8x512xf32> -> vector<16x512xf32>
    %264 = arith.truncf %263 : vector<16x512xf32> to vector<16x512xbf16>
    %c64_113 = arith.constant 64 : index
    %c0_114 = arith.constant 0 : index
    %265 = vector.load %arg6[%c64_113, %c0_114] : memref<80x512xbf16, #tpu.memory_space<vmem>>, vector<16x512xbf16>
    tpu.vector_store %arg6[%c64_113, %c0_114], %264 {strides = array<i32>} : memref<80x512xbf16, #tpu.memory_space<vmem>>, vector<16x512xbf16>,
    %c0_115 = arith.constant 0 : index
    %c0_116 = arith.constant 0 : index
    %266 = vector.load %arg3[%c0_115, %c0_116] : memref<8x80xbf16, #tpu.memory_space<vmem>>, vector<8x80xbf16>
    %c0_117 = arith.constant 0 : index
    %c0_118 = arith.constant 0 : index
    %267 = vector.load %arg6[%c0_117, %c0_118] : memref<80x512xbf16, #tpu.memory_space<vmem>>, vector<80x512xbf16>
    %cst_119 = arith.constant dense<0.000000e+00> : vector<8x512xf32>
    %268 = tpu.matmul %266, %267, %cst_119 {dimension_numbers = #tpu.dot_dimension_numbers<[1], [0], [0], [1], [0, 0, 1, 1], [], []>} : vector<8x80xbf16>, vector<80x512xbf16>, vector<8x512xf32> -> vector<8x512xf32>
    %c17_i32_120 = arith.constant 17 : i32
    %269 = tpu.dynamic_rotate %188 by %c17_i32_120 dim 1 : vector<8x512xf32>, i32 -> vector<8x512xf32>
    %270 = arith.mulf %269, %28 : vector<8x512xf32>
    %c16_i32_121 = arith.constant 16 : i32
    %271 = tpu.dynamic_rotate %188 by %c16_i32_121 dim 1 : vector<8x512xf32>, i32 -> vector<8x512xf32>
    %272 = arith.mulf %271, %50 : vector<8x512xf32>
    %c15_i32_122 = arith.constant 15 : i32
    %273 = tpu.dynamic_rotate %188 by %c15_i32_122 dim 1 : vector<8x512xf32>, i32 -> vector<8x512xf32>
    %274 = arith.mulf %273, %72 : vector<8x512xf32>
    %c1_i32_123 = arith.constant 1 : i32
    %275 = tpu.dynamic_rotate %188 by %c1_i32_123 dim 1 : vector<8x512xf32>, i32 -> vector<8x512xf32>
    %276 = arith.mulf %275, %94 : vector<8x512xf32>
    %c511_i32_124 = arith.constant 511 : i32
    %277 = tpu.dynamic_rotate %188 by %c511_i32_124 dim 1 : vector<8x512xf32>, i32 -> vector<8x512xf32>
    %278 = arith.mulf %277, %116 : vector<8x512xf32>
    %c497_i32_125 = arith.constant 497 : i32
    %279 = tpu.dynamic_rotate %188 by %c497_i32_125 dim 1 : vector<8x512xf32>, i32 -> vector<8x512xf32>
    %280 = arith.mulf %279, %138 : vector<8x512xf32>
    %c496_i32_126 = arith.constant 496 : i32
    %281 = tpu.dynamic_rotate %188 by %c496_i32_126 dim 1 : vector<8x512xf32>, i32 -> vector<8x512xf32>
    %282 = arith.mulf %281, %160 : vector<8x512xf32>
    %c495_i32_127 = arith.constant 495 : i32
    %283 = tpu.dynamic_rotate %188 by %c495_i32_127 dim 1 : vector<8x512xf32>, i32 -> vector<8x512xf32>
    %284 = arith.mulf %283, %182 : vector<8x512xf32>
    %cst_128 = arith.constant 0.000000e+00 : f32
    %285 = vector.broadcast %cst_128 : f32 to vector<8x512xf32>
    %286 = tpu.concatenate %270, %272 in 0 : vector<8x512xf32>, vector<8x512xf32> -> vector<16x512xf32>
    %287 = arith.truncf %286 : vector<16x512xf32> to vector<16x512xbf16>
    %c0_129 = arith.constant 0 : index
    %c0_130 = arith.constant 0 : index
    %288 = vector.load %arg6[%c0_129, %c0_130] : memref<80x512xbf16, #tpu.memory_space<vmem>>, vector<16x512xbf16>
    tpu.vector_store %arg6[%c0_129, %c0_130], %287 {strides = array<i32>} : memref<80x512xbf16, #tpu.memory_space<vmem>>, vector<16x512xbf16>,
    %289 = tpu.concatenate %274, %276 in 0 : vector<8x512xf32>, vector<8x512xf32> -> vector<16x512xf32>
    %290 = arith.truncf %289 : vector<16x512xf32> to vector<16x512xbf16>
    %c16_131 = arith.constant 16 : index
    %c0_132 = arith.constant 0 : index
    %291 = vector.load %arg6[%c16_131, %c0_132] : memref<80x512xbf16, #tpu.memory_space<vmem>>, vector<16x512xbf16>
    tpu.vector_store %arg6[%c16_131, %c0_132], %290 {strides = array<i32>} : memref<80x512xbf16, #tpu.memory_space<vmem>>, vector<16x512xbf16>,
    %292 = tpu.concatenate %188, %278 in 0 : vector<8x512xf32>, vector<8x512xf32> -> vector<16x512xf32>
    %293 = arith.truncf %292 : vector<16x512xf32> to vector<16x512xbf16>
    %c32_133 = arith.constant 32 : index
    %c0_134 = arith.constant 0 : index
    %294 = vector.load %arg6[%c32_133, %c0_134] : memref<80x512xbf16, #tpu.memory_space<vmem>>, vector<16x512xbf16>
    tpu.vector_store %arg6[%c32_133, %c0_134], %293 {strides = array<i32>} : memref<80x512xbf16, #tpu.memory_space<vmem>>, vector<16x512xbf16>,
    %295 = tpu.concatenate %280, %282 in 0 : vector<8x512xf32>, vector<8x512xf32> -> vector<16x512xf32>
    %296 = arith.truncf %295 : vector<16x512xf32> to vector<16x512xbf16>
    %c48_135 = arith.constant 48 : index
    %c0_136 = arith.constant 0 : index
    %297 = vector.load %arg6[%c48_135, %c0_136] : memref<80x512xbf16, #tpu.memory_space<vmem>>, vector<16x512xbf16>
    tpu.vector_store %arg6[%c48_135, %c0_136], %296 {strides = array<i32>} : memref<80x512xbf16, #tpu.memory_space<vmem>>, vector<16x512xbf16>,
    %298 = tpu.concatenate %284, %285 in 0 : vector<8x512xf32>, vector<8x512xf32> -> vector<16x512xf32>
    %299 = arith.truncf %298 : vector<16x512xf32> to vector<16x512xbf16>
    %c64_137 = arith.constant 64 : index
    %c0_138 = arith.constant 0 : index
    %300 = vector.load %arg6[%c64_137, %c0_138] : memref<80x512xbf16, #tpu.memory_space<vmem>>, vector<16x512xbf16>
    tpu.vector_store %arg6[%c64_137, %c0_138], %299 {strides = array<i32>} : memref<80x512xbf16, #tpu.memory_space<vmem>>, vector<16x512xbf16>,
    %c0_139 = arith.constant 0 : index
    %c0_140 = arith.constant 0 : index
    %301 = vector.load %arg4[%c0_139, %c0_140] : memref<8x80xbf16, #tpu.memory_space<vmem>>, vector<8x80xbf16>
    %c0_141 = arith.constant 0 : index
    %c0_142 = arith.constant 0 : index
    %302 = vector.load %arg6[%c0_141, %c0_142] : memref<80x512xbf16, #tpu.memory_space<vmem>>, vector<80x512xbf16>
    %cst_143 = arith.constant dense<0.000000e+00> : vector<8x512xf32>
    %303 = tpu.matmul %301, %302, %cst_143 {dimension_numbers = #tpu.dot_dimension_numbers<[1], [0], [0], [1], [0, 0, 1, 1], [], []>} : vector<8x80xbf16>, vector<80x512xbf16>, vector<8x512xf32> -> vector<8x512xf32>
    %304 = tpu.iota {dimensions = array<i32: 0>} : vector<512x128xi32>
    %305 = tpu.iota {dimensions = array<i32: 1>} : vector<512x128xi32>
    %c4_i32_144 = arith.constant 4 : i32
    %306 = vector.broadcast %c4_i32_144 : i32 to vector<512x128xi32>
    %307 = arith.shrsi %304, %306 : vector<512x128xi32>
    %c15_i32_145 = arith.constant 15 : i32
    %308 = vector.broadcast %c15_i32_145 : i32 to vector<512x128xi32>
    %309 = arith.andi %307, %308 : vector<512x128xi32>
    %c15_i32_146 = arith.constant 15 : i32
    %310 = vector.broadcast %c15_i32_146 : i32 to vector<512x128xi32>
    %311 = arith.andi %304, %310 : vector<512x128xi32>
    %c8_i32 = arith.constant 8 : i32
    %312 = vector.broadcast %c8_i32 : i32 to vector<512x128xi32>
    %313 = arith.shrsi %304, %312 : vector<512x128xi32>
    %c6_i32 = arith.constant 6 : i32
    %314 = vector.broadcast %c6_i32 : i32 to vector<512x128xi32>
    %315 = arith.shli %313, %314 : vector<512x128xi32>
    %c1_i32_147 = arith.constant 1 : i32
    %316 = vector.broadcast %c1_i32_147 : i32 to vector<512x128xi32>
    %317 = arith.shrsi %309, %316 : vector<512x128xi32>
    %c3_i32 = arith.constant 3 : i32
    %318 = vector.broadcast %c3_i32 : i32 to vector<512x128xi32>
    %319 = arith.shli %317, %318 : vector<512x128xi32>
    %320 = arith.ori %315, %319 : vector<512x128xi32>
    %c1_i32_148 = arith.constant 1 : i32
    %321 = vector.broadcast %c1_i32_148 : i32 to vector<512x128xi32>
    %322 = arith.shrsi %311, %321 : vector<512x128xi32>
    %323 = arith.ori %320, %322 : vector<512x128xi32>
    %324 = arith.cmpi eq, %323, %305 : vector<512x128xi32>
    %cst_149 = arith.constant 2.500000e-01 : f32
    %cst_150 = arith.constant 0.000000e+00 : f32
    %325 = vector.broadcast %cst_149 : f32 to vector<512x128xf32>
    %326 = vector.broadcast %cst_150 : f32 to vector<512x128xf32>
    %327 = arith.select %324, %325, %326 : vector<512x128xi1>, vector<512x128xf32>
    %c0_151 = arith.constant 0 : index
    %c0_152 = arith.constant 0 : index
    %328 = vector.load %arg7[%c0_151, %c0_152] : memref<512x128xf32, #tpu.memory_space<vmem>>, vector<512x128xf32>
    tpu.vector_store %arg7[%c0_151, %c0_152], %327 {strides = array<i32>} : memref<512x128xf32, #tpu.memory_space<vmem>>, vector<512x128xf32>,
    %329 = arith.addf %268, %303 : vector<8x512xf32>
    %c0_153 = arith.constant 0 : index
    %c0_154 = arith.constant 0 : index
    %330 = vector.load %arg7[%c0_153, %c0_154] : memref<512x128xf32, #tpu.memory_space<vmem>>, vector<512x128xf32>
    %cst_155 = arith.constant dense<0.000000e+00> : vector<8x128xf32>
    %331 = tpu.matmul %329, %330, %cst_155 {dimension_numbers = #tpu.dot_dimension_numbers<[1], [0], [0], [1], [0, 0, 1, 1], [], []>} : vector<8x512xf32>, vector<512x128xf32>, vector<8x128xf32> -> vector<8x128xf32>
    %332 = vector.broadcast %187 : vector<8x1xf32> to vector<8x128xf32>
    %333 = arith.addf %331, %332 : vector<8x128xf32>
    %c0_156 = arith.constant 0 : index
    %c0_157 = arith.constant 0 : index
    %334 = vector.load %arg5[%c0_156, %c0_157] : memref<8x128xf32, #tpu.memory_space<vmem>>, vector<8x128xf32>
    tpu.vector_store %arg5[%c0_156, %c0_157], %333 {strides = array<i32>} : memref<8x128xf32, #tpu.memory_space<vmem>>, vector<8x128xf32>,
    return
  }
}

</mosaic_0001>

<bundles_post_ra>
// kernel: residual_block_down.1
= control target key start
LH: loop header
LB: loop body
LE: loop exit
PB: predicated region body
PF: predicated region fallthrough
CT: control target
= control target key end

     0   :  { %v2731_v0 = vmov 0   ;;  %v2732_v2 = vmov 1   ;;  %s2733_s28 = smov 111   ;;  %s2734_s29 = smov 112   ;;  %v4380_v23 = vlaneseq  ;;  %v2741_v31 = vmov 0.0|0.0   ;;  %s4364_s1 = inlined_call_operand.vmem [shape: f32[8,4], index: 1, kind: input, shape index: {}]   ;;  %s4365_s0 = inlined_call_operand.vmem [shape: f32[8,512], index: 0, kind: input, shape index: {}]   ;;  %s4366_s2 = inlined_call_operand.vmem [shape: bf16[8,80], index: 2, kind: input, shape index: {}]   ;;  %s4367_s4 = inlined_call_operand.vmem [shape: bf16[8,80], index: 4, kind: input, shape index: {}]   ;;  %s4368_s3 = inlined_call_operand.vmem [shape: bf16[8,80], index: 3, kind: input, shape index: {}]   ;;  %s4369_s5 = inlined_call_operand.vmem [shape: f32[8,128], index: 5, kind: output, shape index: {}]  }
   0x1   :  { %2721 = vset.pattern.permute.xlu0 %v2731_v0  ;;  %v2779_v1 = vld [vmem:[%s4364_s1] sm:$0xff]  ;;  %v2791_v5 = vld [vmem:[%s4365_s0 + $0x8] sm:$0xff]  ;;  %v2796_v6 = vld [vmem:[%s4365_s0 + $0x10] sm:$0xff]  ;;  %s2735_s30 = smov 113   ;;  %s2736_s6 = smov 127   ;;  %409 = vst [vmem:[#allocation2 + $0x90] sm:$0xff] %v2741_v31 }
   0x2   :  { %217 = vperm.xlu0 %2721, %v2779_v1   ;;  %v2786_v4 = vld [vmem:[%s4365_s0] sm:$0xff]  ;;  %v2801_v7 = vld [vmem:[%s4365_s0 + $0x18] sm:$0xff]  ;;  %s2737_s7 = smov 15   ;;  %s2738_s8 = smov 1   ;;  %v2843_v24 = vand.u32 127, %v4380_v23  ;;  %410 = vst [vmem:[#allocation2 + $0x98] sm:$0xff] %v2741_v31 }
   0x3   :  { %s2739_s9 = smov 17   ;;  %s2740_s10 = smov 16  }
   0x4   :  { %v2851_v26 = vadd.s32 384, %v2843_v24  ;;  %v2855_v28 = vadd.s32 128, %v2843_v24  ;;  %v2860_v29 = vadd.s32 256, %v2843_v24  ;;  %v26_v32 = vshra.s32 %v2843_v24, 4 }
   0x5   :  { %v34_v45 = vand.u32 15, %v2843_v24 }
   0x6   :  { %v29_v27 = vshra.s32 %v2851_v26, 4  ;;  %v27_v34 = vshra.s32 %v2855_v28, 4  ;;  %v28_v35 = vshra.s32 %v2860_v29, 4  ;;  %v37_v36 = vand.u32 15, %v2851_v26 }
   0x7   :  { %v2872_v37 = vand.u32 15, %v26_v32  ;;  %v35_v49 = vand.u32 15, %v2855_v28  ;;  %v36_v50 = vand.u32 15, %v2860_v29  ;;  %v2904_v53 = vadd.s32 1, %v34_v45 }
   0x8   :  { %v2867_v33 = vand.u32 15, %v29_v27  ;;  %v2875_v39 = vand.u32 15, %v27_v34  ;;  %v2879_v40 = vadd.s32 1, %v37_v36  ;;  %v2881_v41 = vand.u32 15, %v28_v35  ;;  %v2883_v42 = vld [vmem:[#allocation2 + $0x8c] sm:$0xf0] }
   0x9   :  { %v2885_v43 = vld [vmem:[#allocation2 + $0x90] sm:$0xf0]  ;;  %v2892_v46 = vld [vmem:[#allocation2 + $0x94] sm:$0xf0]  ;;  %v2894_v47 = vld [vmem:[#allocation2 + $0x98] sm:$0xf0] }
   0xa   :  { %2722 = vset.pattern.permute.xlu0 %v2732_v2  ;;  %v161_v38 = vadd.s32 1, %v2867_v33  ;;  %760 = vst [vmem:[#allocation2 + $0x90] sm:$0xff] %v2741_v31  ;;  %v158_v48 = vadd.s32 1, %v2872_v37  ;;  %v159_v51 = vadd.s32 1, %v2875_v39  ;;  %v160_v52 = vadd.s32 1, %v2881_v41 }
   0xb   :  { %225 = vperm.xlu0 %2722, %v2779_v1   ;;  %761 = vst [vmem:[#allocation2 + $0x98] sm:$0xff] %v2741_v31  ;;  %vm113_vm2 = vcmp.lt.s32.totalorder %v2879_v40, 16  ;;  %v2908_v54 = vadd.s32 1, %v35_v49  ;;  %v2914_v56 = vadd.s32 1, %v36_v50  ;;  %vm4377_vm11 = vcmp.lt.s32.totalorder %v2904_v53, 16 }
   0xc   :  { %vm165_vm0 = vcmp.ge.s32.totalorder %v161_v38, 0  ;;  %vm169_vm1 = vcmp.lt.s32.totalorder %v161_v38, 16  ;;  %vm162_vm3 = vcmp.ge.s32.totalorder %v158_v48, 0  ;;  %vm166_vm4 = vcmp.lt.s32.totalorder %v158_v48, 16 }
   0xd   :  { %vm2910_vm5 = vmand %vm165_vm0, %vm169_vm1  ;;  %vm163_vm6 = vcmp.ge.s32.totalorder %v159_v51, 0  ;;  %vm167_vm7 = vcmp.lt.s32.totalorder %v159_v51, 16  ;;  %vm164_vm9 = vcmp.ge.s32.totalorder %v160_v52, 0  ;;  %vm168_vm10 = vcmp.lt.s32.totalorder %v160_v52, 16 }
   0xe   :  { %vm2922_vm8 = vmand %vm2910_vm5, %vm113_vm2  ;;  %vm4376_vm13 = vcmp.lt.s32.totalorder %v2908_v54, 16  ;;  %vm4375_vm15 = vcmp.lt.s32.totalorder %v2914_v56, 16 }
   0xf   :  { %vm2939_vm12 = vmand %vm162_vm3, %vm166_vm4  ;;  %vm4370_vm4 = vcmp.lt.s32.totalorder %v2843_v24, 111 }
  0x10   :  { %vm2950_vm14 = vmand %vm163_vm6, %vm167_vm7 }
  0x11   :  { %v2926_v58 = vld [vmem:[#allocation2 + $0x90] sm:$0xf0]  ;;  %v2928_v59 = vld [vmem:[#allocation2 + $0x8c] sm:$0xf0]  ;;  %vm2957_vm0 = vmand %vm164_vm9, %vm168_vm10  ;;  %vm4374_vm10 = vcmp.lt.s32.totalorder %v2843_v24, 113 }
  0x12   :  { %4427 = vst [vmem:[#allocation4_spill] sm:$0xff] %v2926_v58  ;;  %v2943_v63 = vld [vmem:[#allocation2 + $0x98] sm:$0xf0]  ;;  %v2945_v0 = vld [vmem:[#allocation2 + $0x94] sm:$0xf0]  ;;  %vm202_vm1 = vmand %vm2939_vm12, %vm4377_vm11 }
  0x13   :  { %4428 = vst [vmem:[#allocation5_spill] sm:$0xff] %v2928_v59  ;;  %vm203_vm3 = vmand %vm2950_vm14, %vm4376_vm13 }
  0x14   :  { %947 = vst [vmem:[#allocation2 + $0x90] sm:$0xff] %v2741_v31  ;;  %vm204_vm6 = vmand %vm2957_vm0, %vm4375_vm15 }
  0x15   :  { %4431 = vst [vmem:[#allocation6_spill] sm:$0xff] %v2943_v63 }
  0x16   :  { %4432 = vst [vmem:[#allocation7_spill] sm:$0xff] %v2945_v0 }
  0x17   :  { %948 = vst [vmem:[#allocation2 + $0x98] sm:$0xff] %v2741_v31 }
  0x74   :  { %v218_v3 = vpop.permute.xlu0 %217 }
  0x75   :  { %v220_v8 = vmul.f32 %v218_v3, %v2786_v4  ;;  %v221_v9 = vmul.f32 %v218_v3, %v2791_v5  ;;  %v222_v10 = vmul.f32 %v218_v3, %v2796_v6  ;;  %v223_v11 = vmul.f32 %v218_v3, %v2801_v7 }
  0x7d   :  { %v226_v12 = vpop.permute.xlu0 %225 }
  0x7e   :  { %v228_v13 = vadd.f32 %v226_v12, %v220_v8  ;;  %v229_v14 = vadd.f32 %v226_v12, %v221_v9  ;;  %v230_v15 = vadd.f32 %v226_v12, %v222_v10  ;;  %v231_v16 = vadd.f32 %v226_v12, %v223_v11 }
  0x7f   :  { %v2969_v9 = vadd.s32 4294967295, %v37_v36  ;;  %v2976_v10 = vadd.s32 4294967295, %v36_v50  ;;  %v2742_v11 = vmov 0.0  }
  0x80   :  { %v232_v17 = vmax.f32 %v228_v13, 0.0  ;;  %v233_v18 = vmax.f32 %v229_v14, 0.0  ;;  %v234_v19 = vmax.f32 %v230_v15, 0.0  ;;  %v235_v20 = vmax.f32 %v231_v16, 0.0 }
  0x81   :  { %v2981_v12 = vsel %vm202_vm1, 1.0, %v2742_v11  ;;  %v2988_v13 = vsel %vm2922_vm8, 1.0, %v2742_v11  ;;  %vm4372_vm7 = vcmp.ge.s32.totalorder %v2969_v9, 0  ;;  %vm4373_vm8 = vcmp.ge.s32.totalorder %v2976_v10, 0 }
  0x82   :  { %361 = vrot.lane.b32.xlu2 %v235_v20, %s2733_s28  ;;  %338 = vrot.lane.b32.xlu0 %v232_v17, %s2734_s29  ;;  %v389_v21 = vpack.c.bf16 %v235_v20, %v234_v19  ;;  %v388_v22 = vpack.c.bf16 %v233_v18, %v232_v17  ;;  %vm177_vm9 = vmand %vm2910_vm5, %vm4372_vm7  ;;  %v3048_v57 = vsel %vm2910_vm5, 1.0, %v2742_v11  ;;  %v3061_v55 = vsel %vm2950_vm14, 1.0, %v2742_v11 }
  0x83   :  { %355 = vrot.lane.b32.xlu1 %v232_v17, %s2733_s28  ;;  %vm176_vm1 = vmand %vm2957_vm0, %vm4373_vm8  ;;  %v3026_v32 = vsel %vm177_vm9, 1.0, %v2742_v11  ;;  %vm128_vm9 = vcmp.lt.s32.totalorder %v2881_v41, 16  ;;  %vm125_vm5 = vcmp.ge.s32.totalorder %v2867_v33, 0  ;;  %vm4378_vm7 = vcmp.lt.s32.totalorder %v2843_v24, 127 }
  0x84   :  { %393 = vst [vmem:[#allocation2 + $0x48] sm:$0xff] %v389_v21  ;;  %v3035_v38 = vsel %vm176_vm1, 1.0, %v2742_v11  ;;  %vm129_vm1 = vcmp.lt.s32.totalorder %v2867_v33, 16 }
  0x85   :  { %392 = vst [vmem:[#allocation2 + $0x40] sm:$0xff] %v388_v22 }
  0x8a   :  { %357 = vrot.lane.b32.xlu0 %v233_v18, %s2733_s28  ;;  %321 = vrot.lane.b32.xlu2 %v232_v17, %s2735_s30 }
  0x8b   :  { %359 = vrot.lane.b32.xlu1 %v234_v19, %s2733_s28 }
  0x8c   :  { %v2590_v23 = vld [vmem:[#allocation2 + $0x44] sm:$0xf] }
  0x92   :  { %310 = vrot.lane.b32.xlu0 %v235_v20, %s2736_s6  ;;  %327 = vrot.lane.b32.xlu2 %v235_v20, %s2735_s30 }
  0x93   :  { %325 = vrot.lane.b32.xlu1 %v234_v19, %s2735_s30 }
  0x9a   :  { %272 = vrot.lane.b32.xlu0 %v233_v18, %s2737_s7  ;;  %344 = vrot.lane.b32.xlu2 %v235_v20, %s2734_s29 }
  0x9b   :  { %342 = vrot.lane.b32.xlu1 %v234_v19, %s2734_s29 }
  0xa2   :  { %289 = vrot.lane.b32.xlu0 %v233_v18, %s2738_s8  ;;  %308 = vrot.lane.b32.xlu2 %v234_v19, %s2736_s6 }
  0xa3   :  { %304 = vrot.lane.b32.xlu1 %v232_v17, %s2736_s6 }
  0xaa   :  { %306 = vrot.lane.b32.xlu0 %v233_v18, %s2736_s6  ;;  %340 = vrot.lane.b32.xlu2 %v233_v18, %s2734_s29 }
  0xab   :  { %323 = vrot.lane.b32.xlu1 %v233_v18, %s2735_s30 }
  0xb2   :  { %242 = vrot.lane.b32.xlu0 %v235_v20, %s2739_s9  ;;  %276 = vrot.lane.b32.xlu2 %v235_v20, %s2737_s7 }
  0xb3   :  { %274 = vrot.lane.b32.xlu1 %v234_v19, %s2737_s7 }
  0xba   :  { %259 = vrot.lane.b32.xlu0 %v235_v20, %s2740_s10  ;;  %293 = vrot.lane.b32.xlu2 %v235_v20, %s2738_s8 }
  0xbb   :  { %291 = vrot.lane.b32.xlu1 %v234_v19, %s2738_s8 }
  0xc2   :  { %236 = vrot.lane.b32.xlu0 %v232_v17, %s2739_s9  ;;  %240 = vrot.lane.b32.xlu2 %v234_v19, %s2739_s9 }
  0xc3   :  { %238 = vrot.lane.b32.xlu1 %v233_v18, %s2739_s9 }
  0xca   :  { %257 = vrot.lane.b32.xlu2 %v234_v19, %s2740_s10  ;;  %901 = vrot.lane.b32.xlu0 %v2801_v7, %s2733_s28 }
  0xcb   :  { %255 = vrot.lane.b32.xlu1 %v233_v18, %s2740_s10  ;;  %v2999_v18 = vsel %vm204_vm6, 1.0, %v2742_v11  ;;  %vm124_vm6 = vcmp.ge.s32.totalorder %v2881_v41, 0 }
  0xd2   :  { %287 = vrot.lane.b32.xlu2 %v232_v17, %s2738_s8  ;;  %863 = vrot.lane.b32.xlu0 %v2786_v4, %s2735_s30 }
  0xd3   :  { %270 = vrot.lane.b32.xlu1 %v232_v17, %s2737_s7 }
  0xda   :  { %879 = vrot.lane.b32.xlu0 %v2786_v4, %s2734_s29 }
  0xdb   :  { %253 = vrot.lane.b32.xlu1 %v232_v17, %s2740_s10  ;;  %v2996_v17 = vsel %vm203_vm3, 1.0, %v2742_v11  ;;  %vm4371_vm3 = vcmp.lt.s32.totalorder %v2843_v24, 112 }
  0xdc   :  { %v2848_v25 = vpop.permute.xlu2 %361 }
  0xe2   :  { %853 = vrot.lane.b32.xlu0 %v2801_v7, %s2736_s6 }
  0xe3   :  { %895 = vrot.lane.b32.xlu1 %v2786_v4, %s2733_s28 }
  0xe4   :  { %v2864_v30 = vpop.permute.xlu2 %321 }
  0xea   :  { %821 = vrot.lane.b32.xlu0 %v2801_v7, %s2737_s7 }
  0xeb   :  { %867 = vrot.lane.b32.xlu1 %v2796_v6, %s2735_s30 }
  0xec   :  { %v2889_v44 = vpop.permute.xlu2 %327 }
  0xed   :  { %v333_v34 = vsel %vm4374_vm10, %v2889_v44, %v2864_v30 }
  0xee   :  { %v337_v51 = vmul.f32 %v333_v34, %v3026_v32 }
  0xf2   :  { %837 = vrot.lane.b32.xlu0 %v2801_v7, %s2738_s8 }
  0xf3   :  { %883 = vrot.lane.b32.xlu1 %v2796_v6, %s2734_s29 }
  0xf4   :  { %v2932_v60 = vpop.permute.xlu0 %338  ;;  %v2934_v61 = vpop.permute.xlu2 %344 }
  0xf5   :  { %v356_v2 = vpop.permute.xlu1 %355 }
  0xf6   :  { %v367_v14 = vsel %vm4370_vm4, %v2848_v25, %v356_v2 }
  0xf7   :  { %v371_v26 = vmul.f32 %v367_v14, %v2988_v13 }
  0xfa   :  { %787 = vrot.lane.b32.xlu0 %v2796_v6, %s2739_s9 }
  0xfb   :  { %847 = vrot.lane.b32.xlu1 %v2786_v4, %s2736_s6 }
  0xfc   :  { %v358_v15 = vpop.permute.xlu0 %357  ;;  %v2993_v16 = vpop.permute.xlu2 %308 }
  0xfd   :  { %v366_v4 = vsel %vm4370_vm4, %v356_v2, %v358_v15  ;;  %v360_v19 = vpop.permute.xlu1 %359  ;;  %v3056_v2 = vsel %vm2939_vm12, 1.0, %v2742_v11 }
  0xfe   :  { %v368_v20 = vmul.f32 %v366_v4, %v2981_v12  ;;  %v364_v21 = vsel %vm4370_vm4, %v360_v19, %v2848_v25  ;;  %v365_v22 = vsel %vm4370_vm4, %v358_v15, %v360_v19  ;;  %v350_v4 = vsel %vm4371_vm3, %v2934_v61, %v2932_v60  ;;  %vm3091_vm4 = vmand %vm124_vm6, %vm128_vm9 }
  0xff   :  { %v369_v27 = vmul.f32 %v365_v22, %v2996_v17  ;;  %v370_v29 = vmul.f32 %v364_v21, %v2999_v18  ;;  %vm122_vm6 = vcmp.ge.s32.totalorder %v2872_v37, 0  ;;  %vm126_vm9 = vcmp.lt.s32.totalorder %v2872_v37, 16 }
 0x101   :  { %v404_v31 = vpack.c.bf16 %v369_v27, %v368_v20  ;;  %v405_v25 = vpack.c.bf16 %v371_v26, %v370_v29 }
 0x103   :  { %407 = vst [vmem:[#allocation2 + $0x80] sm:$0xff] %v404_v31  ;;  %897 = vrot.lane.b32.xlu1 %v2791_v5, %s2733_s28 }
 0x104   :  { %408 = vst [vmem:[#allocation2 + $0x88] sm:$0xff] %v405_v25  ;;  %v3032_v35 = vpop.permute.xlu0 %310  ;;  %v341_v36 = vpop.permute.xlu2 %340 }
 0x105   :  { %v3037_v48 = vpop.permute.xlu1 %325  ;;  %v349_v26 = vsel %vm4371_vm3, %v2932_v60, %v341_v36  ;;  %v313_v28 = vsel %vm4378_vm7, %v2993_v16, %v3032_v35 }
 0x106   :  { %v330_v50 = vsel %vm4374_vm10, %v3037_v48, %v2889_v44  ;;  %vm3125_vm10 = vmand %vm122_vm6, %vm126_vm9 }
 0x107   :  { %v336_v52 = vmul.f32 %v330_v50, %v3035_v38  ;;  %v351_v50 = vmul.f32 %v349_v26, %v3056_v2 }
 0x109   :  { %v397_v44 = vpack.c.bf16 %v337_v51, %v336_v52 }
 0x10a   :  { %v2396_v14 = vld [vmem:[#allocation2 + $0x80] sm:$0xf]  ;;  %v2598_v15 = vld [vmem:[#allocation2 + $0x84] sm:$0xf] }
 0x10b   :  { %401 = vst [vmem:[#allocation2 + $0x68] sm:$0xff] %v397_v44  ;;  %v2397_v19 = vor.u32 %v2883_v42, %v2396_v14  ;;  %v2401_v20 = vor.u32 %v2598_v15, %v2885_v43  ;;  %v2404_v21 = vld [vmem:[#allocation2 + $0x88] sm:$0xf]  ;;  %v2599_v22 = vld [vmem:[#allocation2 + $0x8c] sm:$0xf]  ;;  %817 = vrot.lane.b32.xlu1 %v2791_v5, %s2737_s7  ;;  %v3085_v43 = vsel %vm2957_vm0, 1.0, %v2742_v11  ;;  %vm3105_vm0 = vmand %vm125_vm5, %vm129_vm1 }
 0x10c   :  { %v3076_v27 = vpop.permute.xlu0 %272  ;;  %v3078_v29 = vpop.permute.xlu2 %276  ;;  %v2405_v31 = vor.u32 %v2892_v46, %v2404_v21  ;;  %v2409_v42 = vor.u32 %v2599_v22, %v2894_v47  ;;  %v354_v46 = vmul.f32 %v350_v4, %v3048_v57  ;;  %vm123_vm5 = vcmp.ge.s32.totalorder %v2875_v39, 0  ;;  %vm153_vm8 = vmand %vm3105_vm0, %vm113_vm2 }
 0x10d   :  { %543 = vmatpush.bf16.msra.mxu0 %v2397_v19  ;;  %556 = vmatpush.bf16.msra.mxu1 %v2401_v20  ;;  %v343_v60 = vpop.permute.xlu1 %342  ;;  %vm127_vm1 = vcmp.lt.s32.totalorder %v2875_v39, 16  ;;  %v3131_v14 = vadd.s32 4294967295, %v35_v49  ;;  %v3139_v4 = vadd.s32 4294967295, %v34_v45  ;;  %v3155_v21 = vsel %vm153_vm8, 1.0, %v2742_v11 }
 0x10e   :  { %569 = vmatpush.bf16.msra.mxu2 %v2405_v31  ;;  %582 = vmatpush.bf16.msra.mxu3 %v2409_v42  ;;  %v347_v47 = vsel %vm4371_vm3, %v343_v60, %v2934_v61  ;;  %v348_v8 = vsel %vm4371_vm3, %v341_v36, %v343_v60  ;;  %vm152_vm3 = vmand %vm3091_vm4, %vm4375_vm15  ;;  %v41_v22 = vadd.s32 4294967295, %v2867_v33  ;;  %v40_v31 = vadd.s32 4294967295, %v2881_v41 }
 0x10f   :  { %v352_v51 = vmul.f32 %v348_v8, %v3061_v55  ;;  %v353_v52 = vmul.f32 %v347_v47, %v3085_v43  ;;  %vm3133_vm15 = vmand %vm123_vm5, %vm127_vm1  ;;  %v3144_v19 = vsel %vm152_vm3, 1.0, %v2742_v11  ;;  %vm59_vm8 = vcmp.ge.s32.totalorder %v3131_v14, 0 }
 0x110   :  { %vm150_vm3 = vmand %vm3125_vm10, %vm4377_vm11  ;;  %v319_v42 = vmul.f32 %v313_v28, %v3144_v19  ;;  %vm58_vm9 = vcmp.ge.s32.totalorder %v3139_v4, 0  ;;  %vm45_vm1 = vcmp.ge.s32.totalorder %v41_v22, 0  ;;  %vm48_vm11 = vcmp.lt.s32.totalorder %v40_v31, 16 }
 0x111   :  { %v398_v61 = vpack.c.bf16 %v352_v51, %v351_v50  ;;  %v399_v36 = vpack.c.bf16 %v354_v46, %v353_v52  ;;  %vm151_vm6 = vmand %vm3133_vm15, %vm4376_vm13  ;;  %v3175_v46 = vsel %vm150_vm3, 1.0, %v2742_v11  ;;  %vm44_vm13 = vcmp.ge.s32.totalorder %v40_v31, 0 }
 0x112   :  { %vm3184_vm5 = vmand %vm2950_vm14, %vm59_vm8  ;;  %v2388_v41 = vld [vmem:[#allocation2 + $0x68] sm:$0xf]  ;;  %v2595_v8 = vld [vmem:[#allocation2 + $0x6c] sm:$0xf]  ;;  %vm4449_vm14 = vcmp.lt.s32.totalorder %v2843_v24, 113 }
 0x113   :  { %402 = vst [vmem:[#allocation2 + $0x70] sm:$0xff] %v398_v61  ;;  %833 = vrot.lane.b32.xlu1 %v2791_v5, %s2738_s8  ;;  %vm174_vm3 = vmand %vm2939_vm12, %vm58_vm9  ;;  %v3199_v28 = vsel %vm3184_vm5, 1.0, %v2742_v11 }
 0x114   :  { %403 = vst [vmem:[#allocation2 + $0x78] sm:$0xff] %v399_v36  ;;  %v3150_v49 = vpop.permute.xlu0 %289  ;;  %v3152_v20 = vpop.permute.xlu2 %293  ;;  %vm3211_vm12 = vmand %vm44_vm13, %vm48_vm11  ;;  %vm4453_vm13 = vcmp.lt.s32.totalorder %v2914_v56, 16 }
 0x115   :  { %v305_v45 = vpop.permute.xlu1 %304  ;;  %vm4452_vm11 = vmmov %vm4449_vm14 }
 0x116   :  { %v316_v26 = vsel %vm4378_vm7, %v3032_v35, %v305_v45  ;;  %v3178_v35 = vsel %vm151_vm6, 1.0, %v2742_v11  ;;  %vm49_vm6 = vcmp.lt.s32.totalorder %v41_v22, 16  ;;  %v2591_v22 = vld [vmem:[#allocation2 + $0x4c] sm:$0xf] }
 0x117   :  { %v320_v60 = vmul.f32 %v316_v26, %v3155_v21  ;;  %vm3222_vm5 = vmand %vm45_vm1, %vm49_vm6  ;;  %vm4379_vm6 = vcmp.lt.s32.totalorder %v2843_v24, 15 }
 0x118   :  { %vm117_vm1 = vmand %vm3222_vm5, %vm113_vm2 }
 0x119   :  { %v391_v33 = vpack.c.bf16 %v320_v60, %v319_v42  ;;  %v3207_v42 = vsel %vm174_vm3, 1.0, %v2742_v11  ;;  %vm116_vm3 = vmand %vm3211_vm12, %vm4453_vm13  ;;  %vm4457_vm13 = vcmp.ge.s32.totalorder %v2976_v10, 0 }
 0x11a   :  { %v3247_v40 = vsel %vm116_vm3, 1.0, %v2742_v11  ;;  %vm134_vm2 = vmand %vm3125_vm10, %vm58_vm9  ;;  %v2596_v44 = vld [vmem:[#allocation2 + $0x6c] sm:$0xf0] }
 0x11b   :  { %395 = vst [vmem:[#allocation2 + $0x58] sm:$0xff] %v391_v33  ;;  %v2597_v50 = vld [vmem:[#allocation2 + $0x74] sm:$0xf0]  ;;  %v2390_v51 = vld [vmem:[#allocation2 + $0x78] sm:$0xf0]  ;;  %865 = vrot.lane.b32.xlu1 %v2791_v5, %s2735_s30  ;;  %vm3278_vm10 = vmand %vm3091_vm4, %vm4457_vm13  ;;  %v2743_v33 = vmov 2  }
 0x11c   :  { %v307_v3 = vpop.permute.xlu0 %306  ;;  %v3194_v52 = vpop.permute.xlu2 %240  ;;  %v2389_v61 = vor.u32 %v2597_v50, %v2388_v41  ;;  %v2393_v36 = vor.u32 %v2595_v8, %v2390_v51  ;;  %4454 = vst [vmem:[#allocation8_spill] sm:$0xff] %v3247_v40  ;;  %2723 = vset.pattern.permute.xlu2 %v2743_v33 }
 0x11d   :  { %v314_v62 = vsel %vm4378_vm7, %v307_v3, %v2993_v16  ;;  %v315_v26 = vsel %vm4378_vm7, %v305_v45, %v307_v3  ;;  %v324_v60 = vpop.permute.xlu1 %323  ;;  %433 = vperm.xlu2 %2723, %v2779_v1  }
 0x11e   :  { %v317_v47 = vmul.f32 %v315_v26, %v3175_v46  ;;  %v318_v41 = vmul.f32 %v314_v62, %v3178_v35  ;;  %570 = vmatpush.bf16.msra.mxu2 %v2389_v61  ;;  %583 = vmatpush.bf16.msra.mxu3 %v2393_v36  ;;  %v331_v16 = vsel %vm4449_vm14, %v324_v60, %v3037_v48  ;;  %v2372_v48 = vld [vmem:[#allocation2 + $0x48] sm:$0xf]  ;;  %vm135_vm14 = vmand %vm3133_vm15, %vm59_vm8  ;;  %vm4460_vm15 = vcmp.ge.s32.totalorder %v2969_v9, 0 }
 0x11f   :  { %v332_v31 = vsel %vm4452_vm11, %v2864_v30, %v324_v60  ;;  %v335_v8 = vmul.f32 %v331_v16, %v3199_v28  ;;  %v3250_v60 = vsel %vm117_vm1, 1.0, %v2742_v11  ;;  %vm295_vm11 = vcmp.lt.s32.totalorder %v2843_v24, 1  ;;  %vm3286_vm7 = vmand %vm3105_vm0, %vm4460_vm15 }
 0x120   :  { %v390_v50 = vpack.c.bf16 %v318_v41, %v317_v47  ;;  %v334_v51 = vmul.f32 %v332_v31, %v3207_v42  ;;  %4455 = vst [vmem:[#allocation9_spill] sm:$0xff] %v3250_v60  ;;  %v38_v41 = vadd.s32 4294967295, %v2872_v37  ;;  %v3291_v25 = vsel %vm135_vm14, 1.0, %v2742_v11  ;;  %vm4470_vm14 = vmmov %vm4460_vm15 }
 0x121   :  { %4463 = vst [vmem:[#allocation11_spill] sm:$0xff] %v3291_v25  ;;  %vm3327_vm13 = vmand %vm3222_vm5, %vm4470_vm14 }
 0x122   :  { %394 = vst [vmem:[#allocation2 + $0x50] sm:$0xff] %v390_v50  ;;  %v396_v3 = vpack.c.bf16 %v335_v8, %v334_v51  ;;  %v2593_v30 = vld [vmem:[#allocation2 + $0x54] sm:$0xf0]  ;;  %v2374_v61 = vld [vmem:[#allocation2 + $0x58] sm:$0xf0]  ;;  %v39_v8 = vadd.s32 4294967295, %v2875_v39 }
 0x123   :  { %v2373_v36 = vor.u32 %v2593_v30, %v2372_v48  ;;  %v2377_v62 = vor.u32 %v2591_v22, %v2374_v61  ;;  %789 = vrot.lane.b32.xlu1 %v2801_v7, %s2739_s9  ;;  %v3272_v48 = vsel %vm134_vm2, 1.0, %v2742_v11  ;;  %vm42_vm3 = vcmp.ge.s32.totalorder %v38_v41, 0  ;;  %v2382_v22 = vld [vmem:[#allocation2 + $0x70] sm:$0xf0] }
 0x124   :  { %400 = vst [vmem:[#allocation2 + $0x60] sm:$0xff] %v396_v3  ;;  %v3242_v56 = vpop.permute.xlu0 %242  ;;  %v3244_v26 = vpop.permute.xlu2 %257  ;;  %vm46_vm1 = vcmp.lt.s32.totalorder %v38_v41, 16  ;;  %vm43_vm2 = vcmp.ge.s32.totalorder %v39_v8, 0  ;;  %v3315_v41 = vsel %vm3286_vm7, 1.0, %v2742_v11 }
 0x125   :  { %571 = vmatpush.bf16.msra.mxu2 %v2373_v36  ;;  %584 = vmatpush.bf16.msra.mxu3 %v2377_v62  ;;  %v275_v47 = vpop.permute.xlu1 %274  ;;  %4456 = vst [vmem:[#allocation10_spill] sm:$0xff] %v3272_v48  ;;  %vm3297_vm4 = vmand %vm42_vm3, %vm46_vm1  ;;  %vm4473_vm3 = vcmp.ge.s32.totalorder %v2976_v10, 0 }
 0x126   :  { %v279_v16 = vsel %vm4379_vm6, %v275_v47, %v3078_v29  ;;  %v280_v31 = vsel %vm4379_vm6, %v3076_v27, %v275_v47  ;;  %vm47_vm6 = vcmp.lt.s32.totalorder %v39_v8, 16  ;;  %4467 = vst [vmem:[#allocation13_spill] sm:$0xff] %v3315_v41  ;;  %vm62_vm7 = vmand %vm3297_vm4, %vm58_vm9  ;;  %vm4478_vm9 = vcmp.lt.s32.totalorder %v2904_v53, 16  ;;  %899 = vrot.lane.b32.xlu2 %v2796_v6, %s2733_s28 }
 0x127   :  { %v285_v50 = vmul.f32 %v280_v31, %v3247_v40  ;;  %v286_v51 = vmul.f32 %v279_v16, %v3250_v60  ;;  %vm3319_vm0 = vmand %vm43_vm2, %vm47_vm6  ;;  %vm4482_vm2 = vcmp.lt.s32.totalorder %v2843_v24, 15 }
 0x128   :  { %vm63_vm6 = vmand %vm3319_vm0, %vm59_vm8  ;;  %vm261_vm8 = vcmp.lt.s32.totalorder %v2843_v24, 16 }
 0x129   :  { %v381_v37 = vpack.c.bf16 %v286_v51, %v285_v50  ;;  %v2592_v16 = vld [vmem:[#allocation2 + $0x4c] sm:$0xf0]  ;;  %v3310_v51 = vsel %vm3278_vm10, 1.0, %v2742_v11  ;;  %vm244_vm10 = vcmp.lt.s32.totalorder %v2843_v24, 17  ;;  %vm64_vm1 = vmand %vm3211_vm12, %vm4473_vm3 }
 0x12a   :  { %4466 = vst [vmem:[#allocation12_spill] sm:$0xff] %v3310_v51  ;;  %v245_v10 = vsel %vm244_vm10, %v3194_v52, %v3242_v56  ;;  %vm4483_vm14 = vmmov %vm4482_vm2 }
 0x12b   :  { %385 = vst [vmem:[#allocation2 + $0x28] sm:$0xff] %v381_v37  ;;  %v2380_v3 = vld [vmem:[#allocation2 + $0x60] sm:$0xf]  ;;  %v2594_v30 = vld [vmem:[#allocation2 + $0x64] sm:$0xf] }
 0x12c   :  { %v3293_v61 = vpop.permute.xlu0 %259  ;;  %v288_v36 = vpop.permute.xlu2 %287  ;;  %v2381_v62 = vor.u32 %v2596_v44, %v2380_v3  ;;  %v2385_v47 = vor.u32 %v2594_v30, %v2382_v22  ;;  %v2366_v44 = vld [vmem:[#allocation2 + $0x50] sm:$0xf0]  ;;  %v2364_v30 = vld [vmem:[#allocation2 + $0x40] sm:$0xf] }
 0x12d   :  { %v298_v31 = vsel %vm295_vm11, %v288_v36, %v3150_v49  ;;  %v299_v50 = vsel %vm295_vm11, %v3152_v20, %v288_v36  ;;  %v292_v37 = vpop.permute.xlu1 %291  ;;  %v2365_v36 = vor.u32 %v2592_v16, %v2364_v30  ;;  %v3370_v16 = vsel %vm64_vm1, 1.0, %v2742_v11 }
 0x12e   :  { %v300_v15 = vmul.f32 %v299_v50, %v3272_v48  ;;  %v301_v3 = vmul.f32 %v298_v31, %v3291_v25  ;;  %544 = vmatpush.bf16.msra.mxu0 %v2381_v62  ;;  %557 = vmatpush.bf16.msra.mxu1 %v2385_v47  ;;  %v296_v8 = vsel %vm295_vm11, %v292_v37, %v3152_v20  ;;  %v3367_v20 = vsel %vm63_vm6, 1.0, %v2742_v11 }
 0x12f   :  { %v297_v9 = vsel %vm295_vm11, %v3150_v49, %v292_v37  ;;  %v303_v47 = vmul.f32 %v296_v8, %v3315_v41  ;;  %v2369_v31 = vor.u32 %v2590_v23, %v2366_v44  ;;  %v3355_v49 = vsel %vm62_vm7, 1.0, %v2742_v11  ;;  %4475 = vst [vmem:[#allocation15_spill] sm:$0xff] %v3367_v20  ;;  %869 = vrot.lane.b32.xlu2 %v2801_v7, %s2735_s30 }
 0x130   :  { %v382_v50 = vpack.c.bf16 %v301_v3, %v300_v15  ;;  %v302_v62 = vmul.f32 %v297_v9, %v3310_v51  ;;  %4474 = vst [vmem:[#allocation14_spill] sm:$0xff] %v3355_v49  ;;  %v3360_v23 = vsel %vm3327_vm13, 1.0, %v2742_v11  ;;  %vm536_vm13 = vcmask 654336  }
 0x131   :  { %v252_v30 = vmul.f32 %v245_v10, %v3360_v23  ;;  %vm4486_vm7 = vcmp.lt.s32.totalorder %v2843_v24, 111 }
 0x132   :  { %386 = vst [vmem:[#allocation2 + $0x30] sm:$0xff] %v382_v50  ;;  %v383_v4 = vpack.c.bf16 %v303_v47, %v302_v62  ;;  %545 = vmatpush.bf16.msra.mxu0 %v2365_v36  ;;  %558 = vmatpush.bf16.msra.mxu1 %v2369_v31  ;;  %v2356_v50 = vld [vmem:[#allocation2 + $0x28] sm:$0xf]  ;;  %v2587_v62 = vld [vmem:[#allocation2 + $0x2c] sm:$0xf]  ;;  %v3388_v47 = vsel %vm3222_vm5, 1.0, %v2742_v11  ;;  %vm114_vm5 = vmand %vm3297_vm4, %vm4478_vm9 }
 0x133   :  { %4476 = vst [vmem:[#allocation16_spill] sm:$0xff] %v3388_v47  ;;  %vm4487_vm6 = vmmov %vm4486_vm7 }
 0x134   :  { %387 = vst [vmem:[#allocation2 + $0x38] sm:$0xff] %v383_v4  ;;  %v237_v14 = vpop.permute.xlu0 %236  ;;  %v262_v4 = vsel %vm261_vm8, %v3244_v26, %v3293_v61  ;;  %vm4490_vm3 = vmmov %vm4487_vm6 }
 0x135   :  { %v248_v37 = vsel %vm244_vm10, %v3242_v56, %v237_v14  ;;  %v239_v44 = vpop.permute.xlu1 %238  ;;  %vm4491_vm1 = vmmov %vm4490_vm3 }
 0x136   :  { %v249_v39 = vmul.f32 %v248_v37, %v3355_v49  ;;  %v246_v15 = vsel %vm244_vm10, %v239_v44, %v3194_v52  ;;  %v247_v3 = vsel %vm244_vm10, %v237_v14, %v239_v44  ;;  %v3397_v37 = vsel %vm3211_vm12, 1.0, %v2742_v11 }
 0x137   :  { %v250_v8 = vmul.f32 %v247_v3, %v3367_v20  ;;  %v251_v9 = vmul.f32 %v246_v15, %v3370_v16  ;;  %4477 = vst [vmem:[#allocation17_spill] sm:$0xff] %v3397_v37  ;;  %vm4479_vm12 = vcmp.lt.s32.totalorder %v2908_v54, 16  ;;  %885 = vrot.lane.b32.xlu2 %v2801_v7, %s2734_s29 }
 0x138   :  { %vm115_vm15 = vmand %vm3319_vm0, %vm4479_vm12 }
 0x139   :  { %v372_v36 = vpack.c.bf16 %v250_v8, %v249_v39  ;;  %v373_v56 = vpack.c.bf16 %v252_v30, %v251_v9  ;;  %v269_v39 = vmul.f32 %v262_v4, %v3388_v47  ;;  %v3417_v30 = vsel %vm115_vm15, 1.0, %v2742_v11 }
 0x13a   :  { %4481 = vst [vmem:[#allocation19_spill] sm:$0xff] %v3417_v30 }
 0x13b   :  { %376 = vst [vmem:[#allocation2] sm:$0xff] %v372_v36  ;;  %v2589_v52 = vld [vmem:[#allocation2 + $0x34] sm:$0xf0]  ;;  %v2358_v31 = vld [vmem:[#allocation2 + $0x38] sm:$0xf0] }
 0x13c   :  { %377 = vst [vmem:[#allocation2 + $0x8] sm:$0xff] %v373_v56  ;;  %v2357_v10 = vor.u32 %v2589_v52, %v2356_v50  ;;  %v2361_v14 = vor.u32 %v2587_v62, %v2358_v31 }
 0x13d   :  { %v256_v44 = vpop.permute.xlu1 %255 }
 0x13e   :  { %572 = vmatpush.bf16.msra.mxu2 %v2357_v10  ;;  %585 = vmatpush.bf16.msra.mxu3 %v2361_v14  ;;  %v263_v45 = vsel %vm261_vm8, %v256_v44, %v3244_v26  ;;  %v3414_v26 = vsel %vm114_vm5, 1.0, %v2742_v11  ;;  %v411_v14 = vld [vmem:[%s4366_s2] sm:$0xf] }
 0x13f   :  { %v268_v15 = vmul.f32 %v263_v45, %v3397_v37  ;;  %4480 = vst [vmem:[#allocation18_spill] sm:$0xff] %v3414_v26  ;;  %851 = vrot.lane.b32.xlu2 %v2796_v6, %s2736_s6 }
 0x141   :  { %v375_v3 = vpack.c.bf16 %v269_v39, %v268_v15  ;;  %v2588_v15 = vld [vmem:[#allocation2 + $0x2c] sm:$0xf0] }
 0x143   :  { %379 = vst [vmem:[#allocation2 + $0x18] sm:$0xff] %v375_v3  ;;  %v2340_v56 = vld [vmem:[#allocation2 + $0x8] sm:$0xf]  ;;  %v2583_v62 = vld [vmem:[#allocation2 + $0xc] sm:$0xf] }
 0x145   :  { %v271_v53 = vpop.permute.xlu1 %270 }
 0x146   :  { %v281_v8 = vsel %vm4482_vm2, %v271_v53, %v3076_v27  ;;  %v282_v54 = vsel %vm4483_vm14, %v3078_v29, %v271_v53  ;;  %v3432_v27 = vsel %vm3297_vm4, 1.0, %v2742_v11  ;;  %v3437_v29 = vsel %vm3319_vm0, 1.0, %v2742_v11  ;;  %v2350_v53 = vld [vmem:[#allocation2 + $0x30] sm:$0xf0] }
 0x147   :  { %v283_v9 = vmul.f32 %v282_v54, %v3414_v26  ;;  %v284_v1 = vmul.f32 %v281_v8, %v3417_v30  ;;  %819 = vrot.lane.b32.xlu2 %v2796_v6, %s2737_s7  ;;  %vm4484_vm4 = vcmp.lt.s32.totalorder %v2843_v24, 113  ;;  %vm4485_vm0 = vcmp.lt.s32.totalorder %v2843_v24, 112 }
 0x148   :  { %vm4494_vm9 = vmmov %vm4484_vm4 }
 0x149   :  { %v380_v36 = vpack.c.bf16 %v284_v1, %v283_v9  ;;  %v2582_v9 = vld [vmem:[#allocation2 + $0x4] sm:$0xf]  ;;  %vm4495_vm5 = vmmov %vm4485_vm0 }
 0x14a   :  { %v2585_v50 = vld [vmem:[#allocation2 + $0x14] sm:$0xf0]  ;;  %v2342_v52 = vld [vmem:[#allocation2 + $0x18] sm:$0xf0]  ;;  %vm4496_vm12 = vmmov %vm4484_vm4 }
 0x14b   :  { %384 = vst [vmem:[#allocation2 + $0x20] sm:$0xff] %v380_v36  ;;  %v2341_v31 = vor.u32 %v2585_v50, %v2340_v56  ;;  %v2345_v4 = vor.u32 %v2583_v62, %v2342_v52  ;;  %vm4497_vm15 = vmmov %vm4484_vm4 }
 0x14c   :  { %vm4498_vm2 = vmmov %vm4485_vm0 }
 0x14d   :  { %573 = vmatpush.bf16.msra.mxu2 %v2341_v31  ;;  %586 = vmatpush.bf16.msra.mxu3 %v2345_v4  ;;  %v254_v10 = vpop.permute.xlu1 %253  ;;  %vm4499_vm14 = vmmov %vm4485_vm0 }
 0x14e   :  { %v264_v45 = vsel %vm261_vm8, %v254_v10, %v256_v44  ;;  %v265_v34 = vsel %vm261_vm8, %v3293_v61, %v254_v10  ;;  %v2332_v61 = vld [vmem:[#allocation2] sm:$0xf] }
 0x14f   :  { %v266_v39 = vmul.f32 %v265_v34, %v3432_v27  ;;  %v267_v11 = vmul.f32 %v264_v45, %v3437_v29  ;;  %835 = vrot.lane.b32.xlu2 %v2796_v6, %s2738_s8 }
 0x150   :  { %2412 = vmatmul.msk.bf16.vlgmr.msra.gmra.mxu2 %vm536_vm13, %v411_v14  ;;  %2413 = vmatmul.msk.bf16.vlgmr.msra.gmra.mxu3 %vm536_vm13, %v411_v14 }
 0x151   :  { %v374_v22 = vpack.c.bf16 %v267_v11, %v266_v39 }
 0x152   :  { %v2348_v3 = vld [vmem:[#allocation2 + $0x20] sm:$0xf]  ;;  %v2586_v33 = vld [vmem:[#allocation2 + $0x24] sm:$0xf] }
 0x153   :  { %378 = vst [vmem:[#allocation2 + $0x10] sm:$0xff] %v374_v22  ;;  %v2349_v44 = vor.u32 %v2588_v15, %v2348_v3  ;;  %v2353_v8 = vor.u32 %v2586_v33, %v2350_v53 }
 0x155   :  { %546 = vmatpush.bf16.msra.mxu0 %v2349_v44  ;;  %559 = vmatpush.bf16.msra.mxu1 %v2353_v8  ;;  %v896_v7 = vpop.permute.xlu1 %895 }
 0x157   :  { %881 = vrot.lane.b32.xlu2 %v2791_v5, %s2734_s29 }
 0x15a   :  { %v2584_v54 = vld [vmem:[#allocation2 + $0xc] sm:$0xf0]  ;;  %v2334_v1 = vld [vmem:[#allocation2 + $0x10] sm:$0xf0] }
 0x15b   :  { %v2333_v36 = vor.u32 %v2584_v54, %v2332_v61  ;;  %v2337_v56 = vor.u32 %v2582_v9, %v2334_v1 }
 0x15d   :  { %547 = vmatpush.bf16.msra.mxu0 %v2333_v36  ;;  %560 = vmatpush.bf16.msra.mxu1 %v2337_v56 }
 0x15f   :  { %785 = vrot.lane.b32.xlu2 %v2791_v5, %s2739_s9 }
 0x160   :  { %2410 = vmatmul.msk.bf16.vlgmr.msra.gmra.mxu0 %vm536_vm13, %v411_v14  ;;  %2411 = vmatmul.msk.bf16.vlgmr.msra.gmra.mxu1 %vm536_vm13, %v411_v14  ;;  %v3469_v14 = vpop.permute.xlu1 %867 }
 0x167   :  { %801 = vrot.lane.b32.xlu2 %v2791_v5, %s2740_s10 }
 0x168   :  { %v884_v22 = vpop.permute.xlu1 %883 }
 0x170   :  { %v3492_v1 = vpop.permute.xlu1 %847 }
 0x177   :  { %v434_v50 = vpop.permute.xlu2 %433 }
 0x180   :  { %v900_v10 = vpop.permute.xlu2 %899 }
 0x189   :  { %v870_v5 = vpop.permute.xlu2 %869 }
 0x18a   :  { %v871_v33 = vsel %vm4484_vm4, %v3469_v14, %v870_v5  ;;  %vm4510_vm4 = vmmov %vm4491_vm1 }
 0x191   :  { %v886_v9 = vpop.permute.xlu2 %885 }
 0x1d3   :  { %v575_v62 = vpop.f32.mrf.mxu2  ;;  %v588_v52 = vpop.f32.mrf.mxu3 }
 0x1d4   :  { %v576_v31 = vadd.f32 %v575_v62, %v434_v50  ;;  %v589_v4 = vadd.f32 %v588_v52, %v434_v50  ;;  %v3502_v62 = vpop.permute.xlu2 %851  ;;  %v898_v52 = vpop.permute.xlu1 %897 }
 0x1d6   :  { %v3471_v45 = vmax.f32 %v576_v31, 0.0  ;;  %v3473_v6 = vmax.f32 %v589_v4, 0.0  ;;  %v904_v31 = vsel %vm4486_vm7, %v898_v52, %v900_v10  ;;  %v905_v4 = vsel %vm4487_vm6, %v896_v7, %v898_v52 }
 0x1d8   :  { %v741_v34 = vpack.c.bf16 %v3473_v6, %v3471_v45 }
 0x1da   :  { %745 = vst [vmem:[#allocation2 + $0x48] sm:$0xff] %v741_v34  ;;  %v3509_v34 = vmul.f32 %v905_v4, %v2981_v12 }
 0x1db   :  { %v577_v39 = vpop.f32.mrf.mxu2  ;;  %v590_v11 = vpop.f32.mrf.mxu3 }
 0x1dc   :  { %v3512_v39 = vmul.f32 %v904_v31, %v2996_v17 }
 0x1dd   :  { %v549_v15 = vpop.f32.mrf.mxu0  ;;  %v562_v3 = vpop.f32.mrf.mxu1 }
 0x1de   :  { %v550_v53 = vadd.f32 %v549_v15, %v434_v50  ;;  %v563_v44 = vadd.f32 %v562_v3, %v434_v50  ;;  %v887_v50 = vsel %vm4485_vm0, %v884_v22, %v886_v9  ;;  %v3522_v15 = vpop.permute.xlu2 %819  ;;  %v3524_v3 = vpop.permute.xlu1 %817  ;;  %vm4512_vm0 = vmmov %vm4491_vm1 }
 0x1df   :  { %4488 = vst [vmem:[#allocation20_spill] sm:$0xff] %v3522_v15  ;;  %vm4513_vm7 = vmmov %vm4512_vm0 }
 0x1e0   :  { %v3480_v8 = vmax.f32 %v550_v53, 0.0  ;;  %v3482_v61 = vmax.f32 %v563_v44, 0.0  ;;  %4489 = vst [vmem:[#allocation21_spill] sm:$0xff] %v3524_v3  ;;  %v902_v53 = vpop.permute.xlu0 %901  ;;  %vm4514_vm6 = vmmov %vm4512_vm0 }
 0x1e1   :  { %v903_v44 = vsel %vm4490_vm3, %v900_v10, %v902_v53  ;;  %vm4515_vm3 = vmmov %vm4494_vm9 }
 0x1e2   :  { %v740_v54 = vpack.c.bf16 %v3482_v61, %v3480_v8  ;;  %708 = vrot.lane.b32.xlu0 %v3480_v8, %s2733_s28  ;;  %694 = vrot.lane.b32.xlu2 %v3482_v61, %s2734_s29  ;;  %v3541_v52 = vmul.f32 %v903_v44, %v2999_v18 }
 0x1e3   :  { %630 = vrot.lane.b32.xlu1 %v3482_v61, %s2737_s7 }
 0x1e4   :  { %744 = vst [vmem:[#allocation2 + $0x40] sm:$0xff] %v740_v54  ;;  %v906_v54 = vsel %vm4491_vm1, %v902_v53, %v896_v7  ;;  %v3553_v7 = vmul.f32 %v871_v33, %v3035_v38  ;;  %vm4516_vm1 = vmmov %vm4515_vm3 }
 0x1e5   :  { %v551_v36 = vpop.f32.mrf.mxu0  ;;  %v564_v56 = vpop.f32.mrf.mxu1  ;;  %v3544_v31 = vmul.f32 %v906_v54, %v2988_v13 }
 0x1e6   :  { %v3536_v36 = vpop.permute.xlu2 %835  ;;  %v3538_v56 = vpop.permute.xlu1 %833 }
 0x1e7   :  { %4492 = vst [vmem:[#allocation22_spill] sm:$0xff] %v3536_v36 }
 0x1e8   :  { %4493 = vst [vmem:[#allocation23_spill] sm:$0xff] %v3538_v56  ;;  %v864_v10 = vpop.permute.xlu0 %863 }
 0x1e9   :  { %v874_v53 = vsel %vm4494_vm9, %v870_v5, %v864_v10  ;;  %vm4517_vm9 = vmmov %vm4516_vm1 }
 0x1ea   :  { %676 = vrot.lane.b32.xlu0 %v3480_v8, %s2735_s30  ;;  %628 = vrot.lane.b32.xlu2 %v3480_v8, %s2737_s7  ;;  %v3560_v11 = vmul.f32 %v874_v53, %v3026_v32 }
 0x1eb   :  { %646 = vrot.lane.b32.xlu1 %v3482_v61, %s2738_s8 }
 0x1ee   :  { %v882_v44 = vpop.permute.xlu2 %881  ;;  %v866_v54 = vpop.permute.xlu1 %865 }
 0x1ef   :  { %v888_v4 = vsel %vm4495_vm5, %v882_v44, %v884_v22  ;;  %v872_v33 = vsel %vm4496_vm12, %v866_v54, %v3469_v14  ;;  %v873_v58 = vsel %vm4497_vm15, %v864_v10, %v866_v54  ;;  %v3584_v14 = vmul.f32 %v887_v50, %v3085_v43  ;;  %v2729_v50 = vld [vmem:[%s4365_s0 + $0x10] sm:$0xff]  ;;  %vm4518_vm5 = vmmov %vm4516_vm1 }
 0x1f0   :  { %v3570_v59 = vmul.f32 %v873_v58, %v3207_v42  ;;  %v3573_v5 = vmul.f32 %v872_v33, %v3199_v28  ;;  %v3589_v58 = vmul.f32 %v888_v4, %v3061_v55  ;;  %v880_v22 = vpop.permute.xlu0 %879  ;;  %vm4520_vm12 = vmmov %vm4498_vm2 }
 0x1f1   :  { %v889_v10 = vsel %vm4498_vm2, %v880_v22, %v882_v44  ;;  %v890_v54 = vsel %vm4499_vm14, %v886_v9, %v880_v22  ;;  %v3636_v44 = vld [vmem:[%s4365_s0 + $0x8] sm:$0xff]  ;;  %vm4521_vm15 = vmmov %vm4498_vm2 }
 0x1f2   :  { %692 = vrot.lane.b32.xlu0 %v3480_v8, %s2734_s29  ;;  %714 = vrot.lane.b32.xlu2 %v3473_v6, %s2733_s28  ;;  %v3596_v33 = vmul.f32 %v889_v10, %v3056_v2  ;;  %v3599_v53 = vmul.f32 %v890_v54, %v3048_v57  ;;  %v2728_v10 = vld [vmem:[%s4365_s0] sm:$0xff]  ;;  %vm4523_vm14 = vmmov %vm4498_vm2 }
 0x1f3   :  { %678 = vrot.lane.b32.xlu1 %v3482_v61, %s2735_s30 }
 0x1f6   :  { %v3623_v9 = vpop.permute.xlu2 %785 }
 0x1f7   :  { %4500 = vst [vmem:[#allocation24_spill] sm:$0xff] %v3623_v9 }
 0x1fa   :  { %660 = vrot.lane.b32.xlu0 %v3480_v8, %s2736_s6  ;;  %682 = vrot.lane.b32.xlu2 %v3473_v6, %s2735_s30 }
 0x1fb   :  { %612 = vrot.lane.b32.xlu1 %v3480_v8, %s2740_s10 }
 0x1fe   :  { %v3642_v22 = vpop.permute.xlu2 %801 }
 0x1ff   :  { %4501 = vst [vmem:[#allocation25_spill] sm:$0xff] %v3642_v22  ;;  %v3670_v22 = vpop.permute.xlu1 %789 }
 0x200   :  { %4506 = vst [vmem:[#allocation30_spill] sm:$0xff] %v3670_v22 }
 0x202   :  { %698 = vrot.lane.b32.xlu2 %v3473_v6, %s2734_s29  ;;  %710 = vrot.lane.b32.xlu0 %v3482_v61, %s2733_s28 }
 0x203   :  { %712 = vrot.lane.b32.xlu1 %v3471_v45, %s2733_s28 }
 0x20a   :  { %666 = vrot.lane.b32.xlu2 %v3473_v6, %s2736_s6  ;;  %598 = vrot.lane.b32.xlu0 %v3482_v61, %s2739_s9 }
 0x20b   :  { %680 = vrot.lane.b32.xlu1 %v3471_v45, %s2735_s30 }
 0x212   :  { %632 = vrot.lane.b32.xlu2 %v3471_v45, %s2737_s7  ;;  %614 = vrot.lane.b32.xlu0 %v3482_v61, %s2740_s10 }
 0x213   :  { %696 = vrot.lane.b32.xlu1 %v3471_v45, %s2734_s29 }
 0x21a   :  { %648 = vrot.lane.b32.xlu2 %v3471_v45, %s2738_s8  ;;  %662 = vrot.lane.b32.xlu0 %v3482_v61, %s2736_s6  ;;  %v3631_v61 = vpop.permute.xlu0 %853 }
 0x21b   :  { %664 = vrot.lane.b32.xlu1 %v3471_v45, %s2736_s6 }
 0x222   :  { %602 = vrot.lane.b32.xlu2 %v3473_v6, %s2739_s9  ;;  %644 = vrot.lane.b32.xlu0 %v3480_v8, %s2738_s8 }
 0x223   :  { %600 = vrot.lane.b32.xlu1 %v3471_v45, %s2739_s9 }
 0x22a   :  { %618 = vrot.lane.b32.xlu2 %v3473_v6, %s2740_s10  ;;  %596 = vrot.lane.b32.xlu0 %v3480_v8, %s2739_s9  ;;  %v2727_v8 = vld [vmem:[%s4365_s0 + $0x18] sm:$0xff] }
 0x22b   :  { %616 = vrot.lane.b32.xlu1 %v3471_v45, %s2740_s10  ;;  %v3648_v45 = vpop.permute.xlu0 %821 }
 0x22c   :  { %4502 = vst [vmem:[#allocation26_spill] sm:$0xff] %v3648_v45 }
 0x232   :  { %849 = vrot.lane.b32.xlu2 %v3636_v44, %s2736_s6  ;;  %634 = vrot.lane.b32.xlu0 %v3473_v6, %s2737_s7 }
 0x233   :  { %805 = vrot.lane.b32.xlu1 %v2727_v8, %s2740_s10  ;;  %v3659_v4 = vpop.permute.xlu0 %837 }
 0x234   :  { %4503 = vst [vmem:[#allocation27_spill] sm:$0xff] %v3659_v4 }
 0x23a   :  { %783 = vrot.lane.b32.xlu2 %v2728_v10, %s2739_s9  ;;  %650 = vrot.lane.b32.xlu0 %v3473_v6, %s2738_s8 }
 0x23b   :  { %831 = vrot.lane.b32.xlu1 %v2728_v10, %s2738_s8  ;;  %v3668_v0 = vpop.permute.xlu0 %787 }
 0x23c   :  { %v3657_v54 = vpop.permute.xlu2 %694  ;;  %4505 = vst [vmem:[#allocation29_spill] sm:$0xff] %v3668_v0 }
 0x242   :  { %803 = vrot.lane.b32.xlu0 %v2729_v50, %s2740_s10 }
 0x244   :  { %v3665_v63 = vpop.permute.xlu2 %628 }
 0x245   :  { %4504 = vst [vmem:[#allocation28_spill] sm:$0xff] %v3665_v63 }
 0x24a   :  { %815 = vrot.lane.b32.xlu0 %v2728_v10, %s2737_s7 }
 0x24c   :  { %v715_v6 = vpop.permute.xlu2 %714 }
 0x252   :  { %799 = vrot.lane.b32.xlu0 %v2728_v10, %s2740_s10 }
 0x254   :  { %v709_v36 = vpop.permute.xlu0 %708  ;;  %v683_v56 = vpop.permute.xlu2 %682 }
 0x255   :  { %v3673_v4 = vpop.permute.xlu1 %630  ;;  %v719_v40 = vsel %vm4510_vm4, %v715_v6, %v709_v36  ;;  %vm4524_vm4 = vcmp.lt.s32.totalorder %v2843_v24, 127 }
 0x256   :  { %4507 = vst [vmem:[#allocation31_spill] sm:$0xff] %v3673_v4 }
 0x25c   :  { %v677_v41 = vpop.permute.xlu0 %676  ;;  %v699_v48 = vpop.permute.xlu2 %698 }
 0x25d   :  { %v3675_v25 = vpop.permute.xlu1 %646 }
 0x25e   :  { %4508 = vst [vmem:[#allocation32_spill] sm:$0xff] %v3675_v25 }
 0x264   :  { %v693_v51 = vpop.permute.xlu0 %692  ;;  %v3677_v45 = vpop.permute.xlu2 %666 }
 0x265   :  { %v679_v3 = vpop.permute.xlu1 %678 }
 0x26c   :  { %v3679_v15 = vpop.permute.xlu0 %660  ;;  %v3681_v60 = vpop.permute.xlu2 %632 }
 0x26d   :  { %4509 = vst [vmem:[#allocation33_spill] sm:$0xff] %v3681_v60  ;;  %v613_v26 = vpop.permute.xlu1 %612  ;;  %v723_v60 = vmul.f32 %v719_v40, %v2988_v13  ;;  %v687_v13 = vsel %vm4516_vm1, %v683_v56, %v677_v41  ;;  %v3706_v40 = vld [vmem:[#allocation2 + $0x4c] sm:$0xf] }
 0x274   :  { %v3685_v30 = vpop.permute.xlu2 %648  ;;  %v711_v63 = vpop.permute.xlu0 %710 }
 0x275   :  { %4511 = vst [vmem:[#allocation34_spill] sm:$0xff] %v3685_v30  ;;  %v713_v4 = vpop.permute.xlu1 %712  ;;  %v718_v20 = vsel %vm4512_vm0, %v709_v36, %v711_v63  ;;  %v686_v36 = vsel %vm4515_vm3, %v677_v41, %v679_v3  ;;  %vm4526_vm0 = vmmov %vm4524_vm4 }
 0x276   :  { %v716_v25 = vsel %vm4513_vm7, %v713_v4, %v715_v6  ;;  %v717_v47 = vsel %vm4514_vm6, %v711_v63, %v713_v4  ;;  %v720_v37 = vmul.f32 %v718_v20, %v2981_v12  ;;  %v928_v63 = vpack.c.bf16 %v2727_v8, %v2729_v50  ;;  %v3716_v20 = vld [vmem:[#allocation2 + $0x40] sm:$0xf]  ;;  %vm4528_vm7 = vmmov %vm4526_vm0 }
 0x277   :  { %v722_v49 = vmul.f32 %v716_v25, %v2999_v18  ;;  %v721_v22 = vmul.f32 %v717_v47, %v2996_v17  ;;  %v927_v12 = vpack.c.bf16 %v3636_v44, %v2728_v10  ;;  %v3708_v17 = vld [vmem:[#allocation2 + $0x48] sm:$0xf]  ;;  %v688_v47 = vmul.f32 %v686_v36, %v3207_v42  ;;  %vm4529_vm6 = vmmov %vm4526_vm0 }
 0x278   :  { %932 = vst [vmem:[#allocation2 + $0x48] sm:$0xff] %v928_v63  ;;  %vm4531_vm3 = vmmov %vm4526_vm0 }
 0x279   :  { %v757_v30 = vpack.c.bf16 %v723_v60, %v722_v49  ;;  %v756_v9 = vpack.c.bf16 %v721_v22, %v720_v37  ;;  %v3714_v49 = vld [vmem:[#allocation2 + $0x44] sm:$0xf]  ;;  %vm4532_vm1 = vmmov %vm4526_vm0 }
 0x27a   :  { %931 = vst [vmem:[#allocation2 + $0x40] sm:$0xff] %v927_v12 }
 0x27b   :  { %759 = vst [vmem:[#allocation2 + $0x88] sm:$0xff] %v757_v30  ;;  %v691_v30 = vmul.f32 %v687_v13, %v3026_v32  ;;  %v703_v32 = vsel %vm4521_vm15, %v699_v48, %v693_v51 }
 0x27c   :  { %758 = vst [vmem:[#allocation2 + $0x80] sm:$0xff] %v756_v9  ;;  %v3699_v0 = vpop.permute.xlu2 %602  ;;  %v3701_v6 = vpop.permute.xlu0 %598  ;;  %v4519_v9 = vpack.c.bf16 %v3544_v31, %v3541_v52  ;;  %v707_v12 = vmul.f32 %v703_v32, %v3048_v57  ;;  %v671_v57 = vsel %vm4524_vm4, %v3677_v45, %v3679_v15 }
 0x27d   :  { %v681_v18 = vpop.permute.xlu1 %680 }
 0x27e   :  { %v684_v60 = vsel %vm4517_vm9, %v681_v18, %v683_v56  ;;  %v685_v25 = vsel %vm4518_vm5, %v679_v3, %v681_v18  ;;  %vm4534_vm9 = vmmov %vm4526_vm0 }
 0x27f   :  { %v689_v41 = vmul.f32 %v685_v25, %v3199_v28  ;;  %v690_v37 = vmul.f32 %v684_v60, %v3035_v38  ;;  %v702_v38 = vsel %vm4520_vm12, %v693_v51, %v3657_v54  ;;  %v4522_v28 = vpack.c.bf16 %v3512_v39, %v3509_v34  ;;  %v2641_v60 = vld [vmem:[#allocation2 + $0x94] sm:$0xf0]  ;;  %v2490_v25 = vld [vmem:[#allocation2 + $0x98] sm:$0xf0]  ;;  %vm4535_vm5 = vmmov %vm4526_vm0 }
 0x280   :  { %v704_v63 = vmul.f32 %v702_v38, %v3056_v2  ;;  %vm4545_vm12 = vcmp.lt.s32.totalorder %v2843_v24, 15 }
 0x281   :  { %v748_v50 = vpack.c.bf16 %v689_v41, %v688_v47  ;;  %v749_v3 = vpack.c.bf16 %v691_v30, %v690_v37  ;;  %v2482_v37 = vld [vmem:[#allocation2 + $0x90] sm:$0xf0]  ;;  %vm4547_vm15 = vmmov %vm4545_vm12 }
 0x282   :  { %v3722_v4 = vld [vmem:[#allocation2 + $0x8c] sm:$0xf]  ;;  %v3724_v56 = vld [vmem:[#allocation2 + $0x88] sm:$0xf] }
 0x283   :  { %946 = vst [vmem:[#allocation2 + $0x88] sm:$0xff] %v4519_v9  ;;  %v3729_v44 = vld [vmem:[#allocation2 + $0x84] sm:$0xf]  ;;  %v3731_v42 = vld [vmem:[#allocation2 + $0x80] sm:$0xf] }
 0x284   :  { %945 = vst [vmem:[#allocation2 + $0x80] sm:$0xff] %v4522_v28  ;;  %v3741_v22 = vpop.permute.xlu2 %618  ;;  %v3743_v8 = vpop.permute.xlu0 %614 }
 0x285   :  { %752 = vst [vmem:[#allocation2 + $0x60] sm:$0xff] %v748_v50  ;;  %v623_v52 = vsel %vm261_vm8, %v3741_v22, %v613_v26  ;;  %v697_v31 = vpop.permute.xlu1 %696  ;;  %v622_v10 = vsel %vm261_vm8, %v613_v26, %v3743_v8 }
 0x286   :  { %753 = vst [vmem:[#allocation2 + $0x68] sm:$0xff] %v749_v3  ;;  %v624_v51 = vmul.f32 %v623_v52, %v3432_v27  ;;  %v700_v34 = vsel %vm4498_vm2, %v697_v31, %v699_v48  ;;  %v701_v39 = vsel %vm4523_vm14, %v3657_v54, %v697_v31  ;;  %v625_v36 = vmul.f32 %v622_v10, %v3437_v29  ;;  %v2640_v48 = vld [vmem:[#allocation2 + $0x8c] sm:$0xf0]  ;;  %vm4550_vm2 = vmmov %vm4545_vm12 }
 0x287   :  { %v705_v13 = vmul.f32 %v701_v39, %v3061_v55  ;;  %v706_v26 = vmul.f32 %v700_v34, %v3085_v43  ;;  %v4525_v10 = vpack.c.bf16 %v3573_v5, %v3570_v59  ;;  %v4527_v39 = vpack.c.bf16 %v3560_v11, %v3553_v7  ;;  %vm4551_vm14 = vmmov %vm4550_vm2 }
 0x288   :  { %v726_v18 = vpack.c.bf16 %v625_v36, %v624_v51  ;;  %v675_v59 = vmul.f32 %v671_v57, %v3155_v21  ;;  %vm4558_vm4 = vmmov %vm4550_vm2 }
 0x289   :  { %v750_v47 = vpack.c.bf16 %v705_v13, %v704_v63  ;;  %v751_v41 = vpack.c.bf16 %v707_v12, %v706_v26 }
 0x28a   :  { %730 = vst [vmem:[#allocation2 + $0x10] sm:$0xff] %v726_v18  ;;  %v2488_v30 = vld [vmem:[#allocation2 + $0x88] sm:$0xf]  ;;  %v2639_v54 = vld [vmem:[#allocation2 + $0x8c] sm:$0xf] }
 0x28b   :  { %754 = vst [vmem:[#allocation2 + $0x70] sm:$0xff] %v750_v47  ;;  %v2489_v50 = vor.u32 %v2641_v60, %v2488_v30  ;;  %v2493_v3 = vor.u32 %v2639_v54, %v2490_v25  ;;  %v2480_v2 = vld [vmem:[#allocation2 + $0x80] sm:$0xf]  ;;  %v2638_v9 = vld [vmem:[#allocation2 + $0x84] sm:$0xf]  ;;  %v4530_v25 = vpack.c.bf16 %v3589_v58, %v3596_v33  ;;  %v4533_v58 = vpack.c.bf16 %v3599_v53, %v3584_v14 }
 0x28c   :  { %v3766_v55 = vld [vmem:[#allocation2 + $0x64] sm:$0xf]  ;;  %v3768_v43 = vld [vmem:[#allocation2 + $0x60] sm:$0xf]  ;;  %755 = vst [vmem:[#allocation2 + $0x78] sm:$0xff] %v751_v41  ;;  %v2481_v38 = vor.u32 %v2640_v48, %v2480_v2  ;;  %v2485_v32 = vor.u32 %v2638_v9, %v2482_v37  ;;  %v663_v28 = vpop.permute.xlu0 %662  ;;  %v850_v26 = vpop.permute.xlu2 %849  ;;  %v855_v48 = vsel %vm4531_vm3, %v3502_v62, %v3631_v61  ;;  %v858_v37 = vsel %vm4532_vm1, %v3631_v61, %v3492_v1 }
 0x28d   :  { %v3770_v52 = vld [vmem:[#allocation2 + $0x6c] sm:$0xf]  ;;  %v3772_v31 = vld [vmem:[#allocation2 + $0x68] sm:$0xf]  ;;  %939 = vst [vmem:[#allocation2 + $0x60] sm:$0xff] %v4525_v10  ;;  %1102 = vmatpush.bf16.msrb.mxu2 %v2489_v50  ;;  %1115 = vmatpush.bf16.msrb.mxu3 %v2493_v3  ;;  %v665_v51 = vpop.permute.xlu1 %664  ;;  %v670_v34 = vsel %vm4526_vm0, %v3679_v15, %v663_v28  ;;  %v856_v30 = vsel %vm4534_vm9, %v850_v26, %v3502_v62  ;;  %v4537_v9 = vld [vmem:[#allocation24_spill] sm:$0xff] }
 0x28e   :  { %940 = vst [vmem:[#allocation2 + $0x68] sm:$0xff] %v4527_v39  ;;  %v668_v36 = vsel %vm4528_vm7, %v665_v51, %v3677_v45  ;;  %1076 = vmatpush.bf16.msrb.mxu0 %v2481_v38  ;;  %1089 = vmatpush.bf16.msrb.mxu1 %v2485_v32  ;;  %v669_v63 = vsel %vm4529_vm6, %v663_v28, %v665_v51  ;;  %v4538_v28 = vld [vmem:[#allocation30_spill] sm:$0xff]  ;;  %vm4570_vm0 = vmmov %vm4550_vm2 }
 0x28f   :  { %v674_v5 = vmul.f32 %v668_v36, %v3144_v19  ;;  %v672_v12 = vmul.f32 %v670_v34, %v3175_v46  ;;  %v673_v15 = vmul.f32 %v669_v63, %v3178_v35  ;;  %v857_v54 = vsel %vm4535_vm5, %v3492_v1, %v850_v26  ;;  %v4536_v1 = vld [vmem:[#allocation29_spill] sm:$0xff] }
 0x290   :  { %v861_v14 = vmul.f32 %v855_v48, %v3144_v19  ;;  %v862_v3 = vmul.f32 %v858_v37, %v3155_v21  ;;  %v792_v57 = vsel %vm244_vm10, %v4537_v9, %v4536_v1  ;;  %v859_v38 = vmul.f32 %v857_v54, %v3175_v46 }
 0x291   :  { %v743_v13 = vpack.c.bf16 %v675_v59, %v674_v5  ;;  %v742_v45 = vpack.c.bf16 %v673_v15, %v672_v12  ;;  %v860_v32 = vmul.f32 %v856_v30, %v3178_v35  ;;  %v791_v19 = vsel %vm244_vm10, %v4536_v1, %v4538_v28 }
 0x292   :  { %v3792_v11 = vld [vmem:[#allocation2 + $0x70] sm:$0xf0]  ;;  %v3794_v7 = vld [vmem:[#allocation2 + $0x6c] sm:$0xf0]  ;;  %v930_v5 = vpack.c.bf16 %v862_v3, %v861_v14  ;;  %v797_v63 = vmul.f32 %v792_v57, %v3370_v16  ;;  %v4542_v57 = vld [vmem:[#allocation15_spill] sm:$0xff] }
 0x293   :  { %v3796_v18 = vld [vmem:[#allocation2 + $0x78] sm:$0xf0]  ;;  %v3798_v60 = vld [vmem:[#allocation2 + $0x74] sm:$0xf0]  ;;  %941 = vst [vmem:[#allocation2 + $0x70] sm:$0xff] %v4530_v25  ;;  %v929_v26 = vpack.c.bf16 %v860_v32, %v859_v38  ;;  %v4539_v14 = vld [vmem:[#allocation14_spill] sm:$0xff] }
 0x294   :  { %942 = vst [vmem:[#allocation2 + $0x78] sm:$0xff] %v4533_v58  ;;  %v3818_v33 = vpop.permute.xlu0 %644  ;;  %v2464_v51 = vld [vmem:[#allocation2 + $0x60] sm:$0xf]  ;;  %v2634_v34 = vld [vmem:[#allocation2 + $0x64] sm:$0xf]  ;;  %v4543_v32 = vld [vmem:[#allocation31_spill] sm:$0xff] }
 0x295   :  { %747 = vst [vmem:[#allocation2 + $0x58] sm:$0xff] %v743_v13  ;;  %v601_v50 = vpop.permute.xlu1 %600  ;;  %v2472_v21 = vld [vmem:[#allocation2 + $0x68] sm:$0xf]  ;;  %v2635_v39 = vld [vmem:[#allocation2 + $0x6c] sm:$0xf]  ;;  %v798_v13 = vmul.f32 %v791_v19, %v3360_v23  ;;  %v4544_v19 = vld [vmem:[#allocation28_spill] sm:$0xff] }
 0x296   :  { %746 = vst [vmem:[#allocation2 + $0x50] sm:$0xff] %v742_v45  ;;  %v604_v61 = vsel %vm244_vm10, %v601_v50, %v3699_v0  ;;  %v605_v53 = vsel %vm244_vm10, %v3701_v6, %v601_v50 }
 0x297   :  { %v610_v62 = vmul.f32 %v605_v53, %v3370_v16  ;;  %v611_v2 = vmul.f32 %v604_v61, %v3360_v23 }
 0x299   :  { %v725_v10 = vpack.c.bf16 %v611_v2, %v610_v62  ;;  %v4540_v62 = vld [vmem:[#allocation17_spill] sm:$0xff] }
 0x29a   :  { %v2636_v36 = vld [vmem:[#allocation2 + $0x6c] sm:$0xf0]  ;;  %v2466_v59 = vld [vmem:[#allocation2 + $0x70] sm:$0xf0] }
 0x29b   :  { %729 = vst [vmem:[#allocation2 + $0x8] sm:$0xff] %v725_v10  ;;  %v2637_v12 = vld [vmem:[#allocation2 + $0x74] sm:$0xf0]  ;;  %v2474_v46 = vld [vmem:[#allocation2 + $0x78] sm:$0xf0]  ;;  %v2465_v15 = vor.u32 %v2636_v36, %v2464_v51  ;;  %v2469_v35 = vor.u32 %v2634_v34, %v2466_v59  ;;  %v638_v10 = vsel %vm4545_vm12, %v4544_v19, %v4543_v32 }
 0x29c   :  { %v3848_v45 = vld [vmem:[#allocation2 + $0x58] sm:$0xf0]  ;;  %v3850_v25 = vld [vmem:[#allocation2 + $0x54] sm:$0xf0]  ;;  %v2473_v48 = vor.u32 %v2637_v12, %v2472_v21  ;;  %v2477_v37 = vor.u32 %v2635_v39, %v2474_v46  ;;  %v597_v58 = vpop.permute.xlu0 %596  ;;  %v4546_v21 = vld [vmem:[#allocation33_spill] sm:$0xff] }
 0x29d   :  { %934 = vst [vmem:[#allocation2 + $0x58] sm:$0xff] %v930_v5  ;;  %v3852_v30 = vld [vmem:[#allocation2 + $0x50] sm:$0xf0]  ;;  %v3854_v54 = vld [vmem:[#allocation2 + $0x4c] sm:$0xf0]  ;;  %v617_v16 = vpop.permute.xlu1 %616  ;;  %1077 = vmatpush.bf16.msrb.mxu0 %v2465_v15  ;;  %1090 = vmatpush.bf16.msrb.mxu1 %v2469_v35  ;;  %v606_v23 = vsel %vm244_vm10, %v597_v58, %v3701_v6  ;;  %v607_v50 = vsel %vm244_vm10, %v3699_v0, %v597_v58  ;;  %v4541_v6 = vld [vmem:[#allocation16_spill] sm:$0xff] }
 0x29e   :  { %933 = vst [vmem:[#allocation2 + $0x50] sm:$0xff] %v929_v26  ;;  %1103 = vmatpush.bf16.msrb.mxu2 %v2473_v48  ;;  %1116 = vmatpush.bf16.msrb.mxu3 %v2477_v37  ;;  %v620_v61 = vsel %vm261_vm8, %v617_v16, %v3741_v22  ;;  %v621_v53 = vsel %vm261_vm8, %v3743_v8, %v617_v16  ;;  %v784_v8 = vpop.permute.xlu2 %783  ;;  %v2456_v39 = vld [vmem:[#allocation2 + $0x48] sm:$0xf]  ;;  %v2631_v5 = vld [vmem:[#allocation2 + $0x4c] sm:$0xf]  ;;  %v4548_v46 = vld [vmem:[#allocation19_spill] sm:$0xff] }
 0x29f   :  { %v608_v3 = vmul.f32 %v607_v50, %v4539_v14  ;;  %v626_v2 = vmul.f32 %v621_v53, %v4540_v62  ;;  %v627_v1 = vmul.f32 %v620_v61, %v4541_v6  ;;  %v609_v38 = vmul.f32 %v606_v23, %v4542_v57  ;;  %v2630_v12 = vld [vmem:[#allocation2 + $0x44] sm:$0xf] }
 0x2a0   :  { %v912_v0 = vpack.c.bf16 %v798_v13, %v797_v63  ;;  %v637_v22 = vsel %vm4547_vm15, %v4543_v32, %v4546_v21  ;;  %v2448_v63 = vld [vmem:[#allocation2 + $0x40] sm:$0xf]  ;;  %v641_v15 = vmul.f32 %v638_v10, %v4548_v46  ;;  %v793_v26 = vsel %vm244_vm10, %v784_v8, %v4537_v9 }
 0x2a1   :  { %v727_v51 = vpack.c.bf16 %v627_v1, %v626_v2  ;;  %v724_v34 = vpack.c.bf16 %v609_v38, %v608_v3  ;;  %v4549_v35 = vld [vmem:[#allocation8_spill] sm:$0xff]  ;;  %v794_v48 = vsel %vm244_vm10, %v4538_v28, %v784_v8  ;;  %v4552_v28 = vld [vmem:[#allocation18_spill] sm:$0xff]  ;;  %v4553_v38 = vld [vmem:[#allocation9_spill] sm:$0xff]  ;;  %v796_v8 = vmul.f32 %v793_v26, %v4542_v57 }
 0x2a2   :  { %v3880_v36 = vld [vmem:[#allocation2 + $0xc] sm:$0xf]  ;;  %v3882_v59 = vld [vmem:[#allocation2 + $0x8] sm:$0xf]  ;;  %v642_v13 = vmul.f32 %v637_v22, %v4549_v35  ;;  %v795_v22 = vmul.f32 %v794_v48, %v4539_v14  ;;  %vm4556_vm10 = vmmov %vm4550_vm2 }
 0x2a3   :  { %916 = vst [vmem:[#allocation2 + $0x8] sm:$0xff] %v912_v0  ;;  %v4559_v14 = vld [vmem:[#allocation34_spill] sm:$0xff] }
 0x2a4   :  { %731 = vst [vmem:[#allocation2 + $0x18] sm:$0xff] %v727_v51  ;;  %v2633_v37 = vld [vmem:[#allocation2 + $0x54] sm:$0xf0]  ;;  %v2458_v58 = vld [vmem:[#allocation2 + $0x58] sm:$0xf0]  ;;  %v635_v16 = vpop.permute.xlu0 %634 }
 0x2a5   :  { %728 = vst [vmem:[#allocation2] sm:$0xff] %v724_v34  ;;  %v2457_v23 = vor.u32 %v2633_v37, %v2456_v39  ;;  %v2461_v50 = vor.u32 %v2631_v5, %v2458_v58  ;;  %v3892_v61 = vpop.permute.xlu1 %805  ;;  %v636_v53 = vsel %vm4550_vm2, %v4546_v21, %v635_v16  ;;  %v639_v9 = vsel %vm4551_vm14, %v635_v16, %v4544_v19  ;;  %v2632_v3 = vld [vmem:[#allocation2 + $0x4c] sm:$0xf0]  ;;  %v2450_v2 = vld [vmem:[#allocation2 + $0x50] sm:$0xf0]  ;;  %v4554_v34 = vld [vmem:[#allocation20_spill] sm:$0xff] }
 0x2a6   :  { %v640_v1 = vmul.f32 %v639_v9, %v4552_v28  ;;  %v643_v0 = vmul.f32 %v636_v53, %v4553_v38  ;;  %v2449_v32 = vor.u32 %v2632_v3, %v2448_v63  ;;  %v2453_v10 = vor.u32 %v2630_v12, %v2450_v2  ;;  %v4555_v19 = vld [vmem:[#allocation21_spill] sm:$0xff]  ;;  %v4557_v5 = vld [vmem:[#allocation26_spill] sm:$0xff]  ;;  %v4560_v12 = vld [vmem:[#allocation32_spill] sm:$0xff] }
 0x2a7   :  { %1104 = vmatpush.bf16.msrb.mxu2 %v2457_v23  ;;  %1117 = vmatpush.bf16.msrb.mxu3 %v2461_v50  ;;  %v824_v39 = vsel %vm4556_vm10, %v4555_v19, %v4554_v34  ;;  %v823_v63 = vsel %vm4558_vm4, %v4554_v34, %v4557_v5  ;;  %v653_v57 = vsel %vm295_vm11, %v4560_v12, %v4559_v14  ;;  %v4561_v53 = vld [vmem:[#allocation12_spill] sm:$0xff]  ;;  %v4562_v3 = vld [vmem:[#allocation11_spill] sm:$0xff] }
 0x2a8   :  { %v732_v51 = vpack.c.bf16 %v641_v15, %v640_v1  ;;  %v733_v21 = vpack.c.bf16 %v643_v0, %v642_v13  ;;  %1078 = vmatpush.bf16.msrb.mxu0 %v2449_v32  ;;  %1091 = vmatpush.bf16.msrb.mxu1 %v2453_v10  ;;  %v911_v15 = vpack.c.bf16 %v796_v8, %v795_v22  ;;  %v4563_v0 = vld [vmem:[#allocation10_spill] sm:$0xff]  ;;  %v4564_v10 = vld [vmem:[#allocation13_spill] sm:$0xff]  ;;  %v4566_v34 = vld [vmem:[#allocation27_spill] sm:$0xff] }
 0x2a9   :  { %v654_v13 = vsel %vm295_vm11, %v3818_v33, %v4560_v12  ;;  %v829_v58 = vmul.f32 %v824_v39, %v4549_v35  ;;  %v830_v16 = vmul.f32 %v823_v63, %v4553_v38  ;;  %v658_v9 = vmul.f32 %v653_v57, %v4561_v53 }
 0x2aa   :  { %736 = vst [vmem:[#allocation2 + $0x20] sm:$0xff] %v732_v51  ;;  %v657_v2 = vmul.f32 %v654_v13, %v4562_v3  ;;  %v4565_v51 = vld [vmem:[#allocation23_spill] sm:$0xff] }
 0x2ab   :  { %737 = vst [vmem:[#allocation2 + $0x28] sm:$0xff] %v733_v21  ;;  %v920_v8 = vpack.c.bf16 %v830_v16, %v829_v58  ;;  %v4568_v16 = vld [vmem:[#allocation25_spill] sm:$0xff] }
 0x2ac   :  { %v3920_v26 = vld [vmem:[#allocation2 + $0x4] sm:$0xf]  ;;  %v3922_v48 = vld [vmem:[#allocation2] sm:$0xf]  ;;  %v651_v37 = vpop.permute.xlu0 %650 }
 0x2ad   :  { %915 = vst [vmem:[#allocation2] sm:$0xff] %v911_v15  ;;  %v652_v23 = vsel %vm295_vm11, %v4559_v14, %v651_v37  ;;  %v655_v50 = vsel %vm295_vm11, %v651_v37, %v3818_v33  ;;  %v832_v1 = vpop.permute.xlu1 %831  ;;  %v4567_v14 = vld [vmem:[#allocation22_spill] sm:$0xff] }
 0x2ae   :  { %v656_v32 = vmul.f32 %v655_v50, %v4563_v0  ;;  %v659_v35 = vmul.f32 %v652_v23, %v4564_v10  ;;  %v841_v21 = vsel %vm295_vm11, %v832_v1, %v4565_v51  ;;  %v842_v33 = vsel %vm295_vm11, %v4566_v34, %v832_v1 }
 0x2af   :  { %v840_v12 = vsel %vm295_vm11, %v4565_v51, %v4567_v14  ;;  %v839_v57 = vsel %vm295_vm11, %v4567_v14, %v4566_v34  ;;  %v843_v15 = vmul.f32 %v842_v33, %v4563_v0  ;;  %v844_v13 = vmul.f32 %v841_v21, %v4562_v3  ;;  %vm4569_vm11 = vmmov %vm4550_vm2 }
 0x2b0   :  { %v734_v22 = vpack.c.bf16 %v657_v2, %v656_v32  ;;  %v735_v38 = vpack.c.bf16 %v659_v35, %v658_v9  ;;  %v845_v50 = vmul.f32 %v840_v12, %v4561_v53  ;;  %v846_v9 = vmul.f32 %v839_v57, %v4564_v10 }
 0x2b1   :  { %v921_v0 = vpack.c.bf16 %v844_v13, %v843_v15  ;;  %v3986_v14 = vld [vmem:[#allocation2 + $0x24] sm:$0xf]  ;;  %v3988_v12 = vld [vmem:[#allocation2 + $0x20] sm:$0xf] }
 0x2b2   :  { %v3942_v39 = vld [vmem:[#allocation2 + $0x2c] sm:$0xf]  ;;  %v3944_v63 = vld [vmem:[#allocation2 + $0x28] sm:$0xf]  ;;  %738 = vst [vmem:[#allocation2 + $0x30] sm:$0xff] %v734_v22  ;;  %v922_v22 = vpack.c.bf16 %v846_v9, %v845_v50 }
 0x2b3   :  { %924 = vst [vmem:[#allocation2 + $0x28] sm:$0xff] %v920_v8  ;;  %v3972_v8 = vld [vmem:[#allocation2 + $0x14] sm:$0xf0] }
 0x2b4   :  { %739 = vst [vmem:[#allocation2 + $0x38] sm:$0xff] %v735_v38  ;;  %v804_v37 = vpop.permute.xlu0 %803  ;;  %v3970_v38 = vld [vmem:[#allocation2 + $0x18] sm:$0xf0]  ;;  %v2622_v47 = vld [vmem:[#allocation2 + $0x4] sm:$0xf] }
 0x2b5   :  { %v807_v58 = vsel %vm261_vm8, %v804_v37, %v3892_v61  ;;  %v808_v23 = vsel %vm261_vm8, %v4568_v16, %v804_v37 }
 0x2b6   :  { %v813_v2 = vmul.f32 %v808_v23, %v4540_v62  ;;  %v814_v1 = vmul.f32 %v807_v58, %v4541_v6  ;;  %v4572_v23 = vld [vmem:[#allocation6_spill] sm:$0xff] }
 0x2b8   :  { %v914_v3 = vpack.c.bf16 %v814_v1, %v813_v2 }
 0x2b9   :  { %v3966_v32 = vld [vmem:[#allocation2 + $0x30] sm:$0xf0]  ;;  %v3968_v35 = vld [vmem:[#allocation2 + $0x2c] sm:$0xf0] }
 0x2ba   :  { %925 = vst [vmem:[#allocation2 + $0x30] sm:$0xff] %v921_v0  ;;  %v2440_v57 = vld [vmem:[#allocation2 + $0x28] sm:$0xf]  ;;  %v2627_v13 = vld [vmem:[#allocation2 + $0x2c] sm:$0xf] }
 0x2bb   :  { %v3974_v51 = vld [vmem:[#allocation2 + $0x38] sm:$0xf0]  ;;  %v3976_v53 = vld [vmem:[#allocation2 + $0x34] sm:$0xf0]  ;;  %918 = vst [vmem:[#allocation2 + $0x18] sm:$0xff] %v914_v3  ;;  %v2557_v3 = vor.u32 %v3798_v60, %v3772_v31 }
 0x2bc   :  { %926 = vst [vmem:[#allocation2 + $0x38] sm:$0xff] %v922_v22  ;;  %v816_v62 = vpop.permute.xlu0 %815  ;;  %v2561_v22 = vor.u32 %v3770_v52, %v3796_v18  ;;  %v4012_v31 = vld [vmem:[#allocation2 + $0xc] sm:$0xf0] }
 0x2bd   :  { %v825_v6 = vsel %vm4569_vm11, %v816_v62, %v4555_v19  ;;  %v826_v10 = vsel %vm4570_vm0, %v4557_v5, %v816_v62  ;;  %v4571_v19 = vld [vmem:[#allocation7_spill] sm:$0xff]  ;;  %v2577_v5 = vor.u32 %v3722_v4, %v4572_v23 }
 0x2be   :  { %v827_v21 = vmul.f32 %v826_v10, %v4552_v28  ;;  %v828_v34 = vmul.f32 %v825_v6, %v4548_v46  ;;  %v2573_v58 = vor.u32 %v4571_v19, %v3724_v56  ;;  %v4573_v28 = vld [vmem:[#allocation5_spill] sm:$0xff]  ;;  %v4574_v46 = vld [vmem:[#allocation4_spill] sm:$0xff] }
 0x2c0   :  { %v919_v33 = vpack.c.bf16 %v828_v34, %v827_v21  ;;  %v2623_v34 = vld [vmem:[#allocation2 + $0xc] sm:$0xf] }
 0x2c1   :  { %v2628_v19 = vld [vmem:[#allocation2 + $0x2c] sm:$0xf0]  ;;  %v2434_v23 = vld [vmem:[#allocation2 + $0x30] sm:$0xf0] }
 0x2c2   :  { %923 = vst [vmem:[#allocation2 + $0x20] sm:$0xff] %v919_v33  ;;  %v2625_v62 = vld [vmem:[#allocation2 + $0x14] sm:$0xf0]  ;;  %v2426_v6 = vld [vmem:[#allocation2 + $0x18] sm:$0xf0] }
 0x2c3   :  { %v2629_v15 = vld [vmem:[#allocation2 + $0x34] sm:$0xf0]  ;;  %v2442_v37 = vld [vmem:[#allocation2 + $0x38] sm:$0xf0] }
 0x2c4   :  { %v2441_v2 = vor.u32 %v2629_v15, %v2440_v57  ;;  %v2445_v1 = vor.u32 %v2627_v13, %v2442_v37  ;;  %v800_v0 = vpop.permute.xlu0 %799  ;;  %v2429_v37 = vor.u32 %v2623_v34, %v2426_v6 }
 0x2c5   :  { %v809_v56 = vsel %vm261_vm8, %v800_v0, %v4568_v16  ;;  %v810_v4 = vsel %vm261_vm8, %v3892_v61, %v800_v0  ;;  %v4018_v61 = vld [vmem:[#allocation2 + $0x10] sm:$0xf0]  ;;  %v2424_v16 = vld [vmem:[#allocation2 + $0x8] sm:$0xf] }
 0x2c6   :  { %1105 = vmatpush.bf16.msrb.mxu2 %v2441_v2  ;;  %1118 = vmatpush.bf16.msrb.mxu3 %v2445_v1  ;;  %v811_v52 = vmul.f32 %v810_v4, %v3432_v27  ;;  %v812_v18 = vmul.f32 %v809_v56, %v3437_v29  ;;  %4575 = vst [vmem:[#allocation29_spill] sm:$0xff] %v4018_v61  ;;  %v4576_v2 = vlaneseq }
 0x2c7   :  { %v2425_v13 = vor.u32 %v2625_v62, %v2424_v16  ;;  %v4040_v62 = vld [vmem:[%s4367_s4] sm:$0xf] }
 0x2c8   :  { %v913_v29 = vpack.c.bf16 %v812_v18, %v811_v52  ;;  %v4029_v1 = vshrl.u32 %v4576_v2, 7 }
 0x2c9   :  { %v2432_v0 = vld [vmem:[#allocation2 + $0x20] sm:$0xf]  ;;  %v2626_v56 = vld [vmem:[#allocation2 + $0x24] sm:$0xf] }
 0x2ca   :  { %917 = vst [vmem:[#allocation2 + $0x10] sm:$0xff] %v913_v29  ;;  %1106 = vmatpush.bf16.msrb.mxu2 %v2425_v13  ;;  %1119 = vmatpush.bf16.msrb.mxu3 %v2429_v37  ;;  %v2433_v6 = vor.u32 %v2628_v19, %v2432_v0  ;;  %v2437_v52 = vor.u32 %v2626_v56, %v2434_v23  ;;  %v1173_v18 = vadd.s32 376, %v4029_v1  ;;  %v1189_v16 = vadd.s32 504, %v4029_v1 }
 0x2cb   :  { %v1172_v34 = vadd.s32 368, %v4029_v1  ;;  %v1188_v2 = vadd.s32 496, %v4029_v1  ;;  %v4047_v29 = vadd.s32 360, %v4029_v1  ;;  %v4050_v13 = vadd.s32 488, %v4029_v1 }
 0x2cc   :  { %1079 = vmatpush.bf16.msrb.mxu0 %v2433_v6  ;;  %1092 = vmatpush.bf16.msrb.mxu1 %v2437_v52  ;;  %v1237_v37 = vshra.s32 %v1173_v18, 4  ;;  %v1365_v19 = vand.u32 15, %v1173_v18  ;;  %v1429_v23 = vshra.s32 %v1173_v18, 8  ;;  %v1253_v0 = vshra.s32 %v1189_v16, 4  ;;  %v2416_v6 = vld [vmem:[#allocation2] sm:$0xf] }
 0x2cd   :  { %2496 = vmatmul.msk.bf16.vlgmr.msrb.gmra.mxu2 %vm536_vm13, %v4040_v62  ;;  %2497 = vmatmul.msk.bf16.vlgmr.msrb.gmra.mxu3 %vm536_vm13, %v4040_v62  ;;  %v1236_v56 = vshra.s32 %v1172_v34, 4  ;;  %v1364_v15 = vand.u32 15, %v1172_v34  ;;  %v1428_v41 = vshra.s32 %v1172_v34, 8  ;;  %v1252_v10 = vshra.s32 %v1188_v2, 4 }
 0x2ce   :  { %2154 = vmatpush.bf16.msra.mxu2 %v2573_v58  ;;  %2167 = vmatpush.bf16.msra.mxu3 %v2577_v5  ;;  %v1381_v58 = vand.u32 15, %v1189_v16  ;;  %v1445_v5 = vshra.s32 %v1189_v16, 8  ;;  %v1301_v27 = vand.u32 15, %v1237_v37  ;;  %v1493_v60 = vshll.u32 %v1429_v23, 6 }
 0x2cf   :  { %v1749_v4 = vshra.s32 %v1365_v19, 1  ;;  %v1317_v57 = vand.u32 15, %v1253_v0  ;;  %v1300_v33 = vand.u32 15, %v1236_v56  ;;  %v1748_v21 = vshra.s32 %v1364_v15, 1 }
 0x2d0   :  { %v1509_v52 = vshll.u32 %v1445_v5, 6  ;;  %v1765_v18 = vshra.s32 %v1381_v58, 1  ;;  %v1557_v9 = vshra.s32 %v1301_v27, 1  ;;  %v2525_v37 = vor.u32 %v3976_v53, %v3944_v63 }
 0x2d1   :  { %v1573_v50 = vshra.s32 %v1317_v57, 1  ;;  %v2624_v61 = vld [vmem:[#allocation2 + $0xc] sm:$0xf0]  ;;  %v2418_v16 = vld [vmem:[#allocation2 + $0x10] sm:$0xf0]  ;;  %v2529_v19 = vor.u32 %v3942_v39, %v3974_v51  ;;  %v4577_v27 = vor.u32 %v3850_v25, %v3708_v17  ;;  %v4578_v57 = vor.u32 %v3706_v40, %v3848_v45 }
 0x2d2   :  { %2155 = vmatpush.bf16.msra.mxu2 %v2557_v3  ;;  %2168 = vmatpush.bf16.msra.mxu3 %v2561_v22  ;;  %v1492_v3 = vshll.u32 %v1428_v41, 6  ;;  %v1556_v22 = vshra.s32 %v1300_v33, 1  ;;  %v2417_v23 = vor.u32 %v2624_v61, %v2416_v6  ;;  %v2421_v0 = vor.u32 %v2622_v47, %v2418_v16 }
 0x2d3   :  { %v1621_v58 = vshll.u32 %v1557_v9, 3  ;;  %v1637_v5 = vshll.u32 %v1573_v50, 3  ;;  %v1316_v34 = vand.u32 15, %v1252_v10  ;;  %v1380_v63 = vand.u32 15, %v1188_v2 }
 0x2d4   :  { %v1620_v15 = vshll.u32 %v1556_v22, 3  ;;  %v1444_v53 = vshra.s32 %v1188_v2, 8  ;;  %1080 = vmatpush.bf16.msrb.mxu0 %v2417_v23  ;;  %1093 = vmatpush.bf16.msrb.mxu1 %v2421_v0  ;;  %v1235_v47 = vshra.s32 %v4047_v29, 4  ;;  %v1363_v51 = vand.u32 15, %v4047_v29 }
 0x2d5   :  { %v1685_v41 = vor.u32 %v1621_v58, %v1493_v60  ;;  %v1701_v39 = vor.u32 %v1637_v5, %v1509_v52  ;;  %v4579_v17 = vor.u32 %v4573_v28, %v3731_v42  ;;  %v4580_v40 = vor.u32 %v3729_v44, %v4574_v46 }
 0x2d6   :  { %2156 = vmatpush.bf16.msra.mxu2 %v4577_v27  ;;  %2169 = vmatpush.bf16.msra.mxu3 %v4578_v57  ;;  %v1684_v45 = vor.u32 %v1620_v15, %v1492_v3  ;;  %v1508_v25 = vshll.u32 %v1444_v53, 6  ;;  %v1572_v50 = vshra.s32 %v1316_v34, 1  ;;  %v1764_v9 = vshra.s32 %v1380_v63, 1 }
 0x2d7   :  { %v1813_v10 = vor.u32 %v1749_v4, %v1685_v41  ;;  %v1829_v61 = vor.u32 %v1765_v18, %v1701_v39  ;;  %v1299_v60 = vand.u32 15, %v1235_v47  ;;  %v1427_v33 = vshra.s32 %v4047_v29, 8  ;;  %2494 = vmatmul.msk.bf16.vlgmr.msrb.gmra.mxu0 %vm536_vm13, %v4040_v62  ;;  %2495 = vmatmul.msk.bf16.vlgmr.msrb.gmra.mxu1 %vm536_vm13, %v4040_v62 }
 0x2d8   :  { %2128 = vmatpush.bf16.msra.mxu0 %v4579_v17  ;;  %2141 = vmatpush.bf16.msra.mxu1 %v4580_v40  ;;  %v1812_v2 = vor.u32 %v1748_v21, %v1684_v45  ;;  %v1636_v56 = vshll.u32 %v1572_v50, 3  ;;  %v1747_v6 = vshra.s32 %v1363_v51, 1  ;;  %v1251_v42 = vshra.s32 %v4050_v13, 4 }
 0x2d9   :  { %vm1877_vm8 = vcmp.eq.s32.totalorder %v1813_v10, %v2843_v24  ;;  %vm1893_vm7 = vcmp.eq.s32.totalorder %v1829_v61, %v2843_v24  ;;  %v1491_v44 = vshll.u32 %v1427_v33, 6  ;;  %v1555_v28 = vshra.s32 %v1299_v60, 1 }
 0x2da   :  { %2157 = vmatpush.bf16.msra.mxu2 %v2525_v37  ;;  %2170 = vmatpush.bf16.msra.mxu3 %v2529_v19  ;;  %v4581_v46 = vor.u32 %v3794_v7, %v3768_v43  ;;  %v4582_v21 = vor.u32 %v3766_v55, %v3792_v11  ;;  %vm1876_vm6 = vcmp.eq.s32.totalorder %v1812_v2, %v2843_v24  ;;  %v1315_v29 = vand.u32 15, %v1251_v42  ;;  %v4102_v11 = vld [vmem:[%s4368_s3] sm:$0xf] }
 0x2db   :  { %v1700_v4 = vor.u32 %v1636_v56, %v1508_v25  ;;  %v1379_v62 = vand.u32 15, %v4050_v13  ;;  %v1619_v52 = vshll.u32 %v1555_v28, 3  ;;  %v1443_v18 = vshra.s32 %v4050_v13, 8 }
 0x2dc   :  { %2129 = vmatpush.bf16.msra.mxu0 %v4581_v46  ;;  %2142 = vmatpush.bf16.msra.mxu1 %v4582_v21  ;;  %v1141_v16 = vadd.s32 120, %v4029_v1  ;;  %v1157_v37 = vadd.s32 248, %v4029_v1  ;;  %v4583_v43 = vor.u32 %v3972_v8, %v3882_v59  ;;  %v4584_v55 = vor.u32 %v3880_v36, %v3970_v38 }
 0x2dd   :  { %v1828_v7 = vor.u32 %v1764_v9, %v1700_v4  ;;  %v1571_v19 = vshra.s32 %v1315_v29, 1  ;;  %v1763_v13 = vshra.s32 %v1379_v62, 1  ;;  %v1170_v3 = vadd.s32 352, %v4029_v1 }
 0x2de   :  { %2158 = vmatpush.bf16.msra.mxu2 %v4583_v43  ;;  %2171 = vmatpush.bf16.msra.mxu3 %v4584_v55  ;;  %v2744_v22 = vmov 0.25   ;;  %v1683_v36 = vor.u32 %v1619_v52, %v1491_v44  ;;  %v1507_v59 = vshll.u32 %v1443_v18, 6  ;;  %v1205_v38 = vshra.s32 %v1141_v16, 4 }
 0x2df   :  { %v1333_v8 = vand.u32 15, %v1141_v16  ;;  %v4585_v23 = vor.u32 %v3854_v54, %v3716_v20  ;;  %v4586_v0 = vor.u32 %v3714_v49, %v3852_v30  ;;  %vm1892_vm3 = vcmp.eq.s32.totalorder %v1828_v7, %v2843_v24 }
 0x2e0   :  { %v1635_v58 = vshll.u32 %v1571_v19, 3  ;;  %v1397_v5 = vshra.s32 %v1141_v16, 8  ;;  %v1221_v27 = vshra.s32 %v1157_v37, 4  ;;  %v1811_v57 = vor.u32 %v1747_v6, %v1683_v36  ;;  %v4590_v6 = vld [vmem:[#allocation29_spill] sm:$0xff] }
 0x2e1   :  { %2130 = vmatpush.bf16.msra.mxu0 %v4585_v23  ;;  %2143 = vmatpush.bf16.msra.mxu1 %v4586_v0  ;;  %v1269_v15 = vand.u32 15, %v1205_v38  ;;  %v1717_v34 = vshra.s32 %v1333_v8, 1  ;;  %v1349_v20 = vand.u32 15, %v1157_v37  ;;  %v1413_v63 = vshra.s32 %v1157_v37, 8 }
 0x2e2   :  { %2674 = vmatpush.msk.msrb.mxu2 %vm1877_vm8, %v2744_v22  ;;  %2690 = vmatpush.msk.msrb.mxu3 %vm1893_vm7, %v2744_v22  ;;  %v1699_v49 = vor.u32 %v1635_v58, %v1507_v59  ;;  %v1461_v30 = vshll.u32 %v1397_v5, 6  ;;  %v1285_v54 = vand.u32 15, %v1221_v27  ;;  %vm1875_vm1 = vcmp.eq.s32.totalorder %v1811_v57, %v2843_v24 }
 0x2e3   :  { %2580 = vmatmul.msk.bf16.vlgmr.msra.gmra.mxu2 %vm536_vm13, %v4102_v11  ;;  %2581 = vmatmul.msk.bf16.vlgmr.msra.gmra.mxu3 %vm536_vm13, %v4102_v11  ;;  %v1525_v53 = vshra.s32 %v1269_v15, 1  ;;  %v1733_v41 = vshra.s32 %v1349_v20, 1  ;;  %v1234_v39 = vshra.s32 %v1170_v3, 4  ;;  %v4587_v47 = vor.u32 %v3968_v35, %v3988_v12 }
 0x2e4   :  { %2675 = vmatpush.msk.msrb.mxu2 %vm1876_vm6, %v2744_v22  ;;  %2691 = vmatpush.msk.msrb.mxu3 %vm1892_vm3, %v2744_v22  ;;  %v4588_v51 = vor.u32 %v3986_v14, %v3966_v32  ;;  %v1827_v17 = vor.u32 %v1763_v13, %v1699_v49  ;;  %v1477_v40 = vshll.u32 %v1413_v63, 6  ;;  %v1541_v45 = vshra.s32 %v1285_v54, 1 }
 0x2e5   :  { %2131 = vmatpush.bf16.msra.mxu0 %v4587_v47  ;;  %v1362_v25 = vand.u32 15, %v1170_v3  ;;  %v1589_v50 = vshll.u32 %v1525_v53, 3  ;;  %v1298_v9 = vand.u32 15, %v1234_v39  ;;  %v1426_v10 = vshra.s32 %v1170_v3, 8 }
 0x2e6   :  { %2144 = vmatpush.bf16.msra.mxu1 %v4588_v51  ;;  %2676 = vmatpush.msk.msrb.mxu2 %vm1875_vm1, %v2744_v22  ;;  %v1186_v61 = vadd.s32 480, %v4029_v1  ;;  %vm1891_vm9 = vcmp.eq.s32.totalorder %v1827_v17, %v2843_v24  ;;  %v1605_v60 = vshll.u32 %v1541_v45, 3  ;;  %v1140_v12 = vadd.s32 112, %v4029_v1 }
 0x2e7   :  { %v1746_v35 = vshra.s32 %v1362_v25, 1  ;;  %2692 = vmatpush.msk.msrb.mxu3 %vm1891_vm9, %v2744_v22  ;;  %v1653_v32 = vor.u32 %v1589_v50, %v1461_v30  ;;  %v1490_v14 = vshll.u32 %v1426_v10, 6  ;;  %v1554_v33 = vshra.s32 %v1298_v9, 1 }
 0x2e8   :  { %v1250_v2 = vshra.s32 %v1186_v61, 4  ;;  %v4589_v56 = vor.u32 %v4012_v31, %v3922_v48  ;;  %v4591_v42 = vor.u32 %v3920_v26, %v4590_v6  ;;  %v1669_v44 = vor.u32 %v1605_v60, %v1477_v40 }
 0x2e9   :  { %v1378_v28 = vand.u32 15, %v1186_v61  ;;  %v1442_v46 = vshra.s32 %v1186_v61, 8  ;;  %v1204_v21 = vshra.s32 %v1140_v12, 4  ;;  %v1781_v4 = vor.u32 %v1717_v34, %v1653_v32 }
 0x2ea   :  { %2132 = vmatpush.bf16.msra.mxu0 %v4589_v56  ;;  %2145 = vmatpush.bf16.msra.mxu1 %v4591_v42  ;;  %v1618_v29 = vshll.u32 %v1554_v33, 3  ;;  %v1314_v62 = vand.u32 15, %v1250_v2  ;;  %v1332_v52 = vand.u32 15, %v1140_v12  ;;  %v1797_v18 = vor.u32 %v1733_v41, %v1669_v44 }
 0x2eb   :  { %v1506_v16 = vshll.u32 %v1442_v46, 6  ;;  %v1762_v37 = vshra.s32 %v1378_v28, 1  ;;  %v1268_v43 = vand.u32 15, %v1204_v21  ;;  %vm1845_vm5 = vcmp.eq.s32.totalorder %v1781_v4, %v2843_v24 }
 0x2ec   :  { %v1682_v26 = vor.u32 %v1618_v29, %v1490_v14  ;;  %v1570_v48 = vshra.s32 %v1314_v62, 1  ;;  %v1396_v31 = vshra.s32 %v1140_v12, 8  ;;  %vm1861_vm12 = vcmp.eq.s32.totalorder %v1797_v18, %v2843_v24 }
 0x2ed   :  { %2578 = vmatmul.msk.bf16.vlgmr.msra.gmra.mxu0 %vm536_vm13, %v4102_v11  ;;  %2579 = vmatmul.msk.bf16.vlgmr.msra.gmra.mxu1 %vm536_vm13, %v4102_v11  ;;  %v1524_v55 = vshra.s32 %v1268_v43, 1  ;;  %v1716_v7 = vshra.s32 %v1332_v52, 1  ;;  %v1156_v19 = vadd.s32 240, %v4029_v1  ;;  %v1169_v11 = vadd.s32 344, %v4029_v1 }
 0x2ee   :  { %2642 = vmatpush.msk.msrb.mxu0 %vm1845_vm5, %v2744_v22  ;;  %2658 = vmatpush.msk.msrb.mxu1 %vm1861_vm12, %v2744_v22  ;;  %v1810_v13 = vor.u32 %v1746_v35, %v1682_v26  ;;  %v1634_v3 = vshll.u32 %v1570_v48, 3  ;;  %v1460_v36 = vshll.u32 %v1396_v31, 6  ;;  %v1185_v53 = vadd.s32 472, %v4029_v1 }
 0x2ef   :  { %v1588_v59 = vshll.u32 %v1524_v55, 3  ;;  %v1220_v38 = vshra.s32 %v1156_v19, 4  ;;  %v1348_v8 = vand.u32 15, %v1156_v19  ;;  %v1412_v23 = vshra.s32 %v1156_v19, 8 }
 0x2f0   :  { %vm1874_vm13 = vcmp.eq.s32.totalorder %v1810_v13, %v2843_v24  ;;  %v1698_v0 = vor.u32 %v1634_v3, %v1506_v16  ;;  %v1233_v58 = vshra.s32 %v1169_v11, 4  ;;  %v1361_v15 = vand.u32 15, %v1169_v11 }
 0x2f1   :  { %2677 = vmatpush.msk.msrb.mxu2 %vm1874_vm13, %v2744_v22  ;;  %v1652_v5 = vor.u32 %v1588_v59, %v1460_v36  ;;  %v1284_v27 = vand.u32 15, %v1220_v38  ;;  %v1476_v57 = vshll.u32 %v1412_v23, 6  ;;  %v1732_v20 = vshra.s32 %v1348_v8, 1 }
 0x2f2   :  { %v1826_v34 = vor.u32 %v1762_v37, %v1698_v0  ;;  %v1297_v49 = vand.u32 15, %v1233_v58  ;;  %v1425_v30 = vshra.s32 %v1169_v11, 8  ;;  %v1139_v41 = vadd.s32 104, %v4029_v1 }
 0x2f3   :  { %v1780_v54 = vor.u32 %v1716_v7, %v1652_v5  ;;  %v1540_v63 = vshra.s32 %v1284_v27, 1  ;;  %v1155_v51 = vadd.s32 232, %v4029_v1  ;;  %v1249_v40 = vshra.s32 %v1185_v53, 4 }
 0x2f4   :  { %vm1890_vm15 = vcmp.eq.s32.totalorder %v1826_v34, %v2843_v24  ;;  %v1489_v39 = vshll.u32 %v1425_v30, 6  ;;  %v1553_v47 = vshra.s32 %v1297_v49, 1  ;;  %v1377_v45 = vand.u32 15, %v1185_v53 }
 0x2f5   :  { %2693 = vmatpush.msk.msrb.mxu3 %vm1890_vm15, %v2744_v22  ;;  %vm1844_vm2 = vcmp.eq.s32.totalorder %v1780_v54, %v2843_v24  ;;  %v1604_v17 = vshll.u32 %v1540_v63, 3  ;;  %v1745_v50 = vshra.s32 %v1361_v15, 1  ;;  %v1441_v9 = vshra.s32 %v1185_v53, 8 }
 0x2f6   :  { %2643 = vmatpush.msk.msrb.mxu0 %vm1844_vm2, %v2744_v22  ;;  %v1617_v25 = vshll.u32 %v1553_v47, 3  ;;  %v1203_v10 = vshra.s32 %v1139_v41, 4  ;;  %v1313_v60 = vand.u32 15, %v1249_v40  ;;  %v1331_v35 = vand.u32 15, %v1139_v41 }
 0x2f7   :  { %v1668_v61 = vor.u32 %v1604_v17, %v1476_v57  ;;  %v1395_v12 = vshra.s32 %v1139_v41, 8  ;;  %v1505_v14 = vshll.u32 %v1441_v9, 6  ;;  %v1761_v33 = vshra.s32 %v1377_v45, 1 }
 0x2f8   :  { %v1681_v32 = vor.u32 %v1617_v25, %v1489_v39  ;;  %v1267_v2 = vand.u32 15, %v1203_v10  ;;  %v1569_v6 = vshra.s32 %v1313_v60, 1  ;;  %v1219_v44 = vshra.s32 %v1155_v51, 4 }
 0x2f9   :  { %v1796_v56 = vor.u32 %v1732_v20, %v1668_v61  ;;  %v1459_v42 = vshll.u32 %v1395_v12, 6  ;;  %v1347_v21 = vand.u32 15, %v1155_v51  ;;  %v1411_v4 = vshra.s32 %v1155_v51, 8 }
 0x2fa   :  { %v1809_v28 = vor.u32 %v1745_v50, %v1681_v32  ;;  %v1523_v46 = vshra.s32 %v1267_v2, 1  ;;  %v1633_v29 = vshll.u32 %v1569_v6, 3  ;;  %v1283_v62 = vand.u32 15, %v1219_v44 }
 0x2fb   :  { %vm1860_vm14 = vcmp.eq.s32.totalorder %v1796_v56, %v2843_v24  ;;  %v1168_v52 = vadd.s32 336, %v4029_v1  ;;  %v1715_v16 = vshra.s32 %v1331_v35, 1  ;;  %v1475_v43 = vshll.u32 %v1411_v4, 6 }
 0x2fc   :  { %2659 = vmatpush.msk.msrb.mxu1 %vm1860_vm14, %v2744_v22  ;;  %vm1873_vm10 = vcmp.eq.s32.totalorder %v1809_v28, %v2843_v24  ;;  %v1587_v18 = vshll.u32 %v1523_v46, 3  ;;  %v1697_v37 = vor.u32 %v1633_v29, %v1505_v14  ;;  %v1539_v26 = vshra.s32 %v1283_v62, 1 }
 0x2fd   :  { %2678 = vmatpush.msk.msrb.mxu2 %vm1873_vm10, %v2744_v22  ;;  %v1232_v48 = vshra.s32 %v1168_v52, 4  ;;  %v1731_v55 = vshra.s32 %v1347_v21, 1  ;;  %v1424_v7 = vshra.s32 %v1168_v52, 8  ;;  %v1184_v19 = vadd.s32 464, %v4029_v1 }
 0x2fe   :  { %v1651_v31 = vor.u32 %v1587_v18, %v1459_v42  ;;  %v1825_v13 = vor.u32 %v1761_v33, %v1697_v37  ;;  %v1603_v3 = vshll.u32 %v1539_v26, 3  ;;  %v1360_v11 = vand.u32 15, %v1168_v52 }
 0x2ff   :  { %v1296_v36 = vand.u32 15, %v1232_v48  ;;  %v1488_v38 = vshll.u32 %v1424_v7, 6  ;;  %v1248_v8 = vshra.s32 %v1184_v19, 4  ;;  %v1440_v58 = vshra.s32 %v1184_v19, 8 }
 0x300   :  { %v1779_v59 = vor.u32 %v1715_v16, %v1651_v31  ;;  %vm1889_vm4 = vcmp.eq.s32.totalorder %v1825_v13, %v2843_v24  ;;  %v1667_v23 = vor.u32 %v1603_v3, %v1475_v43  ;;  %v1376_v27 = vand.u32 15, %v1184_v19 }
 0x301   :  { %v1552_v0 = vshra.s32 %v1296_v36, 1  ;;  %2694 = vmatpush.msk.msrb.mxu3 %vm1889_vm4, %v2744_v22  ;;  %v1312_v5 = vand.u32 15, %v1248_v8  ;;  %v1744_v34 = vshra.s32 %v1360_v11, 1  ;;  %v1504_v20 = vshll.u32 %v1440_v58, 6 }
 0x302   :  { %vm1843_vm11 = vcmp.eq.s32.totalorder %v1779_v59, %v2843_v24  ;;  %v1795_v57 = vor.u32 %v1731_v55, %v1667_v23  ;;  %v1760_v63 = vshra.s32 %v1376_v27, 1  ;;  %v1138_v47 = vadd.s32 96, %v4029_v1 }
 0x303   :  { %2644 = vmatpush.msk.msrb.mxu0 %vm1843_vm11, %v2744_v22  ;;  %v1616_v15 = vshll.u32 %v1552_v0, 3  ;;  %v1568_v49 = vshra.s32 %v1312_v5, 1  ;;  %v1154_v51 = vadd.s32 224, %v4029_v1  ;;  %v1167_v17 = vadd.s32 328, %v4029_v1 }
 0x304   :  { %vm1859_vm0 = vcmp.eq.s32.totalorder %v1795_v57, %v2843_v24  ;;  %v1183_v40 = vadd.s32 456, %v4029_v1  ;;  %v1202_v45 = vshra.s32 %v1138_v47, 4  ;;  %v1137_v10 = vadd.s32 88, %v4029_v1 }
 0x305   :  { %v1680_v30 = vor.u32 %v1616_v15, %v1488_v38  ;;  %2660 = vmatpush.msk.msrb.mxu1 %vm1859_vm0, %v2744_v22  ;;  %v1632_v54 = vshll.u32 %v1568_v49, 3  ;;  %v1218_v25 = vshra.s32 %v1154_v51, 4  ;;  %v1231_v50 = vshra.s32 %v1167_v17, 4 }
 0x306   :  { %v1247_v9 = vshra.s32 %v1183_v40, 4  ;;  %v4185_v61 = vadd.s32 216, %v4029_v1  ;;  %v4188_v60 = vadd.s32 320, %v4029_v1  ;;  %v4191_v35 = vadd.s32 448, %v4029_v1 }
 0x307   :  { %v1808_v53 = vor.u32 %v1744_v34, %v1680_v30  ;;  %v1696_v41 = vor.u32 %v1632_v54, %v1504_v20  ;;  %v1266_v12 = vand.u32 15, %v1202_v45  ;;  %v1282_v32 = vand.u32 15, %v1218_v25 }
 0x308   :  { %v1295_v14 = vand.u32 15, %v1231_v50  ;;  %v1311_v33 = vand.u32 15, %v1247_v9  ;;  %v1201_v2 = vshra.s32 %v1137_v10, 4  ;;  %v1217_v56 = vshra.s32 %v4185_v61, 4 }
 0x309   :  { %vm1872_vm8 = vcmp.eq.s32.totalorder %v1808_v53, %v2843_v24  ;;  %v1824_v39 = vor.u32 %v1760_v63, %v1696_v41  ;;  %v1230_v6 = vshra.s32 %v4188_v60, 4  ;;  %v1246_v42 = vshra.s32 %v4191_v35, 4 }
 0x30a   :  { %2679 = vmatpush.msk.msrb.mxu2 %vm1872_vm8, %v2744_v22  ;;  %v1394_v44 = vshra.s32 %v1138_v47, 8  ;;  %v1522_v28 = vshra.s32 %v1266_v12, 1  ;;  %v1410_v46 = vshra.s32 %v1154_v51, 8  ;;  %v1538_v21 = vshra.s32 %v1282_v32, 1 }
 0x30b   :  { %vm1888_vm7 = vcmp.eq.s32.totalorder %v1824_v39, %v2843_v24  ;;  %v1423_v4 = vshra.s32 %v1167_v17, 8  ;;  %v1551_v29 = vshra.s32 %v1295_v14, 1  ;;  %v1439_v62 = vshra.s32 %v1183_v40, 8 }
 0x30c   :  { %2695 = vmatpush.msk.msrb.mxu3 %vm1888_vm7, %v2744_v22  ;;  %v1567_v52 = vshra.s32 %v1311_v33, 1  ;;  %v1330_v18 = vand.u32 15, %v1138_v47  ;;  %v1458_v16 = vshll.u32 %v1394_v44, 6  ;;  %v1586_v37 = vshll.u32 %v1522_v28, 3 }
 0x30d   :  { %v1346_v43 = vand.u32 15, %v1154_v51  ;;  %v1474_v26 = vshll.u32 %v1410_v46, 6  ;;  %v1602_v48 = vshll.u32 %v1538_v21, 3  ;;  %v1359_v31 = vand.u32 15, %v1167_v17 }
 0x30e   :  { %v1487_v55 = vshll.u32 %v1423_v4, 6  ;;  %v1650_v7 = vor.u32 %v1586_v37, %v1458_v16  ;;  %v1714_v19 = vshra.s32 %v1330_v18, 1  ;;  %v1615_v3 = vshll.u32 %v1551_v29, 3 }
 0x30f   :  { %v1730_v13 = vshra.s32 %v1346_v43, 1  ;;  %v1666_v36 = vor.u32 %v1602_v48, %v1474_v26  ;;  %v1743_v11 = vshra.s32 %v1359_v31, 1  ;;  %v1375_v59 = vand.u32 15, %v1183_v40 }
 0x310   :  { %v1503_v38 = vshll.u32 %v1439_v62, 6  ;;  %v1778_v8 = vor.u32 %v1714_v19, %v1650_v7  ;;  %v1679_v23 = vor.u32 %v1615_v3, %v1487_v55  ;;  %v1631_v0 = vshll.u32 %v1567_v52, 3 }
 0x311   :  { %v1265_v58 = vand.u32 15, %v1201_v2  ;;  %v1794_v5 = vor.u32 %v1730_v13, %v1666_v36  ;;  %v1759_v27 = vshra.s32 %v1375_v59, 1  ;;  %v1329_v57 = vand.u32 15, %v1137_v10 }
 0x312   :  { %v1393_v15 = vshra.s32 %v1137_v10, 8  ;;  %vm1842_vm6 = vcmp.eq.s32.totalorder %v1778_v8, %v2843_v24  ;;  %v1807_v34 = vor.u32 %v1743_v11, %v1679_v23  ;;  %v1695_v20 = vor.u32 %v1631_v0, %v1503_v38 }
 0x313   :  { %v1521_v49 = vshra.s32 %v1265_v58, 1  ;;  %2645 = vmatpush.msk.msrb.mxu0 %vm1842_vm6, %v2744_v22  ;;  %vm1858_vm3 = vcmp.eq.s32.totalorder %v1794_v5, %v2843_v24  ;;  %v1713_v54 = vshra.s32 %v1329_v57, 1  ;;  %v1281_v63 = vand.u32 15, %v1217_v56 }
 0x314   :  { %v1457_v30 = vshll.u32 %v1393_v15, 6  ;;  %2661 = vmatpush.msk.msrb.mxu1 %vm1858_vm3, %v2744_v22  ;;  %vm1871_vm1 = vcmp.eq.s32.totalorder %v1807_v34, %v2843_v24  ;;  %v1823_v53 = vor.u32 %v1759_v27, %v1695_v20  ;;  %v1345_v39 = vand.u32 15, %v4185_v61 }
 0x315   :  { %v1585_v41 = vshll.u32 %v1521_v49, 3  ;;  %2680 = vmatpush.msk.msrb.mxu2 %vm1871_vm1, %v2744_v22  ;;  %v1409_v47 = vshra.s32 %v4185_v61, 8  ;;  %v1537_v51 = vshra.s32 %v1281_v63, 1  ;;  %v1294_v17 = vand.u32 15, %v1230_v6 }
 0x316   :  { %v1358_v40 = vand.u32 15, %v4188_v60  ;;  %vm1887_vm9 = vcmp.eq.s32.totalorder %v1823_v53, %v2843_v24  ;;  %v1729_v25 = vshra.s32 %v1345_v39, 1  ;;  %v1422_v50 = vshra.s32 %v4188_v60, 8 }
 0x317   :  { %v1649_v45 = vor.u32 %v1585_v41, %v1457_v30  ;;  %2696 = vmatpush.msk.msrb.mxu3 %vm1887_vm9, %v2744_v22  ;;  %v1473_v9 = vshll.u32 %v1409_v47, 6  ;;  %v1601_v10 = vshll.u32 %v1537_v51, 3  ;;  %v1550_v12 = vshra.s32 %v1294_v17, 1 }
 0x318   :  { %v1742_v32 = vshra.s32 %v1358_v40, 1  ;;  %v1486_v33 = vshll.u32 %v1422_v50, 6  ;;  %v1310_v2 = vand.u32 15, %v1246_v42  ;;  %v1374_v61 = vand.u32 15, %v4191_v35 }
 0x319   :  { %v1777_v14 = vor.u32 %v1713_v54, %v1649_v45  ;;  %v1665_v56 = vor.u32 %v1601_v10, %v1473_v9  ;;  %v1614_v6 = vshll.u32 %v1550_v12, 3  ;;  %v1438_v44 = vshra.s32 %v4191_v35, 8 }
 0x31a   :  { %v1136_v28 = vadd.s32 80, %v4029_v1  ;;  %v1566_v60 = vshra.s32 %v1310_v2, 1  ;;  %v1758_v46 = vshra.s32 %v1374_v61, 1  ;;  %v1152_v21 = vadd.s32 208, %v4029_v1 }
 0x31b   :  { %vm1841_vm5 = vcmp.eq.s32.totalorder %v1777_v14, %v2843_v24  ;;  %v1793_v4 = vor.u32 %v1729_v25, %v1665_v56  ;;  %v1678_v29 = vor.u32 %v1614_v6, %v1486_v33  ;;  %v1502_v62 = vshll.u32 %v1438_v44, 6 }
 0x31c   :  { %2646 = vmatpush.msk.msrb.mxu0 %vm1841_vm5, %v2744_v22  ;;  %v1200_v42 = vshra.s32 %v1136_v28, 4  ;;  %v1630_v52 = vshll.u32 %v1566_v60, 3  ;;  %v1328_v18 = vand.u32 15, %v1136_v28  ;;  %v1392_v16 = vshra.s32 %v1136_v28, 8 }
 0x31d   :  { %v1216_v37 = vshra.s32 %v1152_v21, 4  ;;  %vm1857_vm12 = vcmp.eq.s32.totalorder %v1793_v4, %v2843_v24  ;;  %v1806_v35 = vor.u32 %v1742_v32, %v1678_v29  ;;  %v1344_v26 = vand.u32 15, %v1152_v21 }
 0x31e   :  { %v1264_v43 = vand.u32 15, %v1200_v42  ;;  %2662 = vmatpush.msk.msrb.mxu1 %vm1857_vm12, %v2744_v22  ;;  %v1694_v48 = vor.u32 %v1630_v52, %v1502_v62  ;;  %v1456_v31 = vshll.u32 %v1392_v16, 6  ;;  %v1712_v55 = vshra.s32 %v1328_v18, 1 }
 0x31f   :  { %v1280_v7 = vand.u32 15, %v1216_v37  ;;  %vm1870_vm13 = vcmp.eq.s32.totalorder %v1806_v35, %v2843_v24  ;;  %v1408_v13 = vshra.s32 %v1152_v21, 8  ;;  %v1728_v3 = vshra.s32 %v1344_v26, 1 }
 0x320   :  { %v1520_v19 = vshra.s32 %v1264_v43, 1  ;;  %2681 = vmatpush.msk.msrb.mxu2 %vm1870_vm13, %v2744_v22  ;;  %v1822_v36 = vor.u32 %v1758_v46, %v1694_v48  ;;  %v1165_v59 = vadd.s32 312, %v4029_v1  ;;  %v1181_v38 = vadd.s32 440, %v4029_v1 }
 0x321   :  { %v1536_v11 = vshra.s32 %v1280_v7, 1  ;;  %v1472_v23 = vshll.u32 %v1408_v13, 6  ;;  %v1135_v0 = vadd.s32 72, %v4029_v1  ;;  %v1151_v58 = vadd.s32 200, %v4029_v1 }
 0x322   :  { %v1584_v8 = vshll.u32 %v1520_v19, 3  ;;  %vm1886_vm15 = vcmp.eq.s32.totalorder %v1822_v36, %v2843_v24  ;;  %v1229_v27 = vshra.s32 %v1165_v59, 4  ;;  %v1357_v57 = vand.u32 15, %v1165_v59 }
 0x323   :  { %v1600_v5 = vshll.u32 %v1536_v11, 3  ;;  %2697 = vmatpush.msk.msrb.mxu3 %vm1886_vm15, %v2744_v22  ;;  %v1421_v34 = vshra.s32 %v1165_v59, 8  ;;  %v1245_v20 = vshra.s32 %v1181_v38, 4  ;;  %v1373_v49 = vand.u32 15, %v1181_v38 }
 0x324   :  { %v1648_v15 = vor.u32 %v1584_v8, %v1456_v31  ;;  %v1293_v54 = vand.u32 15, %v1229_v27  ;;  %v1741_v63 = vshra.s32 %v1357_v57, 1  ;;  %v1437_v53 = vshra.s32 %v1181_v38, 8 }
 0x325   :  { %v1664_v30 = vor.u32 %v1600_v5, %v1472_v23  ;;  %v1485_v39 = vshll.u32 %v1421_v34, 6  ;;  %v1309_v47 = vand.u32 15, %v1245_v20  ;;  %v1757_v51 = vshra.s32 %v1373_v49, 1 }
 0x326   :  { %v1776_v41 = vor.u32 %v1712_v55, %v1648_v15  ;;  %v1549_v40 = vshra.s32 %v1293_v54, 1  ;;  %v1501_v45 = vshll.u32 %v1437_v53, 6  ;;  %v1199_v25 = vshra.s32 %v1135_v0, 4 }
 0x327   :  { %v1792_v17 = vor.u32 %v1728_v3, %v1664_v30  ;;  %v1565_v50 = vshra.s32 %v1309_v47, 1  ;;  %v1327_v9 = vand.u32 15, %v1135_v0  ;;  %v1391_v10 = vshra.s32 %v1135_v0, 8 }
 0x328   :  { %vm1840_vm2 = vcmp.eq.s32.totalorder %v1776_v41, %v2843_v24  ;;  %v1613_v12 = vshll.u32 %v1549_v40, 3  ;;  %v1263_v32 = vand.u32 15, %v1199_v25  ;;  %v1215_v14 = vshra.s32 %v1151_v58, 4 }
 0x329   :  { %2647 = vmatpush.msk.msrb.mxu0 %vm1840_vm2, %v2744_v22  ;;  %vm1856_vm14 = vcmp.eq.s32.totalorder %v1792_v17, %v2843_v24  ;;  %v1629_v33 = vshll.u32 %v1565_v50, 3  ;;  %v1455_v2 = vshll.u32 %v1391_v10, 6  ;;  %v1711_v61 = vshra.s32 %v1327_v9, 1 }
 0x32a   :  { %2663 = vmatpush.msk.msrb.mxu1 %vm1856_vm14, %v2744_v22  ;;  %v1343_v56 = vand.u32 15, %v1151_v58  ;;  %v1677_v6 = vor.u32 %v1613_v12, %v1485_v39  ;;  %v1519_v44 = vshra.s32 %v1263_v32, 1  ;;  %v1279_v28 = vand.u32 15, %v1215_v14 }
 0x32b   :  { %v1407_v60 = vshra.s32 %v1151_v58, 8  ;;  %v1693_v46 = vor.u32 %v1629_v33, %v1501_v45  ;;  %v1164_v4 = vadd.s32 304, %v4029_v1  ;;  %v1180_v29 = vadd.s32 432, %v4029_v1 }
 0x32c   :  { %v1727_v21 = vshra.s32 %v1343_v56, 1  ;;  %v1805_v62 = vor.u32 %v1741_v63, %v1677_v6  ;;  %v1583_v42 = vshll.u32 %v1519_v44, 3  ;;  %v1535_v18 = vshra.s32 %v1279_v28, 1 }
 0x32d   :  { %v1471_v52 = vshll.u32 %v1407_v60, 6  ;;  %v1821_v16 = vor.u32 %v1757_v51, %v1693_v46  ;;  %v1228_v37 = vshra.s32 %v1164_v4, 4  ;;  %v1356_v35 = vand.u32 15, %v1164_v4 }
 0x32e   :  { %v1420_v43 = vshra.s32 %v1164_v4, 8  ;;  %vm1869_vm10 = vcmp.eq.s32.totalorder %v1805_v62, %v2843_v24  ;;  %v1647_v31 = vor.u32 %v1583_v42, %v1455_v2  ;;  %v1599_v55 = vshll.u32 %v1535_v18, 3 }
 0x32f   :  { %v1244_v7 = vshra.s32 %v1180_v29, 4  ;;  %2682 = vmatpush.msk.msrb.mxu2 %vm1869_vm10, %v2744_v22  ;;  %vm1885_vm4 = vcmp.eq.s32.totalorder %v1821_v16, %v2843_v24  ;;  %v1292_v19 = vand.u32 15, %v1228_v37  ;;  %v1740_v3 = vshra.s32 %v1356_v35, 1 }
 0x330   :  { %v1484_v13 = vshll.u32 %v1420_v43, 6  ;;  %2698 = vmatpush.msk.msrb.mxu3 %vm1885_vm4, %v2744_v22  ;;  %v1775_v36 = vor.u32 %v1711_v61, %v1647_v31  ;;  %v1663_v11 = vor.u32 %v1599_v55, %v1471_v52  ;;  %v1372_v38 = vand.u32 15, %v1180_v29 }
 0x331   :  { %v1308_v59 = vand.u32 15, %v1244_v7  ;;  %v1548_v8 = vshra.s32 %v1292_v19, 1  ;;  %v1436_v23 = vshra.s32 %v1180_v29, 8  ;;  %v1134_v0 = vadd.s32 64, %v4029_v1 }
 0x332   :  { %v1150_v58 = vadd.s32 192, %v4029_v1  ;;  %vm1839_vm11 = vcmp.eq.s32.totalorder %v1775_v36, %v2843_v24  ;;  %v1791_v5 = vor.u32 %v1727_v21, %v1663_v11  ;;  %v1756_v57 = vshra.s32 %v1372_v38, 1 }
 0x333   :  { %v1564_v27 = vshra.s32 %v1308_v59, 1  ;;  %2648 = vmatpush.msk.msrb.mxu0 %vm1839_vm11, %v2744_v22  ;;  %v1612_v20 = vshll.u32 %v1548_v8, 3  ;;  %v1500_v49 = vshll.u32 %v1436_v23, 6  ;;  %v1198_v30 = vshra.s32 %v1134_v0, 4 }
 0x334   :  { %v1326_v54 = vand.u32 15, %v1134_v0  ;;  %vm1855_vm0 = vcmp.eq.s32.totalorder %v1791_v5, %v2843_v24  ;;  %v1390_v53 = vshra.s32 %v1134_v0, 8  ;;  %v1214_v41 = vshra.s32 %v1150_v58, 4 }
 0x335   :  { %v1628_v63 = vshll.u32 %v1564_v27, 3  ;;  %2664 = vmatpush.msk.msrb.mxu1 %vm1855_vm0, %v2744_v22  ;;  %v1676_v39 = vor.u32 %v1612_v20, %v1484_v13  ;;  %v1262_v47 = vand.u32 15, %v1198_v30  ;;  %v1342_v17 = vand.u32 15, %v1150_v58 }
 0x336   :  { %v1710_v51 = vshra.s32 %v1326_v54, 1  ;;  %v1454_v50 = vshll.u32 %v1390_v53, 6  ;;  %v1278_v9 = vand.u32 15, %v1214_v41  ;;  %v1406_v10 = vshra.s32 %v1150_v58, 8 }
 0x337   :  { %v1692_v40 = vor.u32 %v1628_v63, %v1500_v49  ;;  %v1804_v12 = vor.u32 %v1740_v3, %v1676_v39  ;;  %v1518_v32 = vshra.s32 %v1262_v47, 1  ;;  %v1726_v14 = vshra.s32 %v1342_v17, 1 }
 0x338   :  { %v1163_v33 = vadd.s32 296, %v4029_v1  ;;  %v1470_v61 = vshll.u32 %v1406_v10, 6  ;;  %v1534_v56 = vshra.s32 %v1278_v9, 1  ;;  %v1179_v6 = vadd.s32 424, %v4029_v1 }
 0x339   :  { %v1820_v2 = vor.u32 %v1756_v57, %v1692_v40  ;;  %vm1868_vm8 = vcmp.eq.s32.totalorder %v1804_v12, %v2843_v24  ;;  %v1582_v44 = vshll.u32 %v1518_v32, 3  ;;  %v1133_v13 = vadd.s32 56, %v4029_v1 }
 0x33a   :  { %v1227_v28 = vshra.s32 %v1163_v33, 4  ;;  %v1355_v60 = vand.u32 15, %v1163_v33  ;;  %2683 = vmatpush.msk.msrb.mxu2 %vm1868_vm8, %v2744_v22  ;;  %v1598_v46 = vshll.u32 %v1534_v56, 3  ;;  %v1419_v21 = vshra.s32 %v1163_v33, 8 }
 0x33b   :  { %vm1884_vm7 = vcmp.eq.s32.totalorder %v1820_v2, %v2843_v24  ;;  %v1243_v4 = vshra.s32 %v1179_v6, 4  ;;  %v1646_v29 = vor.u32 %v1582_v44, %v1454_v50  ;;  %v1371_v52 = vand.u32 15, %v1179_v6 }
 0x33c   :  { %2699 = vmatpush.msk.msrb.mxu3 %vm1884_vm7, %v2744_v22  ;;  %v1291_v62 = vand.u32 15, %v1227_v28  ;;  %v1739_v42 = vshra.s32 %v1355_v60, 1  ;;  %v1662_v37 = vor.u32 %v1598_v46, %v1470_v61  ;;  %v1483_v35 = vshll.u32 %v1419_v21, 6 }
 0x33d   :  { %v1307_v43 = vand.u32 15, %v1243_v4  ;;  %v1435_v31 = vshra.s32 %v1179_v6, 8  ;;  %v1774_v55 = vor.u32 %v1710_v51, %v1646_v29  ;;  %v1755_v19 = vshra.s32 %v1371_v52, 1 }
 0x33e   :  { %v1547_v7 = vshra.s32 %v1291_v62, 1  ;;  %v1790_v3 = vor.u32 %v1726_v14, %v1662_v37  ;;  %v1149_v59 = vadd.s32 184, %v4029_v1  ;;  %v1197_v8 = vshra.s32 %v1133_v13, 4 }
 0x33f   :  { %v1499_v36 = vshll.u32 %v1435_v31, 6  ;;  %v1563_v11 = vshra.s32 %v1307_v43, 1  ;;  %vm1838_vm6 = vcmp.eq.s32.totalorder %v1774_v55, %v2843_v24  ;;  %v1325_v23 = vand.u32 15, %v1133_v13 }
 0x340   :  { %v1611_v38 = vshll.u32 %v1547_v7, 3  ;;  %2649 = vmatpush.msk.msrb.mxu0 %vm1838_vm6, %v2744_v22  ;;  %vm1854_vm3 = vcmp.eq.s32.totalorder %v1790_v3, %v2843_v24  ;;  %v1389_v58 = vshra.s32 %v1133_v13, 8  ;;  %v1213_v5 = vshra.s32 %v1149_v59, 4 }
 0x341   :  { %v1627_v0 = vshll.u32 %v1563_v11, 3  ;;  %2665 = vmatpush.msk.msrb.mxu1 %vm1854_vm3, %v2744_v22  ;;  %v1261_v57 = vand.u32 15, %v1197_v8  ;;  %v1709_v20 = vshra.s32 %v1325_v23, 1  ;;  %v1341_v49 = vand.u32 15, %v1149_v59 }
 0x342   :  { %v1675_v27 = vor.u32 %v1611_v38, %v1483_v35  ;;  %v1453_v54 = vshll.u32 %v1389_v58, 6  ;;  %v1277_v63 = vand.u32 15, %v1213_v5  ;;  %v1405_v53 = vshra.s32 %v1149_v59, 8 }
 0x343   :  { %v1691_v30 = vor.u32 %v1627_v0, %v1499_v36  ;;  %v1517_v39 = vshra.s32 %v1261_v57, 1  ;;  %v1725_v47 = vshra.s32 %v1341_v49, 1  ;;  %v1162_v51 = vadd.s32 288, %v4029_v1 }
 0x344   :  { %v1803_v41 = vor.u32 %v1739_v42, %v1675_v27  ;;  %v1469_v40 = vshll.u32 %v1405_v53, 6  ;;  %v1132_v29 = vadd.s32 48, %v4029_v1  ;;  %v1161_v27 = vadd.s32 280, %v4029_v1 }
 0x345   :  { %v1819_v17 = vor.u32 %v1755_v19, %v1691_v30  ;;  %v1581_v50 = vshll.u32 %v1517_v39, 3  ;;  %v1226_v9 = vshra.s32 %v1162_v51, 4  ;;  %v1354_v10 = vand.u32 15, %v1162_v51 }
 0x346   :  { %vm1867_vm1 = vcmp.eq.s32.totalorder %v1803_v41, %v2843_v24  ;;  %v1418_v32 = vshra.s32 %v1162_v51, 8  ;;  %v1196_v37 = vshra.s32 %v1132_v29, 4  ;;  %v1324_v35 = vand.u32 15, %v1132_v29 }
 0x347   :  { %2684 = vmatpush.msk.msrb.mxu2 %vm1867_vm1, %v2744_v22  ;;  %vm1883_vm9 = vcmp.eq.s32.totalorder %v1819_v17, %v2843_v24  ;;  %v1645_v33 = vor.u32 %v1581_v50, %v1453_v54  ;;  %v1290_v2 = vand.u32 15, %v1226_v9  ;;  %v1738_v61 = vshra.s32 %v1354_v10, 1 }
 0x348   :  { %2700 = vmatpush.msk.msrb.mxu3 %vm1883_vm9, %v2744_v22  ;;  %v1482_v44 = vshll.u32 %v1418_v32, 6  ;;  %v1388_v7 = vshra.s32 %v1132_v29, 8  ;;  %v1260_v3 = vand.u32 15, %v1196_v37  ;;  %v1708_v36 = vshra.s32 %v1324_v35, 1 }
 0x349   :  { %v1773_v46 = vor.u32 %v1709_v20, %v1645_v33  ;;  %v1546_v21 = vshra.s32 %v1290_v2, 1  ;;  %v1177_v30 = vadd.s32 408, %v4029_v1  ;;  %v1353_v53 = vand.u32 15, %v1161_v27 }
 0x34a   :  { %v1452_v38 = vshll.u32 %v1388_v7, 6  ;;  %v1516_v58 = vshra.s32 %v1260_v3, 1  ;;  %v1417_v39 = vshra.s32 %v1161_v27, 8 }
 0x34b   :  { %vm1837_vm5 = vcmp.eq.s32.totalorder %v1773_v46, %v2843_v24  ;;  %v1433_v32 = vshra.s32 %v1177_v30, 8 }
 0x34c   :  { %2650 = vmatpush.msk.msrb.mxu0 %vm1837_vm5, %v2744_v22  ;;  %v1580_v54 = vshll.u32 %v1516_v58, 3  ;;  %v1481_v10 = vshll.u32 %v1417_v39, 6 }
 0x34e   :  { %v1644_v51 = vor.u32 %v1580_v54, %v1452_v38 }
 0x350   :  { %v4230_v26 = vpop.f32.mrf.mxu2  ;;  %v4232_v48 = vpop.f32.mrf.mxu3 }
 0x354   :  { %v4241_v15 = vpop.f32.mrf.mxu0  ;;  %v4243_v34 = vpop.f32.mrf.mxu1 }
 0x358   :  { %v1110_v45 = vpop.f32.mrf.mxu2  ;;  %v1123_v25 = vpop.f32.mrf.mxu3 }
 0x359   :  { %v1533_v45 = vshra.s32 %v1277_v63, 1  ;;  %v1178_v25 = vadd.s32 416, %v4029_v1  ;;  %v1225_v63 = vshra.s32 %v1161_v27, 4 }
 0x35b   :  { %v1597_v12 = vshll.u32 %v1533_v45, 3  ;;  %v1242_v14 = vshra.s32 %v1178_v25, 4  ;;  %v1370_v56 = vand.u32 15, %v1178_v25  ;;  %v1434_v60 = vshra.s32 %v1178_v25, 8 }
 0x35c   :  { %v1084_v18 = vpop.f32.mrf.mxu0  ;;  %v1097_v16 = vpop.f32.mrf.mxu1  ;;  %v1289_v17 = vand.u32 15, %v1225_v63  ;;  %v1369_v45 = vand.u32 15, %v1177_v30 }
 0x35d   :  { %v1661_v6 = vor.u32 %v1597_v12, %v1469_v40  ;;  %v1306_v28 = vand.u32 15, %v1242_v14  ;;  %v1754_v4 = vshra.s32 %v1370_v56, 1  ;;  %v1498_v42 = vshll.u32 %v1434_v60, 6 }
 0x35e   :  { %v1148_v18 = vadd.s32 176, %v4029_v1  ;;  %v1610_v16 = vshll.u32 %v1546_v21, 3  ;;  %v1737_v40 = vshra.s32 %v1353_v53, 1  ;;  %v1772_v14 = vor.u32 %v1708_v36, %v1644_v51 }
 0x35f   :  { %v1789_v62 = vor.u32 %v1725_v47, %v1661_v6  ;;  %v1562_v52 = vshra.s32 %v1306_v28, 1  ;;  %v1241_v47 = vshra.s32 %v1177_v30, 4  ;;  %v1545_v33 = vshra.s32 %v1289_v17, 1 }
 0x360   :  { %v1212_v19 = vshra.s32 %v1148_v18, 4  ;;  %v1674_v13 = vor.u32 %v1610_v16, %v1482_v44  ;;  %v1340_v11 = vand.u32 15, %v1148_v18  ;;  %v1404_v23 = vshra.s32 %v1148_v18, 8 }
 0x361   :  { %vm1853_vm12 = vcmp.eq.s32.totalorder %v1789_v62, %v2843_v24  ;;  %v1626_v55 = vshll.u32 %v1562_v52, 3  ;;  %v1305_v12 = vand.u32 15, %v1241_v47  ;;  %v1753_v2 = vshra.s32 %v1369_v45, 1 }
 0x362   :  { %2666 = vmatpush.msk.msrb.mxu1 %vm1853_vm12, %v2744_v22  ;;  %v1276_v8 = vand.u32 15, %v1212_v19  ;;  %v1802_v0 = vor.u32 %v1738_v61, %v1674_v13  ;;  %v1724_v5 = vshra.s32 %v1340_v11, 1  ;;  %v1468_v20 = vshll.u32 %v1404_v23, 6 }
 0x363   :  { %v1690_v59 = vor.u32 %v1626_v55, %v1498_v42  ;;  %v1131_v61 = vadd.s32 40, %v4029_v1  ;;  %v1497_v6 = vshll.u32 %v1433_v32, 6  ;;  %v1561_v44 = vshra.s32 %v1305_v12, 1 }
 0x364   :  { %v1532_v49 = vshra.s32 %v1276_v8, 1  ;;  %vm1866_vm13 = vcmp.eq.s32.totalorder %v1802_v0, %v2843_v24  ;;  %v1147_v28 = vadd.s32 168, %v4029_v1  ;;  %vm1836_vm2 = vcmp.eq.s32.totalorder %v1772_v14, %v2843_v24 }
 0x365   :  { %v1818_v57 = vor.u32 %v1754_v4, %v1690_v59  ;;  %2685 = vmatpush.msk.msrb.mxu2 %vm1866_vm13, %v2744_v22  ;;  %v1609_v60 = vshll.u32 %v1545_v33, 3  ;;  %v1195_v46 = vshra.s32 %v1131_v61, 4  ;;  %v1323_v21 = vand.u32 15, %v1131_v61  ;;  %2651 = vmatpush.msk.msrb.mxu0 %vm1836_vm2, %v2744_v22 }
 0x366   :  { %v4269_v43 = vpop.f32.mrf.mxu2  ;;  %v4271_v31 = vpop.f32.mrf.mxu3  ;;  %v1596_v41 = vshll.u32 %v1532_v49, 3  ;;  %v1625_v4 = vshll.u32 %v1561_v44, 3  ;;  %v1387_v29 = vshra.s32 %v1131_v61, 8  ;;  %v1211_v62 = vshra.s32 %v1147_v28, 4 }
 0x367   :  { %vm1882_vm15 = vcmp.eq.s32.totalorder %v1818_v57, %v2843_v24  ;;  %v1673_v42 = vor.u32 %v1609_v60, %v1481_v10  ;;  %v1259_v52 = vand.u32 15, %v1195_v46  ;;  %v1707_v18 = vshra.s32 %v1323_v21, 1 }
 0x368   :  { %2701 = vmatpush.msk.msrb.mxu3 %vm1882_vm15, %v2744_v22  ;;  %v1660_v9 = vor.u32 %v1596_v41, %v1468_v20  ;;  %v1339_v16 = vand.u32 15, %v1147_v28  ;;  %v1689_v37 = vor.u32 %v1625_v4, %v1497_v6  ;;  %v1451_v35 = vshll.u32 %v1387_v29, 6 }
 0x369   :  { %v1275_v55 = vand.u32 15, %v1211_v62  ;;  %v1403_v7 = vshra.s32 %v1147_v28, 8  ;;  %v1801_v19 = vor.u32 %v1737_v40, %v1673_v42  ;;  %v1515_v13 = vshra.s32 %v1259_v52, 1 }
 0x36a   :  { %v1788_v56 = vor.u32 %v1724_v5, %v1660_v9  ;;  %v1723_v3 = vshra.s32 %v1339_v16, 1  ;;  %v1160_v36 = vadd.s32 272, %v4029_v1  ;;  %v1817_v11 = vor.u32 %v1753_v2, %v1689_v37 }
 0x36b   :  { %v1467_v59 = vshll.u32 %v1403_v7, 6  ;;  %v1531_v38 = vshra.s32 %v1275_v55, 1  ;;  %v1176_v8 = vadd.s32 400, %v4029_v1  ;;  %vm1865_vm10 = vcmp.eq.s32.totalorder %v1801_v19, %v2843_v24 }
 0x36c   :  { %vm1852_vm14 = vcmp.eq.s32.totalorder %v1788_v56, %v2843_v24  ;;  %v1579_v23 = vshll.u32 %v1515_v13, 3  ;;  %v1224_v0 = vshra.s32 %v1160_v36, 4  ;;  %v1352_v58 = vand.u32 15, %v1160_v36  ;;  %2686 = vmatpush.msk.msrb.mxu2 %vm1865_vm10, %v2744_v22  ;;  %v4305_v13 = vpop.f32.mrf.mxu0 }
 0x36d   :  { %2667 = vmatpush.msk.msrb.mxu1 %vm1852_vm14, %v2744_v22  ;;  %vm1881_vm4 = vcmp.eq.s32.totalorder %v1817_v11, %v2843_v24  ;;  %v1595_v5 = vshll.u32 %v1531_v38, 3  ;;  %v1416_v27 = vshra.s32 %v1160_v36, 8  ;;  %v1240_v57 = vshra.s32 %v1176_v8, 4 }
 0x36e   :  { %v2162_v25 = vpop.f32.mrf.mxu2  ;;  %v2175_v50 = vpop.f32.mrf.mxu3  ;;  %2702 = vmatpush.msk.msrb.mxu3 %vm1881_vm4, %v2744_v22  ;;  %v1643_v20 = vor.u32 %v1579_v23, %v1451_v35  ;;  %v1288_v49 = vand.u32 15, %v1224_v0  ;;  %v1368_v30 = vand.u32 15, %v1176_v8  ;;  %v1432_v53 = vshra.s32 %v1176_v8, 8 }
 0x36f   :  { %v1659_v54 = vor.u32 %v1595_v5, %v1467_v59  ;;  %v1304_v63 = vand.u32 15, %v1240_v57  ;;  %v1480_v39 = vshll.u32 %v1416_v27, 6  ;;  %v1736_v51 = vshra.s32 %v1352_v58, 1 }
 0x370   :  { %v1771_v41 = vor.u32 %v1707_v18, %v1643_v20  ;;  %v1544_v47 = vshra.s32 %v1288_v49, 1  ;;  %v1496_v40 = vshll.u32 %v1432_v53, 6  ;;  %v1752_v25 = vshra.s32 %v1368_v30, 1 }
 0x371   :  { %v1787_v17 = vor.u32 %v1723_v3, %v1659_v54  ;;  %v1560_v45 = vshra.s32 %v1304_v63, 1  ;;  %v1130_v9 = vadd.s32 32, %v4029_v1  ;;  %v1146_v10 = vadd.s32 160, %v4029_v1  ;;  %v4307_v3 = vpop.f32.mrf.mxu1 }
 0x372   :  { %vm1835_vm11 = vcmp.eq.s32.totalorder %v1771_v41, %v2843_v24  ;;  %v1608_v50 = vshll.u32 %v1544_v47, 3  ;;  %v1159_v32 = vadd.s32 264, %v4029_v1  ;;  %v1175_v14 = vadd.s32 392, %v4029_v1 }
 0x373   :  { %2652 = vmatpush.msk.msrb.mxu0 %vm1835_vm11, %v2744_v22  ;;  %vm1851_vm0 = vcmp.eq.s32.totalorder %v1787_v17, %v2843_v24  ;;  %v1624_v12 = vshll.u32 %v1560_v45, 3  ;;  %v1194_v2 = vshra.s32 %v1130_v9, 4  ;;  %v1322_v61 = vand.u32 15, %v1130_v9 }
 0x374   :  { %2668 = vmatpush.msk.msrb.mxu1 %vm1851_vm0, %v2744_v22  ;;  %v1672_v33 = vor.u32 %v1608_v50, %v1480_v39  ;;  %v1386_v56 = vshra.s32 %v1130_v9, 8  ;;  %v1210_v44 = vshra.s32 %v1146_v10, 4  ;;  %v1338_v28 = vand.u32 15, %v1146_v10 }
 0x375   :  { %v1688_v6 = vor.u32 %v1624_v12, %v1496_v40  ;;  %v1402_v60 = vshra.s32 %v1146_v10, 8  ;;  %v1258_v21 = vand.u32 15, %v1194_v2  ;;  %v1706_v29 = vshra.s32 %v1322_v61, 1 }
 0x376   :  { %v1800_v46 = vor.u32 %v1736_v51, %v1672_v33  ;;  %v1450_v4 = vshll.u32 %v1386_v56, 6  ;;  %v1274_v42 = vand.u32 15, %v1210_v44  ;;  %v1722_v18 = vshra.s32 %v1338_v28, 1 }
 0x377   :  { %v1816_v62 = vor.u32 %v1752_v25, %v1688_v6  ;;  %v1466_v52 = vshll.u32 %v1402_v60, 6  ;;  %v1514_v16 = vshra.s32 %v1258_v21, 1  ;;  %v1223_v37 = vshra.s32 %v1159_v32, 4 }
 0x378   :  { %vm1864_vm8 = vcmp.eq.s32.totalorder %v1800_v46, %v2843_v24  ;;  %v1351_v35 = vand.u32 15, %v1159_v32  ;;  %v1530_v55 = vshra.s32 %v1274_v42, 1  ;;  %v1415_v7 = vshra.s32 %v1159_v32, 8 }
 0x379   :  { %2687 = vmatpush.msk.msrb.mxu2 %vm1864_vm8, %v2744_v22  ;;  %vm1880_vm7 = vcmp.eq.s32.totalorder %v1816_v62, %v2843_v24  ;;  %v1239_v19 = vshra.s32 %v1175_v14, 4  ;;  %v1578_v36 = vshll.u32 %v1514_v16, 3  ;;  %v1287_v11 = vand.u32 15, %v1223_v37  ;;  %v2149_v33 = vpop.f32.mrf.mxu1 }
 0x37a   :  { %2703 = vmatpush.msk.msrb.mxu3 %vm1880_vm7, %v2744_v22  ;;  %v1735_v59 = vshra.s32 %v1351_v35, 1  ;;  %v1367_v38 = vand.u32 15, %v1175_v14  ;;  %v1594_v8 = vshll.u32 %v1530_v55, 3  ;;  %v1479_v23 = vshll.u32 %v1415_v7, 6 }
 0x37b   :  { %v1303_v0 = vand.u32 15, %v1239_v19  ;;  %v1431_v58 = vshra.s32 %v1175_v14, 8  ;;  %v1642_v5 = vor.u32 %v1578_v36, %v1450_v4  ;;  %v1543_v27 = vshra.s32 %v1287_v11, 1  ;;  %v2136_v14 = vpop.f32.mrf.mxu0 }
 0x37c   :  { %v1751_v57 = vshra.s32 %v1367_v38, 1  ;;  %v1129_v20 = vadd.s32 24, %v4029_v1  ;;  %v1658_v49 = vor.u32 %v1594_v8, %v1466_v52  ;;  %v1145_v63 = vadd.s32 152, %v4029_v1 }
 0x37d   :  { %v1495_v30 = vshll.u32 %v1431_v58, 6  ;;  %v1559_v54 = vshra.s32 %v1303_v0, 1  ;;  %v1770_v53 = vor.u32 %v1706_v29, %v1642_v5  ;;  %v1607_v41 = vshll.u32 %v1543_v27, 3 }
 0x37e   :  { %v1193_v39 = vshra.s32 %v1129_v20, 4  ;;  %v1321_v47 = vand.u32 15, %v1129_v20  ;;  %v1786_v51 = vor.u32 %v1722_v18, %v1658_v49  ;;  %v1385_v40 = vshra.s32 %v1129_v20, 8 }
 0x37f   :  { %v1623_v17 = vshll.u32 %v1559_v54, 3  ;;  %v1209_v45 = vshra.s32 %v1145_v63, 4  ;;  %vm1834_vm6 = vcmp.eq.s32.totalorder %v1770_v53, %v2843_v24  ;;  %v1671_v25 = vor.u32 %v1607_v41, %v1479_v23 }
 0x380   :  { %v1257_v50 = vand.u32 15, %v1193_v39  ;;  %v1705_v9 = vshra.s32 %v1321_v47, 1  ;;  %2653 = vmatpush.msk.msrb.mxu0 %vm1834_vm6, %v2744_v22  ;;  %vm1850_vm3 = vcmp.eq.s32.totalorder %v1786_v51, %v2843_v24  ;;  %v1449_v12 = vshll.u32 %v1385_v40, 6 }
 0x381   :  { %v1687_v10 = vor.u32 %v1623_v17, %v1495_v30  ;;  %v1273_v32 = vand.u32 15, %v1209_v45  ;;  %2669 = vmatpush.msk.msrb.mxu1 %vm1850_vm3, %v2744_v22  ;;  %v1799_v2 = vor.u32 %v1735_v59, %v1671_v25  ;;  %v1337_v56 = vand.u32 15, %v1145_v63 }
 0x382   :  { %v1513_v61 = vshra.s32 %v1257_v50, 1  ;;  %v1401_v6 = vshra.s32 %v1145_v63, 8  ;;  %v1158_v60 = vadd.s32 256, %v4029_v1  ;;  %v1174_v46 = vadd.s32 384, %v4029_v1 }
 0x383   :  { %v1815_v44 = vor.u32 %v1751_v57, %v1687_v10  ;;  %v1529_v28 = vshra.s32 %v1273_v32, 1  ;;  %vm1863_vm1 = vcmp.eq.s32.totalorder %v1799_v2, %v2843_v24  ;;  %v1721_v29 = vshra.s32 %v1337_v56, 1 }
 0x384   :  { %v1577_v21 = vshll.u32 %v1513_v61, 3  ;;  %v1465_v4 = vshll.u32 %v1401_v6, 6  ;;  %2688 = vmatpush.msk.msrb.mxu2 %vm1863_vm1, %v2744_v22  ;;  %v1222_v42 = vshra.s32 %v1158_v60, 4  ;;  %v1350_v52 = vand.u32 15, %v1158_v60 }
 0x385   :  { %vm1879_vm9 = vcmp.eq.s32.totalorder %v1815_v44, %v2843_v24  ;;  %v1593_v62 = vshll.u32 %v1529_v28, 3  ;;  %v1414_v16 = vshra.s32 %v1158_v60, 8  ;;  %v1238_v37 = vshra.s32 %v1174_v46, 4 }
 0x386   :  { %2704 = vmatpush.msk.msrb.mxu3 %vm1879_vm9, %v2744_v22  ;;  %v1641_v18 = vor.u32 %v1577_v21, %v1449_v12  ;;  %v2161_v35 = vadd.f32 %v4269_v43, %v4230_v26  ;;  %v1286_v7 = vand.u32 15, %v1222_v42  ;;  %v1430_v19 = vshra.s32 %v1174_v46, 8 }
 0x387   :  { %v1657_v55 = vor.u32 %v1593_v62, %v1465_v4  ;;  %v1734_v11 = vshra.s32 %v1350_v52, 1  ;;  %v1302_v59 = vand.u32 15, %v1238_v37  ;;  %v1366_v38 = vand.u32 15, %v1174_v46 }
 0x388   :  { %v1769_v36 = vor.u32 %v1705_v9, %v1641_v18  ;;  %v1478_v23 = vshll.u32 %v1414_v16, 6  ;;  %v1542_v0 = vshra.s32 %v1286_v7, 1  ;;  %v1128_v58 = vadd.s32 16, %v4029_v1 }
 0x389   :  { %v1785_v8 = vor.u32 %v1721_v29, %v1657_v55  ;;  %v1494_v5 = vshll.u32 %v1430_v19, 6  ;;  %v1558_v27 = vshra.s32 %v1302_v59, 1  ;;  %v1144_v57 = vadd.s32 144, %v4029_v1 }
 0x38a   :  { %vm1833_vm5 = vcmp.eq.s32.totalorder %v1769_v36, %v2843_v24  ;;  %v1606_v26 = vshll.u32 %v1542_v0, 3  ;;  %v1192_v43 = vshra.s32 %v1128_v58, 4  ;;  %v1320_v20 = vand.u32 15, %v1128_v58 }
 0x38b   :  { %2654 = vmatpush.msk.msrb.mxu0 %vm1833_vm5, %v2744_v22  ;;  %vm1849_vm12 = vcmp.eq.s32.totalorder %v1785_v8, %v2843_v24  ;;  %v1622_v49 = vshll.u32 %v1558_v27, 3  ;;  %v1750_v30 = vshra.s32 %v1366_v38, 1  ;;  %v1384_v54 = vshra.s32 %v1128_v58, 8 }
 0x38c   :  { %2670 = vmatpush.msk.msrb.mxu1 %vm1849_vm12, %v2744_v22  ;;  %v1208_v63 = vshra.s32 %v1144_v57, 4  ;;  %v1670_v53 = vor.u32 %v1606_v26, %v1478_v23  ;;  %v1256_v41 = vand.u32 15, %v1192_v43  ;;  %v1336_v39 = vand.u32 15, %v1144_v57 }
 0x38d   :  { %v1400_v47 = vshra.s32 %v1144_v57, 8  ;;  %v2174_v51 = vadd.f32 %v4271_v31, %v4232_v48  ;;  %v1686_v17 = vor.u32 %v1622_v49, %v1494_v5  ;;  %v1704_v40 = vshra.s32 %v1320_v20, 1  ;;  %v2730_v49 = vld [vmem:[%s4364_s1] sm:$0xff] }
 0x38e   :  { %v1272_v45 = vand.u32 15, %v1208_v63  ;;  %v1798_v25 = vor.u32 %v1734_v11, %v1670_v53  ;;  %v1448_v50 = vshll.u32 %v1384_v54, 6  ;;  %v1512_v9 = vshra.s32 %v1256_v41, 1 }
 0x38f   :  { %v1464_v10 = vshll.u32 %v1400_v47, 6  ;;  %v1814_v12 = vor.u32 %v1750_v30, %v1686_v17  ;;  %v1127_v14 = vadd.s32 8, %v4029_v1  ;;  %v1143_v33 = vadd.s32 136, %v4029_v1 }
 0x390   :  { %v1528_v32 = vshra.s32 %v1272_v45, 1  ;;  %vm1862_vm13 = vcmp.eq.s32.totalorder %v1798_v25, %v2843_v24  ;;  %v1576_v2 = vshll.u32 %v1512_v9, 3  ;;  %v1720_v61 = vshra.s32 %v1336_v39, 1 }
 0x391   :  { %v1190_v56 = vshra.s32 %v4029_v1, 4  ;;  %2689 = vmatpush.msk.msrb.mxu2 %vm1862_vm13, %v2744_v22  ;;  %vm1878_vm15 = vcmp.eq.s32.totalorder %v1814_v12, %v2843_v24  ;;  %v1191_v31 = vshra.s32 %v1127_v14, 4  ;;  %v1319_v6 = vand.u32 15, %v1127_v14 }
 0x392   :  { %v1592_v48 = vshll.u32 %v1528_v32, 3  ;;  %2705 = vmatpush.msk.msrb.mxu3 %vm1878_vm15, %v2744_v22  ;;  %2301 = vmatmul.f32.vlgmr.msrb.gmra.mxu2 %v2161_v35  ;;  %v1640_v44 = vor.u32 %v1576_v2, %v1448_v50  ;;  %v1383_v28 = vshra.s32 %v1127_v14, 8  ;;  %v1207_v60 = vshra.s32 %v1143_v33, 4 }
 0x393   :  { %2321 = vmatmul.f32.vlgmr.msrb.gmra.mxu3 %v2174_v51  ;;  %v1255_v21 = vand.u32 15, %v1191_v31  ;;  %v1399_v4 = vshra.s32 %v1143_v33, 8  ;;  %v1318_v29 = vand.u32 15, %v4029_v1  ;;  %v1703_v42 = vshra.s32 %v1319_v6, 1 }
 0x394   :  { %v1656_v46 = vor.u32 %v1592_v48, %v1464_v10  ;;  %v1768_v62 = vor.u32 %v1704_v40, %v1640_v44  ;;  %v1271_v52 = vand.u32 15, %v1207_v60  ;;  %v1335_v18 = vand.u32 15, %v1143_v33 }
 0x395   :  { %v1447_v37 = vshll.u32 %v1383_v28, 6  ;;  %v1511_v55 = vshra.s32 %v1255_v21, 1  ;;  %v1254_v7 = vand.u32 15, %v1190_v56  ;;  %v1463_v35 = vshll.u32 %v1399_v4, 6 }
 0x396   :  { %v1784_v16 = vor.u32 %v1720_v61, %v1656_v46  ;;  %vm1832_vm2 = vcmp.eq.s32.totalorder %v1768_v62, %v2843_v24  ;;  %v1527_v19 = vshra.s32 %v1271_v52, 1  ;;  %v1382_v36 = vshra.s32 %v4029_v1, 8 }
 0x397   :  { %2655 = vmatpush.msk.msrb.mxu0 %vm1832_vm2, %v2744_v22  ;;  %v1575_v11 = vshll.u32 %v1511_v55, 3  ;;  %v1510_v59 = vshra.s32 %v1254_v7, 1  ;;  %v1142_v38 = vadd.s32 128, %v4029_v1  ;;  %v1719_v23 = vshra.s32 %v1335_v18, 1 }
 0x398   :  { %vm1848_vm14 = vcmp.eq.s32.totalorder %v1784_v16, %v2843_v24  ;;  %v1591_v8 = vshll.u32 %v1527_v19, 3  ;;  %v1446_v0 = vshll.u32 %v1382_v36, 6  ;;  %v1702_v27 = vshra.s32 %v1318_v29, 1 }
 0x399   :  { %2671 = vmatpush.msk.msrb.mxu1 %vm1848_vm14, %v2744_v22  ;;  %v1639_v58 = vor.u32 %v1575_v11, %v1447_v37  ;;  %v1574_v5 = vshll.u32 %v1510_v59, 3  ;;  %v1206_v57 = vshra.s32 %v1142_v38, 4  ;;  %v2745_v26 = vmov 3  }
 0x39a   :  { %2724 = vset.pattern.permute.xlu1 %v2745_v26  ;;  %2725 = vset.pattern.permute.xlu0 %v2745_v26  ;;  %v1655_v43 = vor.u32 %v1591_v8, %v1463_v35  ;;  %v1398_v20 = vshra.s32 %v1142_v38, 8  ;;  %v1334_v63 = vand.u32 15, %v1142_v38  ;;  %v2135_v53 = vadd.f32 %v4305_v13, %v4241_v15 }
 0x39b   :  { %2242 = vperm.xlu1 %2724, %v2730_v49   ;;  %v1767_v1 = vor.u32 %v1703_v42, %v1639_v58  ;;  %v1638_v30 = vor.u32 %v1574_v5, %v1446_v0  ;;  %v1270_v54 = vand.u32 15, %v1206_v57  ;;  %v2148_v15 = vadd.f32 %v4307_v3, %v4243_v34 }
 0x39c   :  { %v1783_v41 = vor.u32 %v1719_v23, %v1655_v43  ;;  %v1462_v47 = vshll.u32 %v1398_v20, 6  ;;  %v1718_v40 = vshra.s32 %v1334_v63, 1 }
 0x39d   :  { %vm1831_vm10 = vcmp.eq.s32.totalorder %v1767_v1, %v2843_v24  ;;  %v1766_v39 = vor.u32 %v1702_v27, %v1638_v30  ;;  %v1526_v51 = vshra.s32 %v1270_v54, 1 }
 0x39e   :  { %2656 = vmatpush.msk.msrb.mxu0 %vm1831_vm10, %v2744_v22  ;;  %vm1847_vm4 = vcmp.eq.s32.totalorder %v1783_v41, %v2843_v24 }
 0x39f   :  { %2672 = vmatpush.msk.msrb.mxu1 %vm1847_vm4, %v2744_v22  ;;  %vm1830_vm11 = vcmp.eq.s32.totalorder %v1766_v39, %v2843_v24  ;;  %v1590_v17 = vshll.u32 %v1526_v51, 3 }
 0x3a0   :  { %2657 = vmatpush.msk.msrb.mxu0 %vm1830_vm11, %v2744_v22 }
 0x3a1   :  { %v1654_v45 = vor.u32 %v1590_v17, %v1462_v47  ;;  %2261 = vmatmul.f32.vlgmr.msrb.gmra.mxu0 %v2135_v53 }
 0x3a3   :  { %v1782_v13 = vor.u32 %v1718_v40, %v1654_v45 }
 0x3a5   :  { %vm1846_vm0 = vcmp.eq.s32.totalorder %v1782_v13, %v2843_v24 }
 0x3a6   :  { %2673 = vmatpush.msk.msrb.mxu1 %vm1846_vm0, %v2744_v22 }
 0x3a7   :  { %2281 = vmatmul.f32.vlgmr.msrb.gmra.mxu1 %v2148_v15 }
 0x40d   :  { %v2243_v25 = vpop.permute.xlu1 %2242 }
 0x415   :  { %v2302_v32 = vpop.f32.mrf.mxu2 }
 0x416   :  { %v2322_v33 = vpop.f32.mrf.mxu3 }
 0x41e   :  { %v2262_v50 = vpop.f32.mrf.mxu0 }
 0x41f   :  { %v2263_v9 = vadd.f32 %v2262_v50, %v2243_v25 }
 0x424   :  { %v2282_v10 = vpop.f32.mrf.mxu1 }
 0x425   :  { %v2283_v12 = vadd.f32 %v2282_v10, %v2263_v9 }
 0x427   :  { %v2303_v14 = vadd.f32 %v2302_v32, %v2283_v12 }
 0x429   :  { %v2323_v2 = vadd.f32 %v2322_v33, %v2303_v14 }
 0x42b   :  { %2325 = vst [vmem:[%s4369_s5] sm:$0xff] %v2323_v2 }

</bundles_post_ra>
